<compile_context>
chip_gen: v7x
topology: tpu7x:2x2x1
jax: 0.10.0
libtpu: 0.0.40
codegen_flags: <defaults>
</compile_context>

<pallas_src>
import functools

import jax
import jax.numpy as jnp
from jax.experimental import pallas as pl
from jax.experimental.pallas import tpu as pltpu


N_CLASSES = 4        # n_classes argument of Detector
N_BOXES_PER_LOC = 4  # default-box count per spatial location
_LANE = 128


def _round_up(x, m):
    return (x + m - 1) // m * m


# ----------------------------------------------------------------------------
# Pallas kernels
# ----------------------------------------------------------------------------
def _matmul_bias_act_kernel(a_ref, b_ref, bias_ref, o_ref, *, apply_relu):
    # Whole-K matmul in a single shot (K always fits in VMEM here), fused
    # bias + optional ReLU, f32 accumulation from bf16 operands.
    acc = jnp.dot(a_ref[...], b_ref[...], preferred_element_type=jnp.float32)
    out = acc + bias_ref[...]                      # (tm, tn) + (1, tn), f32
    if apply_relu:
        out = jnp.maximum(out, 0.0)
    o_ref[...] = out.astype(o_ref.dtype)


def _fused_b2_a1_kernel(p_ref, w2_ref, b2_ref, wa_ref, ba_ref,
                        conv7_ref, a1_ref):
    # conv7 = relu(patches @ W_b2 + b_b2);  a1 = relu(conv7 @ W_a1 + b_a1)
    # The 1x1 auxiliary conv is a plain matmul over channels, so it chains
    # directly onto the conv7 tile while it is still resident in VMEM.
    conv7 = jnp.dot(p_ref[...], w2_ref[...], preferred_element_type=jnp.float32)
    conv7 = jnp.maximum(conv7 + b2_ref[...], 0.0)
    conv7_ref[...] = conv7.astype(conv7_ref.dtype)

    a1 = jnp.dot(conv7.astype(jnp.bfloat16), wa_ref[...],
                 preferred_element_type=jnp.float32)
    a1 = jnp.maximum(a1 + ba_ref[...], 0.0)
    a1_ref[...] = a1.astype(a1_ref.dtype)


# ----------------------------------------------------------------------------
# Conv2D = im2col (JAX glue) + Pallas matmul kernel
# ----------------------------------------------------------------------------
def _matmul_bias_act(a, b, bias, *, apply_relu, out_dtype):
    """a:(M,K) bf16 @ b:(K,Np) bf16 + bias:(1,Np) f32, optional ReLU."""
    M, K = a.shape
    _, Np = b.shape

    # M rounded to bf16 sublane granularity (16); split into 256-row blocks
    # when large so the leading grid axis is genuinely parallel (v7x 2 cores).
    if M > 256:
        Mp = _round_up(M, 256)
        tm = 256
    else:
        Mp = _round_up(M, 16)
        tm = Mp
    if Mp != M:
        a = jnp.pad(a, ((0, Mp - M), (0, 0)))
    # Wider N tiles when the (pre-padded) output width allows it (v6e/v7x MXU).
    tn = 256 if Np % 256 == 0 else _LANE

    grid = (Mp // tm, Np // tn)
    out = pl.pallas_call(
        functools.partial(_matmul_bias_act_kernel, apply_relu=apply_relu),
        out_shape=jax.ShapeDtypeStruct((Mp, Np), out_dtype),
        grid=grid,
        in_specs=[
            pl.BlockSpec((tm, K), lambda i, j: (i, 0)),   # full-K block
            pl.BlockSpec((K, tn), lambda i, j: (0, j)),
            pl.BlockSpec((1, tn), lambda i, j: (0, j)),
        ],
        out_specs=pl.BlockSpec((tm, tn), lambda i, j: (i, j)),
        compiler_params=pltpu.CompilerParams(
            dimension_semantics=("parallel", "parallel")),
    )(a, b, bias)
    return out[:M]


def _im2col(x, kh, kw, stride, pad):
    """x: (N, H, W, C) NHWC -> patches (N*Ho*Wo, kh*kw*C), K order (kh, kw, C)."""
    if pad > 0:
        x = jnp.pad(x, ((0, 0), (pad, pad), (pad, pad), (0, 0)))
    n, hp, wp, c = x.shape
    ho = (hp - kh) // stride + 1
    wo = (wp - kw) // stride + 1
    cols = []
    for i in range(kh):
        for j in range(kw):
            cols.append(x[:, i:i + stride * ho:stride, j:j + stride * wo:stride, :])
    patches = jnp.concatenate(cols, axis=-1)            # (N, Ho, Wo, kh*kw*C)
    return patches.reshape(n * ho * wo, kh * kw * c), (n, ho, wo)
# TODO(synk): a fully VMEM-resident multi-conv kernel (in-kernel strided 3x3
#             im2col) is not implemented; im2col for 3x3 convs stays in XLA.


def conv2d(x, w_packed, b_packed, *, cout, kh, kw, stride=1, pad=0, relu=True,
           out_dtype=jnp.bfloat16):
    """x: NHWC (bf16), w_packed: (kh*kw*Cin, Np) bf16, b_packed: (1, Np) f32."""
    patches, (n, ho, wo) = _im2col(x, kh, kw, stride, pad)
    out = _matmul_bias_act(patches, w_packed, b_packed,
                           apply_relu=relu, out_dtype=out_dtype)
    return out[:, :cout].reshape(n, ho, wo, cout)


# ----------------------------------------------------------------------------
# Synthetic Detector sub-networks (deterministic init) + one-time packing
# ----------------------------------------------------------------------------
def init_params(key):
    def conv_init(key, kh, kw, cin, cout):
        kw_, kb_ = jax.random.split(key)
        w = 0.05 * jax.random.normal(kw_, (kh, kw, cin, cout), jnp.float32)
        b = 0.01 * jax.random.normal(kb_, (cout,), jnp.float32)
        return w, b

    keys = jax.random.split(key, 10)
    p = {}
    # model[0] - base net: produces conv4_3 and conv7
    p["b1"] = conv_init(keys[0], 3, 3, 3, 64)      # -> conv4_3 (16x16x64)
    p["b2"] = conv_init(keys[1], 3, 3, 64, 128)    # stride 2 -> conv7 (8x8x128)
    # model[1] - auxiliary convs on conv7
    p["a1"] = conv_init(keys[2], 1, 1, 128, 32)
    p["a2"] = conv_init(keys[3], 3, 3, 32, 64)     # stride 2 -> conv8_2 (4x4x64)
    # model[2] - prediction convs (loc + class) per feature map
    p["loc4"] = conv_init(keys[4], 3, 3, 64, N_BOXES_PER_LOC * 4)
    p["loc7"] = conv_init(keys[5], 3, 3, 128, N_BOXES_PER_LOC * 4)
    p["loc8"] = conv_init(keys[6], 3, 3, 64, N_BOXES_PER_LOC * 4)
    p["cl4"] = conv_init(keys[7], 3, 3, 64, N_BOXES_PER_LOC * N_CLASSES)
    p["cl7"] = conv_init(keys[8], 3, 3, 128, N_BOXES_PER_LOC * N_CLASSES)
    p["cl8"] = conv_init(keys[9], 3, 3, 64, N_BOXES_PER_LOC * N_CLASSES)
    # nn.Parameter(1, 512, 1, 1) initialized to 20 - present but unused in
    # forward(), exactly as in the reference Detector.forward.
    p["rescale_factors"] = jnp.full((1, 512, 1, 1), 20.0, jnp.float32)
    return p


def pack_params(params):
    """One-time weight packing: reshape to (K, Np), pad N to 128, cast bf16."""
    def pack(w, b):
        kh, kw, cin, cout = w.shape
        K = kh * kw * cin
        Np = _round_up(cout, _LANE)
        w2 = jnp.pad(w.reshape(K, cout), ((0, 0), (0, Np - cout)))
        b2 = jnp.pad(b, (0, Np - cout)).reshape(1, Np)
        return w2.astype(jnp.bfloat16), b2.astype(jnp.float32)

    packed = {name: pack(*params[name]) for name in ("b1", "b2", "a1", "a2")}
    # Fuse loc + cls prediction heads: one conv per feature map.
    for tag in ("4", "7", "8"):
        wl, bl = params["loc" + tag]
        wc, bc = params["cl" + tag]
        packed["head" + tag] = pack(jnp.concatenate([wl, wc], axis=3),
                                    jnp.concatenate([bl, bc], axis=0))
    packed["rescale_factors"] = params["rescale_factors"]
    return packed


# ----------------------------------------------------------------------------
# Detector.forward
# ----------------------------------------------------------------------------
def detector_forward(pp, images_nchw):
    """Reproduces Detector.forward: returns (locs, classes_scores)."""
    # layout: NCHW (PyTorch) -> NHWC bf16 for the Pallas conv kernels.
    x = jnp.transpose(images_nchw, (0, 2, 3, 1)).astype(jnp.bfloat16)
    n = x.shape[0]

    # model[0]: base net, first conv
    conv4_3 = conv2d(x, *pp["b1"], cout=64, kh=3, kw=3, stride=1, pad=1,
                     relu=True)

    # model[0] second conv (-> conv7) fused with model[1]'s 1x1 aux conv
    patches7, (_, ho7, wo7) = _im2col(conv4_3, 3, 3, 2, 1)
    m7 = patches7.shape[0]
    conv7_2d, a1_2d = pl.pallas_call(
        _fused_b2_a1_kernel,
        out_shape=(jax.ShapeDtypeStruct((m7, 128), jnp.bfloat16),
                   jax.ShapeDtypeStruct((m7, 128), jnp.bfloat16)),
    )(patches7, pp["b2"][0], pp["b2"][1], pp["a1"][0], pp["a1"][1])
    conv7 = conv7_2d.reshape(n, ho7, wo7, 128)
    a1 = a1_2d[:, :32].reshape(n, ho7, wo7, 32)

    # model[1]: remaining auxiliary conv
    conv8_2 = conv2d(a1, *pp["a2"], cout=64, kh=3, kw=3, stride=2, pad=1,
                     relu=True)

    # model[2]: fused loc+cls prediction conv per feature map
    n_loc_ch = N_BOXES_PER_LOC * 4
    n_cl_ch = N_BOXES_PER_LOC * N_CLASSES
    locs, scores = [], []
    for f, tag in ((conv4_3, "4"), (conv7, "7"), (conv8_2, "8")):
        out = conv2d(f, *pp["head" + tag], cout=n_loc_ch + n_cl_ch,
                     kh=3, kw=3, stride=1, pad=1, relu=False,
                     out_dtype=jnp.float32)
        # NHWC output == PyTorch's permute(0,2,3,1); flatten to (N, boxes, 4/C)
        locs.append(out[..., :n_loc_ch].reshape(n, -1, 4))
        scores.append(out[..., n_loc_ch:].reshape(n, -1, N_CLASSES))

    locs = jnp.concatenate(locs, axis=1)               # (N, n_priors, 4)
    classes_scores = jnp.concatenate(scores, axis=1)   # (N, n_priors, n_classes)
    return locs, classes_scores


# TODO(synk): training loop, optimizer setup, MultiBoxLoss, NMS-based detect(),
#             mAP evaluation and checkpoint I/O have no Pallas equivalent and
#             are out of scope for the forward-pass kernel.

if __name__ == "__main__":
    key = jax.random.PRNGKey(0)
    pkey, xkey = jax.random.split(key)
    params = init_params(pkey)
    packed = pack_params(params)   # weights padded/reshaped/bf16-cast ONCE

    # Small NCHW batch of images (PyTorch convention).
    images = jax.random.normal(xkey, (2, 3, 16, 16), jnp.float32)

    locs, classes_scores = jax.jit(detector_forward)(packed, images)
    jax.block_until_ready((locs, classes_scores))

    n_priors = (16 * 16 + 8 * 8 + 4 * 4) * N_BOXES_PER_LOC
    assert locs.shape == (2, n_priors, 4), locs.shape
    assert classes_scores.shape == (2, n_priors, N_CLASSES), classes_scores.shape
    assert locs.dtype == jnp.float32 and classes_scores.dtype == jnp.float32

    print("KERNEL_OK")
</pallas_src>

<mosaic_0001>
module attributes {stable_mosaic.version = 11 : i64} {
  func.func @_matmul_bias_act_kernel(%arg0: i32, %arg1: i32, %arg2: memref<256x27xbf16, #tpu.memory_space<vmem>>, %arg3: memref<27x128xbf16, #tpu.memory_space<vmem>>, %arg4: memref<1x128xf32, #tpu.memory_space<vmem>>, %arg5: memref<256x128xbf16, #tpu.memory_space<vmem>>) attributes {dimension_semantics = [#tpu.dimension_semantics<parallel>, #tpu.dimension_semantics<parallel>], iteration_bounds = array<i64: 2, 1>, scalar_prefetch = 0 : i64, scratch_operands = 0 : i64, tpu.core_type = #tpu.core_type<tc>, window_params = [{transform_indices = @transform_0, window_bounds = array<i64: 256, 27>}, {transform_indices = @transform_1, window_bounds = array<i64: 27, 128>}, {transform_indices = @transform_2, window_bounds = array<i64: 1, 128>}, {transform_indices = @transform_3, window_bounds = array<i64: 256, 128>}]} {
    %c0 = arith.constant 0 : index
    %c0_0 = arith.constant 0 : index
    %0 = vector.load %arg2[%c0, %c0_0] : memref<256x27xbf16, #tpu.memory_space<vmem>>, vector<256x27xbf16>
    %c0_1 = arith.constant 0 : index
    %c0_2 = arith.constant 0 : index
    %1 = vector.load %arg3[%c0_1, %c0_2] : memref<27x128xbf16, #tpu.memory_space<vmem>>, vector<27x128xbf16>
    %cst = arith.constant dense<0.000000e+00> : vector<256x128xf32>
    %2 = tpu.matmul %0, %1, %cst {dimension_numbers = #tpu.dot_dimension_numbers<[1], [0], [0], [1], [0, 0, 1, 1], [], []>} : vector<256x27xbf16>, vector<27x128xbf16>, vector<256x128xf32> -> vector<256x128xf32>
    %c0_3 = arith.constant 0 : index
    %c0_4 = arith.constant 0 : index
    %3 = vector.load %arg4[%c0_3, %c0_4] : memref<1x128xf32, #tpu.memory_space<vmem>>, vector<1x128xf32>
    %4 = vector.broadcast %3 : vector<1x128xf32> to vector<256x128xf32>
    %5 = arith.addf %2, %4 : vector<256x128xf32>
    %cst_5 = arith.constant 0.000000e+00 : f32
    %6 = vector.broadcast %cst_5 : f32 to vector<256x128xf32>
    %7 = arith.maximumf %5, %6 : vector<256x128xf32>
    %8 = arith.truncf %7 : vector<256x128xf32> to vector<256x128xbf16>
    %c0_6 = arith.constant 0 : index
    %c0_7 = arith.constant 0 : index
    %9 = vector.load %arg5[%c0_6, %c0_7] : memref<256x128xbf16, #tpu.memory_space<vmem>>, vector<256x128xbf16>
    tpu.vector_store %arg5[%c0_6, %c0_7], %8 {strides = array<i32>} : memref<256x128xbf16, #tpu.memory_space<vmem>>, vector<256x128xbf16>,
    return
  }
  func.func @transform_0(%arg0: i32, %arg1: i32) -> (i32, i32) {
    %c0_i32 = arith.constant 0 : i32
    %c0_i32_0 = arith.constant 0 : i32
    return %arg0, %c0_i32 : i32, i32
  }
  func.func @transform_1(%arg0: i32, %arg1: i32) -> (i32, i32) {
    %c0_i32 = arith.constant 0 : i32
    %c0_i32_0 = arith.constant 0 : i32
    return %c0_i32, %arg1 : i32, i32
  }
  func.func @transform_2(%arg0: i32, %arg1: i32) -> (i32, i32) {
    %c0_i32 = arith.constant 0 : i32
    %c0_i32_0 = arith.constant 0 : i32
    return %c0_i32, %arg1 : i32, i32
  }
  func.func @transform_3(%arg0: i32, %arg1: i32) -> (i32, i32) {
    %c0_i32 = arith.constant 0 : i32
    return %arg0, %arg1 : i32, i32
  }
}

module attributes {stable_mosaic.version = 11 : i64} {
  func.func @_matmul_bias_act_kernel(%arg0: i32, %arg1: i32, %arg2: memref<256x576xbf16, #tpu.memory_space<vmem>>, %arg3: memref<576x128xbf16, #tpu.memory_space<vmem>>, %arg4: memref<1x128xf32, #tpu.memory_space<vmem>>, %arg5: memref<256x128xf32, #tpu.memory_space<vmem>>) attributes {dimension_semantics = [#tpu.dimension_semantics<parallel>, #tpu.dimension_semantics<parallel>], iteration_bounds = array<i64: 2, 1>, scalar_prefetch = 0 : i64, scratch_operands = 0 : i64, tpu.core_type = #tpu.core_type<tc>, window_params = [{transform_indices = @transform_0, window_bounds = array<i64: 256, 576>}, {transform_indices = @transform_1, window_bounds = array<i64: 576, 128>}, {transform_indices = @transform_2, window_bounds = array<i64: 1, 128>}, {transform_indices = @transform_3, window_bounds = array<i64: 256, 128>}]} {
    %c0 = arith.constant 0 : index
    %c0_0 = arith.constant 0 : index
    %0 = vector.load %arg2[%c0, %c0_0] : memref<256x576xbf16, #tpu.memory_space<vmem>>, vector<256x576xbf16>
    %c0_1 = arith.constant 0 : index
    %c0_2 = arith.constant 0 : index
    %1 = vector.load %arg3[%c0_1, %c0_2] : memref<576x128xbf16, #tpu.memory_space<vmem>>, vector<576x128xbf16>
    %cst = arith.constant dense<0.000000e+00> : vector<256x128xf32>
    %2 = tpu.matmul %0, %1, %cst {dimension_numbers = #tpu.dot_dimension_numbers<[1], [0], [0], [1], [0, 0, 1, 1], [], []>} : vector<256x576xbf16>, vector<576x128xbf16>, vector<256x128xf32> -> vector<256x128xf32>
    %c0_3 = arith.constant 0 : index
    %c0_4 = arith.constant 0 : index
    %3 = vector.load %arg4[%c0_3, %c0_4] : memref<1x128xf32, #tpu.memory_space<vmem>>, vector<1x128xf32>
    %4 = vector.broadcast %3 : vector<1x128xf32> to vector<256x128xf32>
    %5 = arith.addf %2, %4 : vector<256x128xf32>
    %c0_5 = arith.constant 0 : index
    %c0_6 = arith.constant 0 : index
    %6 = vector.load %arg5[%c0_5, %c0_6] : memref<256x128xf32, #tpu.memory_space<vmem>>, vector<256x128xf32>
    tpu.vector_store %arg5[%c0_5, %c0_6], %5 {strides = array<i32>} : memref<256x128xf32, #tpu.memory_space<vmem>>, vector<256x128xf32>,
    return
  }
  func.func @transform_0(%arg0: i32, %arg1: i32) -> (i32, i32) {
    %c0_i32 = arith.constant 0 : i32
    %c0_i32_0 = arith.constant 0 : i32
    return %arg0, %c0_i32 : i32, i32
  }
  func.func @transform_1(%arg0: i32, %arg1: i32) -> (i32, i32) {
    %c0_i32 = arith.constant 0 : i32
    %c0_i32_0 = arith.constant 0 : i32
    return %c0_i32, %arg1 : i32, i32
  }
  func.func @transform_2(%arg0: i32, %arg1: i32) -> (i32, i32) {
    %c0_i32 = arith.constant 0 : i32
    %c0_i32_0 = arith.constant 0 : i32
    return %c0_i32, %arg1 : i32, i32
  }
  func.func @transform_3(%arg0: i32, %arg1: i32) -> (i32, i32) {
    %c0_i32 = arith.constant 0 : i32
    return %arg0, %arg1 : i32, i32
  }
}

module attributes {stable_mosaic.version = 11 : i64} {
  func.func @_fused_b2_a1_kernel(%arg0: memref<128x576xbf16, #tpu.memory_space<vmem>>, %arg1: memref<576x128xbf16, #tpu.memory_space<vmem>>, %arg2: memref<1x128xf32, #tpu.memory_space<vmem>>, %arg3: memref<128x128xbf16, #tpu.memory_space<vmem>>, %arg4: memref<1x128xf32, #tpu.memory_space<vmem>>, %arg5: memref<128x128xbf16, #tpu.memory_space<vmem>>, %arg6: memref<128x128xbf16, #tpu.memory_space<vmem>>) attributes {dimension_semantics = [], scalar_prefetch = 0 : i64, scratch_operands = 0 : i64, tpu.core_type = #tpu.core_type<tc>} {
    %c0 = arith.constant 0 : index
    %c0_0 = arith.constant 0 : index
    %0 = vector.load %arg0[%c0, %c0_0] : memref<128x576xbf16, #tpu.memory_space<vmem>>, vector<128x576xbf16>
    %c0_1 = arith.constant 0 : index
    %c0_2 = arith.constant 0 : index
    %1 = vector.load %arg1[%c0_1, %c0_2] : memref<576x128xbf16, #tpu.memory_space<vmem>>, vector<576x128xbf16>
    %cst = arith.constant dense<0.000000e+00> : vector<128x128xf32>
    %2 = tpu.matmul %0, %1, %cst {dimension_numbers = #tpu.dot_dimension_numbers<[1], [0], [0], [1], [0, 0, 1, 1], [], []>} : vector<128x576xbf16>, vector<576x128xbf16>, vector<128x128xf32> -> vector<128x128xf32>
    %c0_3 = arith.constant 0 : index
    %c0_4 = arith.constant 0 : index
    %3 = vector.load %arg2[%c0_3, %c0_4] : memref<1x128xf32, #tpu.memory_space<vmem>>, vector<1x128xf32>
    %4 = vector.broadcast %3 : vector<1x128xf32> to vector<128x128xf32>
    %5 = arith.addf %2, %4 : vector<128x128xf32>
    %cst_5 = arith.constant 0.000000e+00 : f32
    %6 = vector.broadcast %cst_5 : f32 to vector<128x128xf32>
    %7 = arith.maximumf %5, %6 : vector<128x128xf32>
    %8 = arith.truncf %7 : vector<128x128xf32> to vector<128x128xbf16>
    %c0_6 = arith.constant 0 : index
    %c0_7 = arith.constant 0 : index
    %9 = vector.load %arg5[%c0_6, %c0_7] : memref<128x128xbf16, #tpu.memory_space<vmem>>, vector<128x128xbf16>
    tpu.vector_store %arg5[%c0_6, %c0_7], %8 {strides = array<i32>} : memref<128x128xbf16, #tpu.memory_space<vmem>>, vector<128x128xbf16>,
    %10 = arith.truncf %7 : vector<128x128xf32> to vector<128x128xbf16>
    %c0_8 = arith.constant 0 : index
    %c0_9 = arith.constant 0 : index
    %11 = vector.load %arg3[%c0_8, %c0_9] : memref<128x128xbf16, #tpu.memory_space<vmem>>, vector<128x128xbf16>
    %cst_10 = arith.constant dense<0.000000e+00> : vector<128x128xf32>
    %12 = tpu.matmul %10, %11, %cst_10 {dimension_numbers = #tpu.dot_dimension_numbers<[1], [0], [0], [1], [0, 0, 1, 1], [], []>} : vector<128x128xbf16>, vector<128x128xbf16>, vector<128x128xf32> -> vector<128x128xf32>
    %c0_11 = arith.constant 0 : index
    %c0_12 = arith.constant 0 : index
    %13 = vector.load %arg4[%c0_11, %c0_12] : memref<1x128xf32, #tpu.memory_space<vmem>>, vector<1x128xf32>
    %14 = vector.broadcast %13 : vector<1x128xf32> to vector<128x128xf32>
    %15 = arith.addf %12, %14 : vector<128x128xf32>
    %cst_13 = arith.constant 0.000000e+00 : f32
    %16 = vector.broadcast %cst_13 : f32 to vector<128x128xf32>
    %17 = arith.maximumf %15, %16 : vector<128x128xf32>
    %18 = arith.truncf %17 : vector<128x128xf32> to vector<128x128xbf16>
    %c0_14 = arith.constant 0 : index
    %c0_15 = arith.constant 0 : index
    %19 = vector.load %arg6[%c0_14, %c0_15] : memref<128x128xbf16, #tpu.memory_space<vmem>>, vector<128x128xbf16>
    tpu.vector_store %arg6[%c0_14, %c0_15], %18 {strides = array<i32>} : memref<128x128xbf16, #tpu.memory_space<vmem>>, vector<128x128xbf16>,
    return
  }
}

module attributes {stable_mosaic.version = 11 : i64} {
  func.func @_matmul_bias_act_kernel(%arg0: i32, %arg1: i32, %arg2: memref<128x1152xbf16, #tpu.memory_space<vmem>>, %arg3: memref<1152x128xbf16, #tpu.memory_space<vmem>>, %arg4: memref<1x128xf32, #tpu.memory_space<vmem>>, %arg5: memref<128x128xf32, #tpu.memory_space<vmem>>) attributes {dimension_semantics = [#tpu.dimension_semantics<parallel>, #tpu.dimension_semantics<parallel>], iteration_bounds = array<i64: 1, 1>, scalar_prefetch = 0 : i64, scratch_operands = 0 : i64, tpu.core_type = #tpu.core_type<tc>, window_params = [{transform_indices = @transform_0, window_bounds = array<i64: 128, 1152>}, {transform_indices = @transform_1, window_bounds = array<i64: 1152, 128>}, {transform_indices = @transform_2, window_bounds = array<i64: 1, 128>}, {transform_indices = @transform_3, window_bounds = array<i64: 128, 128>}]} {
    %c0 = arith.constant 0 : index
    %c0_0 = arith.constant 0 : index
    %0 = vector.load %arg2[%c0, %c0_0] : memref<128x1152xbf16, #tpu.memory_space<vmem>>, vector<128x1152xbf16>
    %c0_1 = arith.constant 0 : index
    %c0_2 = arith.constant 0 : index
    %1 = vector.load %arg3[%c0_1, %c0_2] : memref<1152x128xbf16, #tpu.memory_space<vmem>>, vector<1152x128xbf16>
    %cst = arith.constant dense<0.000000e+00> : vector<128x128xf32>
    %2 = tpu.matmul %0, %1, %cst {dimension_numbers = #tpu.dot_dimension_numbers<[1], [0], [0], [1], [0, 0, 1, 1], [], []>} : vector<128x1152xbf16>, vector<1152x128xbf16>, vector<128x128xf32> -> vector<128x128xf32>
    %c0_3 = arith.constant 0 : index
    %c0_4 = arith.constant 0 : index
    %3 = vector.load %arg4[%c0_3, %c0_4] : memref<1x128xf32, #tpu.memory_space<vmem>>, vector<1x128xf32>
    %4 = vector.broadcast %3 : vector<1x128xf32> to vector<128x128xf32>
    %5 = arith.addf %2, %4 : vector<128x128xf32>
    %c0_5 = arith.constant 0 : index
    %c0_6 = arith.constant 0 : index
    %6 = vector.load %arg5[%c0_5, %c0_6] : memref<128x128xf32, #tpu.memory_space<vmem>>, vector<128x128xf32>
    tpu.vector_store %arg5[%c0_5, %c0_6], %5 {strides = array<i32>} : memref<128x128xf32, #tpu.memory_space<vmem>>, vector<128x128xf32>,
    return
  }
  func.func @transform_0(%arg0: i32, %arg1: i32) -> (i32, i32) {
    %c0_i32 = arith.constant 0 : i32
    %c0_i32_0 = arith.constant 0 : i32
    return %arg0, %c0_i32 : i32, i32
  }
  func.func @transform_1(%arg0: i32, %arg1: i32) -> (i32, i32) {
    %c0_i32 = arith.constant 0 : i32
    %c0_i32_0 = arith.constant 0 : i32
    return %c0_i32, %arg1 : i32, i32
  }
  func.func @transform_2(%arg0: i32, %arg1: i32) -> (i32, i32) {
    %c0_i32 = arith.constant 0 : i32
    %c0_i32_0 = arith.constant 0 : i32
    return %c0_i32, %arg1 : i32, i32
  }
  func.func @transform_3(%arg0: i32, %arg1: i32) -> (i32, i32) {
    %c0_i32 = arith.constant 0 : i32
    return %arg0, %arg1 : i32, i32
  }
}

module attributes {stable_mosaic.version = 11 : i64} {
  func.func @_matmul_bias_act_kernel(%arg0: i32, %arg1: i32, %arg2: memref<32x288xbf16, #tpu.memory_space<vmem>>, %arg3: memref<288x128xbf16, #tpu.memory_space<vmem>>, %arg4: memref<1x128xf32, #tpu.memory_space<vmem>>, %arg5: memref<32x128xbf16, #tpu.memory_space<vmem>>) attributes {dimension_semantics = [#tpu.dimension_semantics<parallel>, #tpu.dimension_semantics<parallel>], iteration_bounds = array<i64: 1, 1>, scalar_prefetch = 0 : i64, scratch_operands = 0 : i64, tpu.core_type = #tpu.core_type<tc>, window_params = [{transform_indices = @transform_0, window_bounds = array<i64: 32, 288>}, {transform_indices = @transform_1, window_bounds = array<i64: 288, 128>}, {transform_indices = @transform_2, window_bounds = array<i64: 1, 128>}, {transform_indices = @transform_3, window_bounds = array<i64: 32, 128>}]} {
    %c0 = arith.constant 0 : index
    %c0_0 = arith.constant 0 : index
    %0 = vector.load %arg2[%c0, %c0_0] : memref<32x288xbf16, #tpu.memory_space<vmem>>, vector<32x288xbf16>
    %c0_1 = arith.constant 0 : index
    %c0_2 = arith.constant 0 : index
    %1 = vector.load %arg3[%c0_1, %c0_2] : memref<288x128xbf16, #tpu.memory_space<vmem>>, vector<288x128xbf16>
    %cst = arith.constant dense<0.000000e+00> : vector<32x128xf32>
    %2 = tpu.matmul %0, %1, %cst {dimension_numbers = #tpu.dot_dimension_numbers<[1], [0], [0], [1], [0, 0, 1, 1], [], []>} : vector<32x288xbf16>, vector<288x128xbf16>, vector<32x128xf32> -> vector<32x128xf32>
    %c0_3 = arith.constant 0 : index
    %c0_4 = arith.constant 0 : index
    %3 = vector.load %arg4[%c0_3, %c0_4] : memref<1x128xf32, #tpu.memory_space<vmem>>, vector<1x128xf32>
    %4 = vector.broadcast %3 : vector<1x128xf32> to vector<32x128xf32>
    %5 = arith.addf %2, %4 : vector<32x128xf32>
    %cst_5 = arith.constant 0.000000e+00 : f32
    %6 = vector.broadcast %cst_5 : f32 to vector<32x128xf32>
    %7 = arith.maximumf %5, %6 : vector<32x128xf32>
    %8 = arith.truncf %7 : vector<32x128xf32> to vector<32x128xbf16>
    %c0_6 = arith.constant 0 : index
    %c0_7 = arith.constant 0 : index
    %9 = vector.load %arg5[%c0_6, %c0_7] : memref<32x128xbf16, #tpu.memory_space<vmem>>, vector<32x128xbf16>
    tpu.vector_store %arg5[%c0_6, %c0_7], %8 {strides = array<i32>} : memref<32x128xbf16, #tpu.memory_space<vmem>>, vector<32x128xbf16>,
    return
  }
  func.func @transform_0(%arg0: i32, %arg1: i32) -> (i32, i32) {
    %c0_i32 = arith.constant 0 : i32
    %c0_i32_0 = arith.constant 0 : i32
    return %arg0, %c0_i32 : i32, i32
  }
  func.func @transform_1(%arg0: i32, %arg1: i32) -> (i32, i32) {
    %c0_i32 = arith.constant 0 : i32
    %c0_i32_0 = arith.constant 0 : i32
    return %c0_i32, %arg1 : i32, i32
  }
  func.func @transform_2(%arg0: i32, %arg1: i32) -> (i32, i32) {
    %c0_i32 = arith.constant 0 : i32
    %c0_i32_0 = arith.constant 0 : i32
    return %c0_i32, %arg1 : i32, i32
  }
  func.func @transform_3(%arg0: i32, %arg1: i32) -> (i32, i32) {
    %c0_i32 = arith.constant 0 : i32
    return %arg0, %arg1 : i32, i32
  }
}

module attributes {stable_mosaic.version = 11 : i64} {
  func.func @_matmul_bias_act_kernel(%arg0: i32, %arg1: i32, %arg2: memref<32x576xbf16, #tpu.memory_space<vmem>>, %arg3: memref<576x128xbf16, #tpu.memory_space<vmem>>, %arg4: memref<1x128xf32, #tpu.memory_space<vmem>>, %arg5: memref<32x128xf32, #tpu.memory_space<vmem>>) attributes {dimension_semantics = [#tpu.dimension_semantics<parallel>, #tpu.dimension_semantics<parallel>], iteration_bounds = array<i64: 1, 1>, scalar_prefetch = 0 : i64, scratch_operands = 0 : i64, tpu.core_type = #tpu.core_type<tc>, window_params = [{transform_indices = @transform_0, window_bounds = array<i64: 32, 576>}, {transform_indices = @transform_1, window_bounds = array<i64: 576, 128>}, {transform_indices = @transform_2, window_bounds = array<i64: 1, 128>}, {transform_indices = @transform_3, window_bounds = array<i64: 32, 128>}]} {
    %c0 = arith.constant 0 : index
    %c0_0 = arith.constant 0 : index
    %0 = vector.load %arg2[%c0, %c0_0] : memref<32x576xbf16, #tpu.memory_space<vmem>>, vector<32x576xbf16>
    %c0_1 = arith.constant 0 : index
    %c0_2 = arith.constant 0 : index
    %1 = vector.load %arg3[%c0_1, %c0_2] : memref<576x128xbf16, #tpu.memory_space<vmem>>, vector<576x128xbf16>
    %cst = arith.constant dense<0.000000e+00> : vector<32x128xf32>
    %2 = tpu.matmul %0, %1, %cst {dimension_numbers = #tpu.dot_dimension_numbers<[1], [0], [0], [1], [0, 0, 1, 1], [], []>} : vector<32x576xbf16>, vector<576x128xbf16>, vector<32x128xf32> -> vector<32x128xf32>
    %c0_3 = arith.constant 0 : index
    %c0_4 = arith.constant 0 : index
    %3 = vector.load %arg4[%c0_3, %c0_4] : memref<1x128xf32, #tpu.memory_space<vmem>>, vector<1x128xf32>
    %4 = vector.broadcast %3 : vector<1x128xf32> to vector<32x128xf32>
    %5 = arith.addf %2, %4 : vector<32x128xf32>
    %c0_5 = arith.constant 0 : index
    %c0_6 = arith.constant 0 : index
    %6 = vector.load %arg5[%c0_5, %c0_6] : memref<32x128xf32, #tpu.memory_space<vmem>>, vector<32x128xf32>
    tpu.vector_store %arg5[%c0_5, %c0_6], %5 {strides = array<i32>} : memref<32x128xf32, #tpu.memory_space<vmem>>, vector<32x128xf32>,
    return
  }
  func.func @transform_0(%arg0: i32, %arg1: i32) -> (i32, i32) {
    %c0_i32 = arith.constant 0 : i32
    %c0_i32_0 = arith.constant 0 : i32
    return %arg0, %c0_i32 : i32, i32
  }
  func.func @transform_1(%arg0: i32, %arg1: i32) -> (i32, i32) {
    %c0_i32 = arith.constant 0 : i32
    %c0_i32_0 = arith.constant 0 : i32
    return %c0_i32, %arg1 : i32, i32
  }
  func.func @transform_2(%arg0: i32, %arg1: i32) -> (i32, i32) {
    %c0_i32 = arith.constant 0 : i32
    %c0_i32_0 = arith.constant 0 : i32
    return %c0_i32, %arg1 : i32, i32
  }
  func.func @transform_3(%arg0: i32, %arg1: i32) -> (i32, i32) {
    %c0_i32 = arith.constant 0 : i32
    return %arg0, %arg1 : i32, i32
  }
}

</mosaic_0001>

<bundles_post_ra>
// kernel: detector_forward.6
= control target key start
LH: loop header
LB: loop body
LE: loop exit
PB: predicated region body
PF: predicated region fallthrough
CT: control target
= control target key end

     0   :  { %s1224_s12 = smov 0   ;;  %s1226_s13 = smov 0   ;;  %s1359_s0 = inlined_call_operand.vmem [shape: bf16[512,27], index: 0, kind: input, shape index: {}]   ;;  %s1360_s1 = inlined_call_operand.vmem [shape: bf16[27,128], index: 1, kind: input, shape index: {}]   ;;  %s1361_s2 = inlined_call_operand.vmem [shape: f32[1,128], index: 2, kind: input, shape index: {}]   ;;  %s1362_s3 = inlined_call_operand.vmem [shape: bf16[512,128], index: 3, kind: output, shape index: {}]  }
   0x1   :  { %s1228_s14 = smov 0  }
   0x2 LB: > { %s25_s15 = sadd.s32 1, %s1197_s13  ;;  %p877_p0 = scmp.ge.s32.totalorder %s1201_s14, 1  ;;  %s1201_s14 = sphi %s1228_s14, %s13_s14   ;;  %s1197_s13 = sphi %s1226_s13, %s1364_s13   ;;  %s1193_s12 = sphi %s1224_s12, %s1363_s12  }
   0x3   : > { %p27_p1 = scmp.ge.s32.totalorder %s25_s15, 2  ;;  %p169_p2 = scmp.lt.s32.totalorder %s1201_s14, 3 }
   0x5   : > { %s1366_s15 = smov (%p27_p1, %s25_s15), 0  ;;  %p170_p3 = pnand %p877_p0, %p169_p2 }
   0x6   : > { %v1161_v0 = vld [vmem:[%s1360_s1] sm:$0xff] (!%p170_p3)   ;;  %vm409_vm0 = vcmask (!%p170_p3), 1044480   ;;  %v1162_v1 = vld [vmem:[%s1360_s1 + $0x8] sm:$0x3f] (!%p170_p3)   ;;  %vm410_vm1 = vcmask (!%p170_p3), 1045504   ;;  %s878_s20 = sshll.u32 (!%p170_p3), %s1193_s12, 5 }
   0x7   : > { %173 = sbr.rel (%p170_p3) target bundleno = 266 (0x10a), region = 32  ;;  %1096 = vmatprep.subr.bf16.mxu0 (!%p170_p3), %v1161_v0  ;;  %1132 = vmatprep.subr.bf16.mxu1 (!%p170_p3), %v1161_v0  ;;  %v1203_v2 = vmov (!%p170_p3), 65535   ;;  %p204_p4 = scmp.lt.s32.totalorder (!%p170_p3), %s878_s20, 63  ;;  %vm360_vm2 = vcmask (!%p170_p3), 220160   ;;  %v1293_v22 = vld [vmem:[%s1361_s2] ss:$0 sm:$0xff] (!%p170_p3) }
   0x8   : > { %1097 = vmatpush3.bf16.msra.mxu0 (!%p170_p3), %v1161_v0  ;;  %1134 = vmatpush3.bf16.msra.mxu1 (!%p170_p3), %v1161_v0  ;;  %v411_v3 = vsel (!%p170_p3), %vm409_vm0, 4294967295, %v1203_v2 }
   0x9   : > { %v412_v4 = vsel (!%p170_p3), %vm410_vm1, %v411_v3, 0 }
   0xa   : > { %v414_v5 = vand.u32 (!%p170_p3), %v1162_v1, %v412_v4 }
   0xc   : > { %1098 = vmatprep.subr.bf16.mxu0 (!%p170_p3), %v414_v5  ;;  %1133 = vmatprep.subr.bf16.mxu1 (!%p170_p3), %v414_v5 }
   0xd   : > { %1099 = vmatpush3.bf16.msra.mxu0 (!%p170_p3), %v414_v5  ;;  %1135 = vmatpush3.bf16.msra.mxu1 (!%p170_p3), %v414_v5 }
   0xe   : > { %s1368_s20 = smov (!%p204_p4, %s878_s20), 63 }
   0xf   : > { %s879_s21 = sshll.u32 %s1368_s20, 2 }
  0x10   : > { %s1256_s24 = scalar_lea.vmem %s1359_s0, %s879_s21  ;;  %s1308_s29 = scalar_lea.vmem %s1362_s3, %s879_s21 }
  0x11   : > { %v1163_v6 = vld [vmem:[%s1256_s24] sm:$0xff]   ;;  %v1165_v8 = vld [vmem:[%s1256_s24 + $0x8] sm:$0xff]   ;;  %v1167_v10 = vld [vmem:[%s1256_s24 + $0x10] sm:$0xff]  }
  0x12   : > { %v1164_v7 = vld [vmem:[%s1256_s24 + $0x40] sm:$0xff]   ;;  %1100 = vmatprep.mubr.msk.bf16.mxu0 %vm360_vm2, %v1163_v6  ;;  %v1166_v9 = vld [vmem:[%s1256_s24 + $0x48] sm:$0xff]   ;;  %v1168_v11 = vld [vmem:[%s1256_s24 + $0x50] sm:$0xff]  }
  0x13   : > { %1116 = vmatprep.mubr.msk.bf16.mxu1 %vm360_vm2, %v1164_v7  ;;  %1101 = vmatmul.mubr.msk.bf16.vlgmr.msra.gmra.mrb[0].mxu0 %vm360_vm2, %v1165_v8  ;;  %v1169_v12 = vld [vmem:[%s1256_s24 + $0x18] sm:$0xff]   ;;  %v1171_v14 = vld [vmem:[%s1256_s24 + $0x20] sm:$0xff]   ;;  %v1173_v16 = vld [vmem:[%s1256_s24 + $0x28] sm:$0xff]  }
  0x14   : > { %1117 = vmatmul.mubr.msk.bf16.vlgmr.msra.gmra.mrb[0].mxu1 %vm360_vm2, %v1166_v9  ;;  %1104 = vmatprep.mubr.msk.bf16.mxu0 %vm360_vm2, %v1167_v10  ;;  %v1170_v13 = vld [vmem:[%s1256_s24 + $0x58] sm:$0xff]   ;;  %v1172_v15 = vld [vmem:[%s1256_s24 + $0x60] sm:$0xff]   ;;  %v1174_v17 = vld [vmem:[%s1256_s24 + $0x68] sm:$0xff]  }
  0x15   : > { %1120 = vmatprep.mubr.msk.bf16.mxu1 %vm360_vm2, %v1168_v11  ;;  %v1175_v18 = vld [vmem:[%s1256_s24 + $0x30] sm:$0xff]   ;;  %v1177_v20 = vld [vmem:[%s1256_s24 + $0x38] sm:$0xff]  }
  0x16   : > { %v1176_v19 = vld [vmem:[%s1256_s24 + $0x70] sm:$0xff]   ;;  %v1178_v21 = vld [vmem:[%s1256_s24 + $0x78] sm:$0xff]  }
  0x1b   : > { %1105 = vmatmul.mubr.msk.bf16.gmra.mrb[4].mxu0 %vm360_vm2, %v1169_v12 }
  0x1c   : > { %1121 = vmatmul.mubr.msk.bf16.gmra.mrb[4].mxu1 %vm360_vm2, %v1170_v13  ;;  %1108 = vmatprep.mubr.msk.bf16.mxu0 %vm360_vm2, %v1171_v14 }
  0x1d   : > { %1124 = vmatprep.mubr.msk.bf16.mxu1 %vm360_vm2, %v1172_v15 }
  0x23   : > { %1109 = vmatmul.mubr.msk.bf16.gmra.mrb[8].mxu0 %vm360_vm2, %v1173_v16 }
  0x24   : > { %1125 = vmatmul.mubr.msk.bf16.gmra.mrb[8].mxu1 %vm360_vm2, %v1174_v17  ;;  %1112 = vmatprep.mubr.msk.bf16.mxu0 %vm360_vm2, %v1175_v18 }
  0x25   : > { %1128 = vmatprep.mubr.msk.bf16.mxu1 %vm360_vm2, %v1176_v19 }
  0x2b   : > { %1113 = vmatmul.mubr.msk.bf16.gmra.mrb[12].mxu0 %vm360_vm2, %v1177_v20 }
  0x2c   : > { %1129 = vmatmul.mubr.msk.bf16.gmra.mrb[12].mxu1 %vm360_vm2, %v1178_v21 }
  0xe6   : > { %v1102_v23 = vpop.f32.mrb[0].mxu0 }
  0xe7   : > { %v459_v24 = vadd.f32 %v1102_v23, %v1293_v22  ;;  %v1118_v25 = vpop.f32.mrb[0].mxu1  ;;  %v450_v26 = vpop.f32.mrb[1].mxu0 }
  0xe8   : > { %v523_v27 = vadd.f32 %v1118_v25, %v1293_v22  ;;  %v451_v28 = vadd.f32 %v1293_v22, %v450_v26  ;;  %v514_v29 = vpop.f32.mrb[1].mxu1  ;;  %v1103_v30 = vpop.f32.mrb[2].mxu0 }
  0xe9   : > { %v515_v31 = vadd.f32 %v1293_v22, %v514_v29  ;;  %v462_v32 = vadd.f32 %v1103_v30, %v1293_v22  ;;  %v1119_v33 = vpop.f32.mrb[2].mxu1  ;;  %v453_v34 = vpop.f32.mrb[3].mxu0  ;;  %v579_v38 = vmax.f32 %v459_v24, 0.0 }
  0xea   : > { %v526_v35 = vadd.f32 %v1119_v33, %v1293_v22  ;;  %v454_v36 = vadd.f32 %v1293_v22, %v453_v34  ;;  %v517_v37 = vpop.f32.mrb[3].mxu1  ;;  %v595_v41 = vmax.f32 %v523_v27, 0.0  ;;  %v577_v42 = vmax.f32 %v451_v28, 0.0 }
  0xeb   : > { %v580_v39 = vmax.f32 %v462_v32, 0.0  ;;  %v518_v40 = vadd.f32 %v1293_v22, %v517_v37  ;;  %v593_v45 = vmax.f32 %v515_v31, 0.0 }
  0xec   : > { %v596_v43 = vmax.f32 %v526_v35, 0.0  ;;  %v578_v44 = vmax.f32 %v454_v36, 0.0 }
  0xed   : > { %v991_v46 = vpack.c.bf16 %v580_v39, %v579_v38  ;;  %v594_v47 = vmax.f32 %v518_v40, 0.0 }
  0xee   : > { %v1031_v48 = vpack.c.bf16 %v596_v43, %v595_v41  ;;  %v986_v49 = vpack.c.bf16 %v578_v44, %v577_v42  ;;  %v1106_v50 = vpop.f32.mrb[4].mxu0 }
  0xef   : > { %1063 = vst [vmem:[%s1308_s29 + $0x8] sm:$0xff] %v991_v46   ;;  %v1026_v51 = vpack.c.bf16 %v594_v47, %v593_v45  ;;  %v475_v52 = vadd.f32 %v1106_v50, %v1293_v22  ;;  %v1122_v53 = vpop.f32.mrb[4].mxu1  ;;  %v466_v54 = vpop.f32.mrb[5].mxu0 }
  0xf0   : > { %1071 = vst [vmem:[%s1308_s29 + $0x48] sm:$0xff] %v1031_v48   ;;  %987 = vst [vmem:[%s1308_s29] sm:$0xff] %v986_v49   ;;  %v539_v55 = vadd.f32 %v1122_v53, %v1293_v22  ;;  %v467_v56 = vadd.f32 %v1293_v22, %v466_v54  ;;  %v530_v57 = vpop.f32.mrb[5].mxu1  ;;  %v1107_v58 = vpop.f32.mrb[6].mxu0 }
  0xf1   : > { %1070 = vst [vmem:[%s1308_s29 + $0x40] sm:$0xff] %v1026_v51   ;;  %v531_v59 = vadd.f32 %v1293_v22, %v530_v57  ;;  %v478_v60 = vadd.f32 %v1107_v58, %v1293_v22  ;;  %v1123_v61 = vpop.f32.mrb[6].mxu1  ;;  %v469_v62 = vpop.f32.mrb[7].mxu0  ;;  %v583_v2 = vmax.f32 %v475_v52, 0.0 }
  0xf2   : > { %v542_v63 = vadd.f32 %v1123_v61, %v1293_v22  ;;  %v470_v0 = vadd.f32 %v1293_v22, %v469_v62  ;;  %v533_v1 = vpop.f32.mrb[7].mxu1  ;;  %v599_v5 = vmax.f32 %v539_v55, 0.0  ;;  %v581_v6 = vmax.f32 %v467_v56, 0.0 }
  0xf3   : > { %v584_v3 = vmax.f32 %v478_v60, 0.0  ;;  %v534_v4 = vadd.f32 %v1293_v22, %v533_v1  ;;  %v597_v9 = vmax.f32 %v531_v59, 0.0 }
  0xf4   : > { %v600_v7 = vmax.f32 %v542_v63, 0.0  ;;  %v582_v8 = vmax.f32 %v470_v0, 0.0 }
  0xf5   : > { %v1001_v10 = vpack.c.bf16 %v584_v3, %v583_v2  ;;  %v598_v11 = vmax.f32 %v534_v4, 0.0 }
  0xf6   : > { %v1041_v12 = vpack.c.bf16 %v600_v7, %v599_v5  ;;  %v996_v13 = vpack.c.bf16 %v582_v8, %v581_v6  ;;  %v1110_v14 = vpop.f32.mrb[8].mxu0 }
  0xf7   : > { %1065 = vst [vmem:[%s1308_s29 + $0x18] sm:$0xff] %v1001_v10   ;;  %v1036_v15 = vpack.c.bf16 %v598_v11, %v597_v9  ;;  %v491_v16 = vadd.f32 %v1110_v14, %v1293_v22  ;;  %v1126_v17 = vpop.f32.mrb[8].mxu1  ;;  %v482_v18 = vpop.f32.mrb[9].mxu0 }
  0xf8   : > { %1073 = vst [vmem:[%s1308_s29 + $0x58] sm:$0xff] %v1041_v12   ;;  %1064 = vst [vmem:[%s1308_s29 + $0x10] sm:$0xff] %v996_v13   ;;  %v555_v19 = vadd.f32 %v1126_v17, %v1293_v22  ;;  %v483_v20 = vadd.f32 %v1293_v22, %v482_v18  ;;  %v546_v21 = vpop.f32.mrb[9].mxu1  ;;  %v1111_v23 = vpop.f32.mrb[10].mxu0 }
  0xf9   : > { %1072 = vst [vmem:[%s1308_s29 + $0x50] sm:$0xff] %v1036_v15   ;;  %v547_v24 = vadd.f32 %v1293_v22, %v546_v21  ;;  %v494_v25 = vadd.f32 %v1111_v23, %v1293_v22  ;;  %v1127_v26 = vpop.f32.mrb[10].mxu1  ;;  %v485_v27 = vpop.f32.mrb[11].mxu0  ;;  %v587_v31 = vmax.f32 %v491_v16, 0.0 }
  0xfa   : > { %v558_v28 = vadd.f32 %v1127_v26, %v1293_v22  ;;  %v486_v29 = vadd.f32 %v1293_v22, %v485_v27  ;;  %v549_v30 = vpop.f32.mrb[11].mxu1  ;;  %v603_v34 = vmax.f32 %v555_v19, 0.0  ;;  %v585_v35 = vmax.f32 %v483_v20, 0.0 }
  0xfb   : > { %v588_v32 = vmax.f32 %v494_v25, 0.0  ;;  %v550_v33 = vadd.f32 %v1293_v22, %v549_v30  ;;  %v601_v38 = vmax.f32 %v547_v24, 0.0 }
  0xfc   : > { %v604_v36 = vmax.f32 %v558_v28, 0.0  ;;  %v586_v37 = vmax.f32 %v486_v29, 0.0 }
  0xfd   : > { %v1011_v39 = vpack.c.bf16 %v588_v32, %v587_v31  ;;  %v602_v40 = vmax.f32 %v550_v33, 0.0 }
  0xfe   : > { %v1051_v41 = vpack.c.bf16 %v604_v36, %v603_v34  ;;  %v1006_v42 = vpack.c.bf16 %v586_v37, %v585_v35  ;;  %v1114_v43 = vpop.f32.mrb[12].mxu0 }
  0xff   : > { %1067 = vst [vmem:[%s1308_s29 + $0x28] sm:$0xff] %v1011_v39   ;;  %v1046_v44 = vpack.c.bf16 %v602_v40, %v601_v38  ;;  %v507_v45 = vadd.f32 %v1114_v43, %v1293_v22  ;;  %v1130_v46 = vpop.f32.mrb[12].mxu1  ;;  %v498_v47 = vpop.f32.mrb[13].mxu0 }
 0x100   : > { %1075 = vst [vmem:[%s1308_s29 + $0x68] sm:$0xff] %v1051_v41   ;;  %1066 = vst [vmem:[%s1308_s29 + $0x20] sm:$0xff] %v1006_v42   ;;  %v571_v48 = vadd.f32 %v1130_v46, %v1293_v22  ;;  %v499_v49 = vadd.f32 %v1293_v22, %v498_v47  ;;  %v562_v50 = vpop.f32.mrb[13].mxu1  ;;  %v1115_v51 = vpop.f32.mrb[14].mxu0 }
 0x101   : > { %1074 = vst [vmem:[%s1308_s29 + $0x60] sm:$0xff] %v1046_v44   ;;  %v563_v52 = vadd.f32 %v1293_v22, %v562_v50  ;;  %v510_v53 = vadd.f32 %v1115_v51, %v1293_v22  ;;  %v1131_v54 = vpop.f32.mrb[14].mxu1  ;;  %v501_v55 = vpop.f32.mrb[15].mxu0  ;;  %v591_v59 = vmax.f32 %v507_v45, 0.0 }
 0x102   : > { %v574_v56 = vadd.f32 %v1131_v54, %v1293_v22  ;;  %v502_v57 = vadd.f32 %v1293_v22, %v501_v55  ;;  %v565_v58 = vpop.f32.mrb[15].mxu1  ;;  %v607_v62 = vmax.f32 %v571_v48, 0.0  ;;  %v589_v63 = vmax.f32 %v499_v49, 0.0 }
 0x103   : > { %v592_v60 = vmax.f32 %v510_v53, 0.0  ;;  %v566_v61 = vadd.f32 %v1293_v22, %v565_v58  ;;  %v605_v2 = vmax.f32 %v563_v52, 0.0 }
 0x104   : > { %v608_v0 = vmax.f32 %v574_v56, 0.0  ;;  %v590_v1 = vmax.f32 %v502_v57, 0.0 }
 0x105   : > { %v1021_v3 = vpack.c.bf16 %v592_v60, %v591_v59  ;;  %v606_v4 = vmax.f32 %v566_v61, 0.0 }
 0x106   : > { %v1061_v5 = vpack.c.bf16 %v608_v0, %v607_v62  ;;  %v1016_v6 = vpack.c.bf16 %v590_v1, %v589_v63 }
 0x107   : > { %1069 = vst [vmem:[%s1308_s29 + $0x38] sm:$0xff] %v1021_v3   ;;  %v1056_v7 = vpack.c.bf16 %v606_v4, %v605_v2 }
 0x108   : > { %1077 = vst [vmem:[%s1308_s29 + $0x78] sm:$0xff] %v1061_v5   ;;  %1068 = vst [vmem:[%s1308_s29 + $0x30] sm:$0xff] %v1016_v6  }
 0x109   : > { %1076 = vst [vmem:[%s1308_s29 + $0x70] sm:$0xff] %v1056_v7  }
 0x10a PF: > { %s13_s14 = sadd.s32 1, %s1201_s14   ;;  %s1363_s12 = smov %s1197_s13 }
 0x10b   : > { %p10_p5 = scmp.ge.s32.totalorder %s13_s14, 4   ;;  %s1364_s13 = smov %s1366_s15 }
 0x10d   :  { %12 = sbr.rel (!%p10_p5) target bundleno = 2 (0x2), region = 68 }

// kernel: detector_forward.9
= control target key start
LH: loop header
LB: loop body
LE: loop exit
PB: predicated region body
PF: predicated region fallthrough
CT: control target
= control target key end

     0   :  { %s2349_s12 = smov 0   ;;  %s2351_s13 = smov 0   ;;  %s2765_s0 = inlined_call_operand.vmem [shape: bf16[512,576], index: 0, kind: input, shape index: {}]   ;;  %s2766_s1 = inlined_call_operand.vmem [shape: bf16[576,128], index: 1, kind: input, shape index: {}]   ;;  %s2767_s2 = inlined_call_operand.vmem [shape: f32[1,128], index: 2, kind: input, shape index: {}]   ;;  %s2768_s3 = inlined_call_operand.vmem [shape: f32[512,128], index: 3, kind: output, shape index: {}]  }
   0x1   :  { %s2353_s14 = smov 0  }
   0x2 LB: > { %s25_s15 = sadd.s32 1, %s2323_s13  ;;  %p1692_p0 = scmp.ge.s32.totalorder %s2327_s14, 1  ;;  %s2327_s14 = sphi %s2353_s14, %s13_s14   ;;  %s2323_s13 = sphi %s2351_s13, %s2770_s13   ;;  %s2319_s12 = sphi %s2349_s12, %s2769_s12  }
   0x3   : > { %p27_p1 = scmp.ge.s32.totalorder %s25_s15, 2  ;;  %p170_p2 = scmp.lt.s32.totalorder %s2327_s14, 3 }
   0x5   : > { %s2772_s15 = smov (%p27_p1, %s25_s15), 0  ;;  %p171_p3 = pnand %p1692_p0, %p170_p2 }
   0x6   : > { %v2157_v0 = vld [vmem:[%s2766_s1 + $0x40] sm:$0xff] (!%p171_p3)   ;;  %s1693_s18 = sshll.u32 (!%p171_p3), %s2319_s12, 5  ;;  %v2159_v2 = vld [vmem:[%s2766_s1 + $0x48] sm:$0xff] (!%p171_p3)   ;;  %v2161_v4 = vld [vmem:[%s2766_s1 + $0x50] sm:$0xff] (!%p171_p3)   ;;  %vm1020_vm0 = vcmask (!%p171_p3), 523264  }
   0x7   : > { %174 = sbr.rel (%p171_p3) target bundleno = 413 (0x19d), region = 32  ;;  %v2158_v1 = vld [vmem:[%s2766_s1] sm:$0xff] (!%p171_p3)   ;;  %1832 = vmatprep.subr.bf16.mxu0 (!%p171_p3), %v2157_v0  ;;  %2116 = vmatprep.subr.bf16.mxu1 (!%p171_p3), %v2157_v0  ;;  %p206_p4 = scmp.lt.s32.totalorder (!%p171_p3), %s1693_s18, 63  ;;  %v2160_v3 = vld [vmem:[%s2766_s1 + $0x8] sm:$0xff] (!%p171_p3)   ;;  %v2162_v5 = vld [vmem:[%s2766_s1 + $0x10] sm:$0xff] (!%p171_p3)  }
   0x8   : > { %1833 = vmatpush3.bf16.msra.mxu0 (!%p171_p3), %v2158_v1  ;;  %2124 = vmatpush3.bf16.msra.mxu1 (!%p171_p3), %v2158_v1  ;;  %v2163_v6 = vld [vmem:[%s2766_s1 + $0x58] sm:$0xff] (!%p171_p3)   ;;  %v2165_v8 = vld [vmem:[%s2766_s1 + $0x60] sm:$0xff] (!%p171_p3)   ;;  %v2167_v10 = vld [vmem:[%s2766_s1 + $0x68] sm:$0xff] (!%p171_p3)  }
   0x9   : > { %1834 = vmatprep.subr.bf16.mxu0 (!%p171_p3), %v2159_v2  ;;  %2117 = vmatprep.subr.bf16.mxu1 (!%p171_p3), %v2159_v2  ;;  %v2164_v7 = vld [vmem:[%s2766_s1 + $0x18] sm:$0xff] (!%p171_p3)   ;;  %v2166_v9 = vld [vmem:[%s2766_s1 + $0x20] sm:$0xff] (!%p171_p3)   ;;  %v2168_v13 = vld [vmem:[%s2766_s1 + $0x28] sm:$0xff] (!%p171_p3)  }
   0xa   : > { %v2169_v14 = vld [vmem:[%s2766_s1 + $0x70] sm:$0xff] (!%p171_p3)   ;;  %v2171_v16 = vld [vmem:[%s2766_s1 + $0x78] sm:$0xff] (!%p171_p3)   ;;  %v2179_v18 = vld [vmem:[%s2766_s1 + $0xc0] sm:$0xff] (!%p171_p3)  }
   0xb   : > { %v2170_v15 = vld [vmem:[%s2766_s1 + $0x30] sm:$0xff] (!%p171_p3)   ;;  %v2172_v17 = vld [vmem:[%s2766_s1 + $0x38] sm:$0xff] (!%p171_p3)   ;;  %v2182_v19 = vld [vmem:[%s2766_s1 + $0x100] sm:$0xff] (!%p171_p3)  }
   0xc   : > { %1835 = vmatpush3.bf16.msra.mxu0 (!%p171_p3), %v2160_v3  ;;  %2125 = vmatpush3.bf16.msra.mxu1 (!%p171_p3), %v2160_v3  ;;  %v2180_v22 = vld [vmem:[%s2766_s1 + $0x80] sm:$0xff] (!%p171_p3)   ;;  %v2181_v23 = vld [vmem:[%s2766_s1 + $0xc8] sm:$0xff] (!%p171_p3)   ;;  %v2190_v28 = vld [vmem:[%s2766_s1 + $0xd0] sm:$0xff] (!%p171_p3)  }
   0xd   : > { %1836 = vmatprep.subr.bf16.mxu0 (!%p171_p3), %v2161_v4  ;;  %2118 = vmatprep.subr.bf16.mxu1 (!%p171_p3), %v2161_v4  ;;  %v2183_v26 = vld [vmem:[%s2766_s1 + $0x88] sm:$0xff] (!%p171_p3)   ;;  %v2191_v30 = vld [vmem:[%s2766_s1 + $0x90] sm:$0xff] (!%p171_p3)   ;;  %v2192_v31 = vld [vmem:[%s2766_s1 + $0xd8] sm:$0xff] (!%p171_p3)  }
   0xe   : > { %s2774_s18 = smov (!%p206_p4, %s1693_s18), 63  ;;  %v2193_v34 = vld [vmem:[%s2766_s1 + $0x98] sm:$0xff]   ;;  %v2213_v35 = vld [vmem:[%s2766_s1 + $0x108] sm:$0xff]   ;;  %v2200_v37 = vld [vmem:[%s2766_s1 + $0xe0] sm:$0xff]  }
   0xf   : > { %s2132_s4 = smul.u32 20, %s2774_s18  ;;  %v2201_v39 = vld [vmem:[%s2766_s1 + $0xa0] sm:$0xff]   ;;  %v2202_v40 = vld [vmem:[%s2766_s1 + $0xe8] sm:$0xff]   ;;  %v2210_v46 = vld [vmem:[%s2766_s1 + $0xf0] sm:$0xff]   ;;  %s1696_s27 = sshll.u32 %s2774_s18, 3 }
  0x10   : > { %1837 = vmatpush3.bf16.msra.mxu0 %v2162_v5  ;;  %2126 = vmatpush3.bf16.msra.mxu1 %v2162_v5  ;;  %v2203_v43 = vld [vmem:[%s2766_s1 + $0xa8] sm:$0xff]   ;;  %v2233_v47 = vld [vmem:[%s2766_s1 + $0x110] sm:$0xff]   ;;  %v2212_v49 = vld [vmem:[%s2766_s1 + $0xf8] sm:$0xff]   ;;  %s2668_s30 = scalar_lea.vmem %s2768_s3, %s1696_s27 }
  0x11   : > { %1838 = vmatprep.subr.bf16.mxu0 %v2163_v6  ;;  %2119 = vmatprep.subr.bf16.mxu1 %v2163_v6  ;;  %s2400_s11 = scalar_lea.vmem %s2765_s0, %s2132_s4  ;;  %v2211_v48 = vld [vmem:[%s2766_s1 + $0xb0] sm:$0xff]   ;;  %v2214_v52 = vld [vmem:[%s2766_s1 + $0xb8] sm:$0xff]  }
  0x12   : > { %v2175_v11 = vld [vmem:[%s2400_s11 + $0x4] ss:$20 sps:$4 sm:$0xff]   ;;  %v2173_v20 = vld [vmem:[%s2400_s11] ss:$20 sps:$4 sm:$0xff]   ;;  %v2188_v27 = vld [vmem:[%s2400_s11 + $0x28] ss:$20 sps:$4 sm:$0xff]  }
  0x13   : > { %v2178_v12 = vld [vmem:[%s2400_s11 + $0x1e4] ss:$20 sps:$4 sm:$0xff]   ;;  %1101 = vmatprep.mubr.bf16.mxu0 %v2175_v11  ;;  %v2176_v21 = vld [vmem:[%s2400_s11 + $0x1e0] ss:$20 sps:$4 sm:$0xff]   ;;  %v2189_v29 = vld [vmem:[%s2400_s11 + $0x208] ss:$20 sps:$4 sm:$0xff]  }
  0x14   : > { %1839 = vmatpush3.bf16.msra.mxu0 %v2164_v7  ;;  %2127 = vmatpush3.bf16.msra.mxu1 %v2164_v7  ;;  %v2184_v24 = vld [vmem:[%s2400_s11 + $0x2c] ss:$20 sps:$4 sm:$0xff]   ;;  %v2194_v32 = vld [vmem:[%s2400_s11 + $0x54] ss:$20 sps:$4 sm:$0xff]   ;;  %v2198_v36 = vld [vmem:[%s2400_s11 + $0x50] ss:$20 sps:$4 sm:$0xff]  }
  0x15   : > { %1840 = vmatprep.subr.bf16.mxu0 %v2165_v8  ;;  %2120 = vmatprep.subr.bf16.mxu1 %v2165_v8  ;;  %v2186_v25 = vld [vmem:[%s2400_s11 + $0x20c] ss:$20 sps:$4 sm:$0xff]   ;;  %v2196_v33 = vld [vmem:[%s2400_s11 + $0x234] ss:$20 sps:$4 sm:$0xff]   ;;  %v2199_v38 = vld [vmem:[%s2400_s11 + $0x230] ss:$20 sps:$4 sm:$0xff]  }
  0x16   : > { %1197 = vmatprep.mubr.bf16.mxu1 %v2178_v12  ;;  %v2204_v41 = vld [vmem:[%s2400_s11 + $0x7c] ss:$20 sps:$4 sm:$0xff]   ;;  %v2208_v44 = vld [vmem:[%s2400_s11 + $0x78] ss:$20 sps:$4 sm:$0xff]   ;;  %v2220_v54 = vld [vmem:[%s2400_s11 + $0xa0] ss:$20 sps:$4 sm:$0xff]  }
  0x17   : > { %v2206_v42 = vld [vmem:[%s2400_s11 + $0x25c] ss:$20 sps:$4 sm:$0xff]   ;;  %v2209_v45 = vld [vmem:[%s2400_s11 + $0x258] ss:$20 sps:$4 sm:$0xff]   ;;  %v2223_v57 = vld [vmem:[%s2400_s11 + $0x34] ss:$20 sps:$4 sm:$0xff]  }
  0x18   : > { %1841 = vmatpush3.bf16.msra.mxu0 %v2166_v9  ;;  %2128 = vmatpush3.bf16.msra.mxu1 %v2166_v9  ;;  %v2215_v50 = vld [vmem:[%s2400_s11 + $0xa4] ss:$20 sps:$4 sm:$0xff]   ;;  %v2219_v51 = vld [vmem:[%s2400_s11 + $0xc] ss:$20 sps:$4 sm:$0xff]   ;;  %v2217_v53 = vld [vmem:[%s2400_s11 + $0x8] ss:$20 sps:$4 sm:$0xff]  }
  0x19   : > { %1842 = vmatprep.subr.bf16.mxu0 %v2167_v10  ;;  %2121 = vmatprep.subr.bf16.mxu1 %v2167_v10  ;;  %v2221_v55 = vld [vmem:[%s2400_s11 + $0xcc] ss:$20 sps:$4 sm:$0xff]   ;;  %v2252_v56 = vld [vmem:[%s2766_s1 + $0x118] sm:$0xff]   ;;  %v2226_v59 = vld [vmem:[%s2400_s11 + $0x30] ss:$20 sps:$4 sm:$0xff]  }
  0x1a   : > { %v2225_v58 = vld [vmem:[%s2400_s11 + $0xc8] ss:$20 sps:$4 sm:$0xff]   ;;  %v2231_v62 = vld [vmem:[%s2400_s11 + $0xf0] ss:$20 sps:$4 sm:$0xff]   ;;  %v2232_v63 = vld [vmem:[%s2400_s11 + $0x58] ss:$20 sps:$4 sm:$0xff]  }
  0x1b   : > { %v2227_v60 = vld [vmem:[%s2400_s11 + $0xf4] ss:$20 sps:$4 sm:$0xff]   ;;  %v2229_v61 = vld [vmem:[%s2400_s11 + $0x5c] ss:$20 sps:$4 sm:$0xff]   ;;  %v2236_v1 = vld [vmem:[%s2400_s11 + $0x84] ss:$20 sps:$4 sm:$0xff]  }
  0x1c   : > { %1843 = vmatpush3.bf16.msra.mxu0 %v2168_v13  ;;  %2129 = vmatpush3.bf16.msra.mxu1 %v2168_v13  ;;  %v2234_v0 = vld [vmem:[%s2400_s11 + $0x11c] ss:$20 sps:$4 sm:$0xff]   ;;  %v2238_v2 = vld [vmem:[%s2400_s11 + $0x118] ss:$20 sps:$4 sm:$0xff]   ;;  %v2239_v3 = vld [vmem:[%s2400_s11 + $0x80] ss:$20 sps:$4 sm:$0xff]  }
  0x1d   : > { %1844 = vmatprep.subr.bf16.mxu0 %v2169_v14  ;;  %2122 = vmatprep.subr.bf16.mxu1 %v2169_v14  ;;  %v2240_v4 = vld [vmem:[%s2400_s11 + $0x144] ss:$20 sps:$4 sm:$0xff]   ;;  %v2242_v5 = vld [vmem:[%s2400_s11 + $0xac] ss:$20 sps:$4 sm:$0xff]   ;;  %v2245_v7 = vld [vmem:[%s2400_s11 + $0xa8] ss:$20 sps:$4 sm:$0xff]  }
  0x1e   : > { %v2244_v6 = vld [vmem:[%s2400_s11 + $0x140] ss:$20 sps:$4 sm:$0xff]   ;;  %v2250_v10 = vld [vmem:[%s2400_s11 + $0x168] ss:$20 sps:$4 sm:$0xff]   ;;  %v2251_v11 = vld [vmem:[%s2400_s11 + $0xd0] ss:$20 sps:$4 sm:$0xff]  }
  0x1f   : > { %v2246_v8 = vld [vmem:[%s2400_s11 + $0x16c] ss:$20 sps:$4 sm:$0xff]   ;;  %v2248_v9 = vld [vmem:[%s2400_s11 + $0xd4] ss:$20 sps:$4 sm:$0xff]   ;;  %v2255_v13 = vld [vmem:[%s2400_s11 + $0xfc] ss:$20 sps:$4 sm:$0xff]  }
  0x20   : > { %1845 = vmatpush3.bf16.msra.mxu0 %v2170_v15  ;;  %2130 = vmatpush3.bf16.msra.mxu1 %v2170_v15  ;;  %v2253_v12 = vld [vmem:[%s2400_s11 + $0x194] ss:$20 sps:$4 sm:$0xff]   ;;  %v2257_v14 = vld [vmem:[%s2400_s11 + $0x190] ss:$20 sps:$4 sm:$0xff]   ;;  %v2258_v15 = vld [vmem:[%s2400_s11 + $0xf8] ss:$20 sps:$4 sm:$0xff]  }
  0x21   : > { %1846 = vmatprep.subr.bf16.mxu0 %v2171_v16  ;;  %2123 = vmatprep.subr.bf16.mxu1 %v2171_v16  ;;  %v2259_v16 = vld [vmem:[%s2400_s11 + $0x1bc] ss:$20 sps:$4 sm:$0xff]  }
  0x24   : > { %1847 = vmatpush3.bf16.msra.mxu0 %v2172_v17  ;;  %2131 = vmatpush3.bf16.msra.mxu1 %v2172_v17  ;;  %v2261_v17 = vld [vmem:[%s2400_s11 + $0x124] ss:$20 sps:$4 sm:$0xff]  }
  0x25   : > { %1944 = vmatprep.subr.bf16.mxu1 %v2179_v18  ;;  %2076 = vmatprep.subr.bf16.mxu0 %v2182_v19  ;;  %v2263_v18 = vld [vmem:[%s2400_s11 + $0x1b8] ss:$20 sps:$4 sm:$0xff]  }
  0x27   : > { %1102 = vmatmul.mubr.bf16.vlgmr.msra.gmra.mrb[0].mxu0 %v2173_v20  ;;  %1198 = vmatmul.mubr.bf16.vlgmr.msra.gmra.mrb[0].mxu1 %v2176_v21  ;;  %v2265_v20 = vld [vmem:[%s2400_s11 + $0x14c] ss:$20 sps:$4 sm:$0xff]   ;;  %v2267_v21 = vld [vmem:[%s2400_s11 + $0x10] ss:$20 sps:$4 sm:$0xff]  }
  0x28   : > { %1945 = vmatpush3.bf16.msra.mxu1 %v2180_v22  ;;  %2077 = vmatpush3.bf16.msra.mxu0 %v2182_v19  ;;  %v2264_v19 = vld [vmem:[%s2400_s11 + $0x120] ss:$20 sps:$4 sm:$0xff]   ;;  %v2268_v22 = vld [vmem:[%s2400_s11 + $0x148] ss:$20 sps:$4 sm:$0xff]  }
  0x29   : > { %1946 = vmatprep.subr.bf16.mxu1 %v2181_v23  ;;  %1109 = vmatprep.mubr.bf16.mxu0 %v2184_v24  ;;  %v2269_v23 = vld [vmem:[%s2400_s11 + $0x38] ss:$20 sps:$4 sm:$0xff]   ;;  %v2270_v24 = vld [vmem:[%s2400_s11 + $0x174] ss:$20 sps:$4 sm:$0xff]  }
  0x2a   : > { %1205 = vmatprep.mubr.bf16.mxu1 %v2186_v25  ;;  %2078 = vmatprep.subr.bf16.mxu0 %v2213_v35  ;;  %v2272_v25 = vld [vmem:[%s2400_s11 + $0x60] ss:$20 sps:$4 sm:$0xff]  }
  0x2c   : > { %1947 = vmatpush3.bf16.msra.mxu1 %v2183_v26  ;;  %2079 = vmatpush3.bf16.msra.mxu0 %v2213_v35  ;;  %v2273_v26 = vld [vmem:[%s2400_s11 + $0x170] ss:$20 sps:$4 sm:$0xff]   ;;  %v2284_v35 = vld [vmem:[%s2400_s11 + $0x128] ss:$20 sps:$4 sm:$0xff]  }
  0x2d   : > { %1948 = vmatprep.subr.bf16.mxu1 %v2190_v28  ;;  %2080 = vmatprep.subr.bf16.mxu0 %v2233_v47  ;;  %v2275_v28 = vld [vmem:[%s2400_s11 + $0x19c] ss:$20 sps:$4 sm:$0xff]  }
  0x2f   : > { %1110 = vmatmul.mubr.bf16.gmra.mrb[4].mxu0 %v2188_v27  ;;  %1206 = vmatmul.mubr.bf16.gmra.mrb[4].mxu1 %v2189_v29  ;;  %v2274_v27 = vld [vmem:[%s2400_s11 + $0x88] ss:$20 sps:$4 sm:$0xff]   ;;  %v2277_v29 = vld [vmem:[%s2400_s11 + $0xb0] ss:$20 sps:$4 sm:$0xff]  }
  0x30   : > { %1949 = vmatpush3.bf16.msra.mxu1 %v2191_v30  ;;  %1117 = vmatprep.mubr.bf16.mxu0 %v2194_v32  ;;  %v2278_v30 = vld [vmem:[%s2400_s11 + $0x198] ss:$20 sps:$4 sm:$0xff]  }
  0x31   : > { %1950 = vmatprep.subr.bf16.mxu1 %v2192_v31  ;;  %1213 = vmatprep.mubr.bf16.mxu1 %v2196_v33  ;;  %v2279_v31 = vld [vmem:[%s2400_s11 + $0xd8] ss:$20 sps:$4 sm:$0xff]   ;;  %v2282_v33 = vld [vmem:[%s2400_s11 + $0x100] ss:$20 sps:$4 sm:$0xff]  }
  0x32   : > { %2081 = vmatpush3.bf16.msra.mxu0 %v2233_v47  ;;  %v2280_v32 = vld [vmem:[%s2400_s11 + $0x1c4] ss:$20 sps:$4 sm:$0xff]  }
  0x33   : > { %2082 = vmatprep.subr.bf16.mxu0 %v2252_v56  ;;  %v2299_v47 = vld [vmem:[%s2400_s11 + $0x218] ss:$20 sps:$4 sm:$0xff]  }
  0x34   : > { %1951 = vmatpush3.bf16.msra.mxu1 %v2193_v34  ;;  %v2283_v34 = vld [vmem:[%s2400_s11 + $0x1c0] ss:$20 sps:$4 sm:$0xff]  }
  0x35   : > { %1952 = vmatprep.subr.bf16.mxu1 %v2200_v37  ;;  %v2287_v37 = vld [vmem:[%s2400_s11 + $0x150] ss:$20 sps:$4 sm:$0xff]  }
  0x36   : > { %2083 = vmatpush3.bf16.msra.mxu0 %v2252_v56 }
  0x37   : > { %1118 = vmatmul.mubr.bf16.gmra.mrb[8].mxu0 %v2198_v36  ;;  %1214 = vmatmul.mubr.bf16.gmra.mrb[8].mxu1 %v2199_v38  ;;  %v2285_v36 = vld [vmem:[%s2400_s11 + $0x1ec] ss:$20 sps:$4 sm:$0xff]   ;;  %v2288_v38 = vld [vmem:[%s2400_s11 + $0x1e8] ss:$20 sps:$4 sm:$0xff]  }
  0x38   : > { %1953 = vmatpush3.bf16.msra.mxu1 %v2201_v39  ;;  %1125 = vmatprep.mubr.bf16.mxu0 %v2204_v41  ;;  %v2289_v39 = vld [vmem:[%s2400_s11 + $0x178] ss:$20 sps:$4 sm:$0xff]   ;;  %v2292_v41 = vld [vmem:[%s2400_s11 + $0x1a0] ss:$20 sps:$4 sm:$0xff]  }
  0x39   : > { %1954 = vmatprep.subr.bf16.mxu1 %v2202_v40  ;;  %1221 = vmatprep.mubr.bf16.mxu1 %v2206_v42  ;;  %v2290_v40 = vld [vmem:[%s2400_s11 + $0x214] ss:$20 sps:$4 sm:$0xff]   ;;  %v2293_v42 = vld [vmem:[%s2400_s11 + $0x210] ss:$20 sps:$4 sm:$0xff]  }
  0x3c   : > { %1955 = vmatpush3.bf16.msra.mxu1 %v2203_v43  ;;  %v2294_v43 = vld [vmem:[%s2400_s11 + $0x1c8] ss:$20 sps:$4 sm:$0xff]  }
  0x3d   : > { %1956 = vmatprep.subr.bf16.mxu1 %v2210_v46  ;;  %v2298_v46 = vld [vmem:[%s2400_s11 + $0x238] ss:$20 sps:$4 sm:$0xff]  }
  0x3f   : > { %1126 = vmatmul.mubr.bf16.gmra.mrb[12].mxu0 %v2208_v44  ;;  %1222 = vmatmul.mubr.bf16.gmra.mrb[12].mxu1 %v2209_v45  ;;  %v2295_v44 = vld [vmem:[%s2400_s11 + $0x23c] ss:$20 sps:$4 sm:$0xff]  }
  0x40   : > { %1957 = vmatpush3.bf16.msra.mxu1 %v2211_v48  ;;  %1133 = vmatprep.mubr.bf16.mxu0 %v2215_v50  ;;  %v2297_v45 = vld [vmem:[%s2400_s11 + $0x1f0] ss:$20 sps:$4 sm:$0xff]   ;;  %v2303_v50 = vld [vmem:[%s2400_s11 + $0x260] ss:$20 sps:$4 sm:$0xff]  }
  0x41   : > { %1958 = vmatprep.subr.bf16.mxu1 %v2212_v49  ;;  %1262 = vmatprep.mubr.bf16.mxu1 %v2219_v51  ;;  %v2300_v48 = vld [vmem:[%s2400_s11 + $0x264] ss:$20 sps:$4 sm:$0xff]   ;;  %v2302_v49 = vld [vmem:[%s2400_s11 + $0x240] ss:$20 sps:$4 sm:$0xff]   ;;  %v2304_v51 = vld [vmem:[%s2400_s11 + $0x268] ss:$20 sps:$4 sm:$0xff]  }
  0x44   : > { %1959 = vmatpush3.bf16.msra.mxu1 %v2214_v52 }
  0x47   : > { %1134 = vmatmul.mubr.bf16.gmra.mrb[16].mxu0 %v2220_v54  ;;  %1263 = vmatmul.mubr.bf16.vlgmr.msra.gmra.mrb[16].mxu1 %v2217_v53 }
  0x48   : > { %1141 = vmatprep.mubr.bf16.mxu0 %v2221_v55  ;;  %1270 = vmatprep.mubr.bf16.mxu1 %v2223_v57 }
  0x4f   : > { %1142 = vmatmul.mubr.bf16.gmra.mrb[20].mxu0 %v2225_v58  ;;  %1271 = vmatmul.mubr.bf16.gmra.mrb[20].mxu1 %v2226_v59 }
  0x50   : > { %1149 = vmatprep.mubr.bf16.mxu0 %v2227_v60  ;;  %1278 = vmatprep.mubr.bf16.mxu1 %v2229_v61 }
  0x57   : > { %1150 = vmatmul.mubr.bf16.gmra.mrb[24].mxu0 %v2231_v62  ;;  %1279 = vmatmul.mubr.bf16.gmra.mrb[24].mxu1 %v2232_v63 }
  0x58   : > { %1157 = vmatprep.mubr.bf16.mxu0 %v2234_v0  ;;  %1286 = vmatprep.mubr.bf16.mxu1 %v2236_v1 }
  0x5f   : > { %1158 = vmatmul.mubr.bf16.gmra.mrb[28].mxu0 %v2238_v2  ;;  %1287 = vmatmul.mubr.bf16.gmra.mrb[28].mxu1 %v2239_v3 }
  0x60   : > { %1165 = vmatprep.mubr.bf16.mxu0 %v2240_v4  ;;  %1294 = vmatprep.mubr.bf16.mxu1 %v2242_v5 }
  0x67   : > { %1166 = vmatmul.mubr.bf16.gmra.mrb[32].mxu0 %v2244_v6  ;;  %1295 = vmatmul.mubr.bf16.gmra.mrb[32].mxu1 %v2245_v7 }
  0x68   : > { %1173 = vmatprep.mubr.bf16.mxu0 %v2246_v8  ;;  %1302 = vmatprep.mubr.bf16.mxu1 %v2248_v9 }
  0x6f   : > { %1174 = vmatmul.mubr.bf16.gmra.mrb[36].mxu0 %v2250_v10  ;;  %1303 = vmatmul.mubr.bf16.gmra.mrb[36].mxu1 %v2251_v11 }
  0x70   : > { %1181 = vmatprep.mubr.bf16.mxu0 %v2253_v12  ;;  %1310 = vmatprep.mubr.bf16.mxu1 %v2255_v13 }
  0x77   : > { %1182 = vmatmul.mubr.bf16.gmra.mrb[40].mxu0 %v2257_v14  ;;  %1311 = vmatmul.mubr.bf16.gmra.mrb[40].mxu1 %v2258_v15 }
  0x78   : > { %1189 = vmatprep.mubr.bf16.mxu0 %v2259_v16  ;;  %1318 = vmatprep.mubr.bf16.mxu1 %v2261_v17 }
  0x7f   : > { %1190 = vmatmul.mubr.bf16.gmra.mrb[44].mxu0 %v2263_v18  ;;  %1319 = vmatmul.mubr.bf16.gmra.mrb[44].mxu1 %v2264_v19 }
  0x80   : > { %1326 = vmatprep.mubr.bf16.mxu1 %v2265_v20  ;;  %2084 = vmatprep.mubr.msk.bf16.mxu0 %vm1020_vm0, %v2267_v21 }
  0x87   : > { %1327 = vmatmul.mubr.bf16.gmra.mrb[48].mxu1 %v2268_v22  ;;  %2085 = vmatmul.mubr.msk.bf16.vlgmr.msra.gmra.mrb[48].mxu0 %vm1020_vm0, %v2269_v23 }
  0x88   : > { %1334 = vmatprep.mubr.bf16.mxu1 %v2270_v24  ;;  %2088 = vmatprep.mubr.msk.bf16.mxu0 %vm1020_vm0, %v2272_v25 }
  0x8f   : > { %1335 = vmatmul.mubr.bf16.gmra.mrb[52].mxu1 %v2273_v26  ;;  %2089 = vmatmul.mubr.msk.bf16.gmra.mrb[52].mxu0 %vm1020_vm0, %v2274_v27 }
  0x90   : > { %1342 = vmatprep.mubr.bf16.mxu1 %v2275_v28  ;;  %2092 = vmatprep.mubr.msk.bf16.mxu0 %vm1020_vm0, %v2277_v29 }
  0x97   : > { %1343 = vmatmul.mubr.bf16.gmra.mrb[56].mxu1 %v2278_v30  ;;  %2093 = vmatmul.mubr.msk.bf16.gmra.mrb[56].mxu0 %vm1020_vm0, %v2279_v31 }
  0x98   : > { %1350 = vmatprep.mubr.bf16.mxu1 %v2280_v32  ;;  %2096 = vmatprep.mubr.msk.bf16.mxu0 %vm1020_vm0, %v2282_v33 }
  0x9f   : > { %1351 = vmatmul.mubr.bf16.gmra.mrb[60].mxu1 %v2283_v34  ;;  %2097 = vmatmul.mubr.msk.bf16.gmra.mrb[60].mxu0 %vm1020_vm0, %v2284_v35 }
  0xa0   : > { %1358 = vmatprep.mubr.bf16.mxu1 %v2285_v36  ;;  %2100 = vmatprep.mubr.msk.bf16.mxu0 %vm1020_vm0, %v2287_v37 }
  0xa7   : > { %1359 = vmatmul.mubr.bf16.gmra.mrb[64].mxu1 %v2288_v38  ;;  %2101 = vmatmul.mubr.msk.bf16.gmra.mrb[64].mxu0 %vm1020_vm0, %v2289_v39  ;;  %v2598_v38 = vld [vmem:[%s2767_s2] ss:$0 sm:$0xff] }
  0xa8   : > { %1366 = vmatprep.mubr.bf16.mxu1 %v2290_v40  ;;  %2104 = vmatprep.mubr.msk.bf16.mxu0 %vm1020_vm0, %v2292_v41 }
  0xaf   : > { %1367 = vmatmul.mubr.bf16.gmra.mrb[68].mxu1 %v2293_v42  ;;  %2105 = vmatmul.mubr.msk.bf16.gmra.mrb[68].mxu0 %vm1020_vm0, %v2294_v43 }
  0xb0   : > { %1374 = vmatprep.mubr.bf16.mxu1 %v2295_v44  ;;  %2108 = vmatprep.mubr.msk.bf16.mxu0 %vm1020_vm0, %v2297_v45 }
  0xb7   : > { %1375 = vmatmul.mubr.bf16.gmra.mrb[72].mxu1 %v2298_v46  ;;  %2109 = vmatmul.mubr.msk.bf16.gmra.mrb[72].mxu0 %vm1020_vm0, %v2299_v47 }
  0xb8   : > { %1382 = vmatprep.mubr.bf16.mxu1 %v2300_v48  ;;  %2112 = vmatprep.mubr.msk.bf16.mxu0 %vm1020_vm0, %v2302_v49 }
  0xbf   : > { %1383 = vmatmul.mubr.bf16.gmra.mrb[76].mxu1 %v2303_v50  ;;  %2113 = vmatmul.mubr.msk.bf16.gmra.mrb[76].mxu0 %vm1020_vm0, %v2304_v51 }
  0xfa   : > { %v1920_v52 = vpop.f32.mrb[0].mxu1  ;;  %v1848_v53 = vpop.f32.mrb[0].mxu0 }
  0xfb   : > { %v1921_v54 = vpop.f32.mrb[1].mxu1  ;;  %v1849_v55 = vpop.f32.mrb[1].mxu0 }
  0xfc   : > { %v2579_v56 = vadd.f32 %v1921_v54, %v1920_v52  ;;  %v1923_v57 = vpop.f32.mrb[2].mxu1  ;;  %v1850_v58 = vadd.f32 %v1849_v55, %v1848_v53  ;;  %v1851_v59 = vpop.f32.mrb[2].mxu0 }
  0xfd   : > { %v1924_v60 = vpop.f32.mrb[3].mxu1  ;;  %v1852_v61 = vpop.f32.mrb[3].mxu0 }
  0xfe   : > { %v2581_v62 = vadd.f32 %v1924_v60, %v1923_v57  ;;  %v1853_v63 = vadd.f32 %v1852_v61, %v1851_v59  ;;  %v1104_v41 = vadd.f32 %v1850_v58, %v2598_v38 }
 0x100   : > { %v1107_v48 = vadd.f32 %v1853_v63, %v2598_v38 }
 0x102   : > { %v1926_v0 = vpop.f32.mrb[4].mxu1  ;;  %v1854_v1 = vpop.f32.mrb[4].mxu0 }
 0x103   : > { %v1927_v2 = vpop.f32.mrb[5].mxu1  ;;  %v1855_v3 = vpop.f32.mrb[5].mxu0 }
 0x104   : > { %v2583_v4 = vadd.f32 %v1927_v2, %v1926_v0  ;;  %v1929_v5 = vpop.f32.mrb[6].mxu1  ;;  %v1856_v6 = vadd.f32 %v1855_v3, %v1854_v1  ;;  %v1857_v7 = vpop.f32.mrb[6].mxu0 }
 0x105   : > { %v1930_v8 = vpop.f32.mrb[7].mxu1  ;;  %v1858_v9 = vpop.f32.mrb[7].mxu0 }
 0x106   : > { %v2585_v10 = vadd.f32 %v1930_v8, %v1929_v5  ;;  %v1859_v11 = vadd.f32 %v1858_v9, %v1857_v7  ;;  %v1112_v58 = vadd.f32 %v1856_v6, %v2598_v38 }
 0x108   : > { %v1115_v63 = vadd.f32 %v1859_v11, %v2598_v38 }
 0x10a   : > { %v1932_v12 = vpop.f32.mrb[8].mxu1  ;;  %v1860_v13 = vpop.f32.mrb[8].mxu0 }
 0x10b   : > { %v1933_v14 = vpop.f32.mrb[9].mxu1  ;;  %v1861_v15 = vpop.f32.mrb[9].mxu0 }
 0x10c   : > { %v2587_v16 = vadd.f32 %v1933_v14, %v1932_v12  ;;  %v1935_v17 = vpop.f32.mrb[10].mxu1  ;;  %v1862_v18 = vadd.f32 %v1861_v15, %v1860_v13  ;;  %v1863_v19 = vpop.f32.mrb[10].mxu0 }
 0x10d   : > { %v1936_v20 = vpop.f32.mrb[11].mxu1  ;;  %v1864_v21 = vpop.f32.mrb[11].mxu0 }
 0x10e   : > { %v2589_v22 = vadd.f32 %v1936_v20, %v1935_v17  ;;  %v1865_v23 = vadd.f32 %v1864_v21, %v1863_v19  ;;  %v1120_v6 = vadd.f32 %v1862_v18, %v2598_v38 }
 0x110   : > { %v1123_v11 = vadd.f32 %v1865_v23, %v2598_v38 }
 0x112   : > { %v1938_v24 = vpop.f32.mrb[12].mxu1  ;;  %v1866_v25 = vpop.f32.mrb[12].mxu0 }
 0x113   : > { %v1939_v26 = vpop.f32.mrb[13].mxu1  ;;  %v1867_v27 = vpop.f32.mrb[13].mxu0 }
 0x114   : > { %v2591_v28 = vadd.f32 %v1939_v26, %v1938_v24  ;;  %v1941_v29 = vpop.f32.mrb[14].mxu1  ;;  %v1868_v30 = vadd.f32 %v1867_v27, %v1866_v25  ;;  %v1869_v31 = vpop.f32.mrb[14].mxu0 }
 0x115   : > { %v1942_v32 = vpop.f32.mrb[15].mxu1  ;;  %v1870_v33 = vpop.f32.mrb[15].mxu0 }
 0x116   : > { %v2593_v34 = vadd.f32 %v1942_v32, %v1941_v29  ;;  %v1871_v35 = vadd.f32 %v1870_v33, %v1869_v31  ;;  %v1128_v18 = vadd.f32 %v1868_v30, %v2598_v38 }
 0x118   : > { %v1131_v23 = vadd.f32 %v1871_v35, %v2598_v38 }
 0x11a   : > { %v1960_v36 = vpop.f32.mrb[16].mxu1  ;;  %v1872_v37 = vpop.f32.mrb[16].mxu0 }
 0x11b   : > { %v1961_v39 = vpop.f32.mrb[17].mxu1  ;;  %v1873_v40 = vpop.f32.mrb[17].mxu0 }
 0x11c   : > { %v1962_v42 = vadd.f32 %v1961_v39, %v1960_v36  ;;  %v1963_v43 = vpop.f32.mrb[18].mxu1  ;;  %v1874_v44 = vadd.f32 %v1873_v40, %v1872_v37  ;;  %v1875_v45 = vpop.f32.mrb[18].mxu0 }
 0x11d   : > { %v1964_v46 = vpop.f32.mrb[19].mxu1  ;;  %v1876_v47 = vpop.f32.mrb[19].mxu0 }
 0x11e   : > { %v1965_v49 = vadd.f32 %v1964_v46, %v1963_v43  ;;  %v1877_v50 = vadd.f32 %v1876_v47, %v1875_v45  ;;  %v2602_v51 = vadd.f32 %v1962_v42, %v1104_v41  ;;  %v1136_v30 = vadd.f32 %v1874_v44, %v2598_v38 }
 0x120   : > { %v2604_v52 = vadd.f32 %v1965_v49, %v1107_v48  ;;  %v1139_v35 = vadd.f32 %v1877_v50, %v2598_v38 }
 0x122   : > { %v1966_v53 = vpop.f32.mrb[20].mxu1  ;;  %v1878_v54 = vpop.f32.mrb[20].mxu0 }
 0x123   : > { %v1967_v55 = vpop.f32.mrb[21].mxu1  ;;  %v1879_v57 = vpop.f32.mrb[21].mxu0 }
 0x124   : > { %v1968_v59 = vadd.f32 %v1967_v55, %v1966_v53  ;;  %v1969_v60 = vpop.f32.mrb[22].mxu1  ;;  %v1880_v61 = vadd.f32 %v1879_v57, %v1878_v54  ;;  %v1881_v0 = vpop.f32.mrb[22].mxu0 }
 0x125   : > { %v1970_v1 = vpop.f32.mrb[23].mxu1  ;;  %v1882_v2 = vpop.f32.mrb[23].mxu0 }
 0x126   : > { %v1971_v3 = vadd.f32 %v1970_v1, %v1969_v60  ;;  %v1883_v5 = vadd.f32 %v1882_v2, %v1881_v0  ;;  %v2608_v7 = vadd.f32 %v1968_v59, %v1112_v58 }
 0x128   : > { %v2610_v8 = vadd.f32 %v1971_v3, %v1115_v63 }
 0x12a   : > { %v1972_v9 = vpop.f32.mrb[24].mxu1  ;;  %v1884_v12 = vpop.f32.mrb[24].mxu0 }
 0x12b   : > { %v1973_v13 = vpop.f32.mrb[25].mxu1  ;;  %v1885_v14 = vpop.f32.mrb[25].mxu0 }
 0x12c   : > { %v1974_v15 = vadd.f32 %v1973_v13, %v1972_v9  ;;  %v1975_v17 = vpop.f32.mrb[26].mxu1  ;;  %v1886_v19 = vadd.f32 %v1885_v14, %v1884_v12  ;;  %v1887_v20 = vpop.f32.mrb[26].mxu0 }
 0x12d   : > { %v1976_v21 = vpop.f32.mrb[27].mxu1  ;;  %v1888_v24 = vpop.f32.mrb[27].mxu0 }
 0x12e   : > { %v1977_v25 = vadd.f32 %v1976_v21, %v1975_v17  ;;  %v1889_v26 = vadd.f32 %v1888_v24, %v1887_v20  ;;  %v2614_v27 = vadd.f32 %v1974_v15, %v1120_v6  ;;  %v1144_v6 = vadd.f32 %v1880_v61, %v2598_v38 }
 0x130   : > { %v2616_v29 = vadd.f32 %v1977_v25, %v1123_v11  ;;  %v1147_v11 = vadd.f32 %v1883_v5, %v2598_v38 }
 0x132   : > { %v1978_v31 = vpop.f32.mrb[28].mxu1  ;;  %v1890_v32 = vpop.f32.mrb[28].mxu0 }
 0x133   : > { %v1979_v33 = vpop.f32.mrb[29].mxu1  ;;  %v1891_v36 = vpop.f32.mrb[29].mxu0 }
 0x134   : > { %v1980_v37 = vadd.f32 %v1979_v33, %v1978_v31  ;;  %v1981_v39 = vpop.f32.mrb[30].mxu1  ;;  %v1892_v40 = vadd.f32 %v1891_v36, %v1890_v32  ;;  %v1893_v41 = vpop.f32.mrb[30].mxu0 }
 0x135   : > { %v1982_v42 = vpop.f32.mrb[31].mxu1  ;;  %v1894_v43 = vpop.f32.mrb[31].mxu0 }
 0x136   : > { %v1983_v45 = vadd.f32 %v1982_v42, %v1981_v39  ;;  %v1895_v46 = vadd.f32 %v1894_v43, %v1893_v41  ;;  %v2620_v47 = vadd.f32 %v1980_v37, %v1128_v18  ;;  %v1152_v39 = vadd.f32 %v1886_v19, %v2598_v38 }
 0x138   : > { %v2622_v48 = vadd.f32 %v1983_v45, %v1131_v23 }
 0x13a   : > { %v1984_v49 = vpop.f32.mrb[32].mxu1  ;;  %v1896_v53 = vpop.f32.mrb[32].mxu0 }
 0x13b   : > { %v1985_v54 = vpop.f32.mrb[33].mxu1  ;;  %v1897_v55 = vpop.f32.mrb[33].mxu0 }
 0x13c   : > { %v1986_v57 = vadd.f32 %v1985_v54, %v1984_v49  ;;  %v1987_v58 = vpop.f32.mrb[34].mxu1  ;;  %v2625_v59 = vadd.f32 %v1897_v55, %v1896_v53  ;;  %v1899_v60 = vpop.f32.mrb[34].mxu0  ;;  %v1155_v49 = vadd.f32 %v1889_v26, %v2598_v38 }
 0x13d   : > { %v1988_v0 = vpop.f32.mrb[35].mxu1  ;;  %v1900_v1 = vpop.f32.mrb[35].mxu0 }
 0x13e   : > { %v1989_v2 = vadd.f32 %v1988_v0, %v1987_v58  ;;  %v2628_v63 = vadd.f32 %v1900_v1, %v1899_v60  ;;  %v2630_v3 = vadd.f32 %v1986_v57, %v1136_v30  ;;  %v1160_v0 = vadd.f32 %v1892_v40, %v2598_v38 }
 0x140   : > { %v2632_v9 = vadd.f32 %v1989_v2, %v1139_v35 }
 0x142   : > { %v1990_v12 = vpop.f32.mrb[36].mxu1  ;;  %v1902_v13 = vpop.f32.mrb[36].mxu0 }
 0x143   : > { %v1991_v14 = vpop.f32.mrb[37].mxu1  ;;  %v1903_v44 = vpop.f32.mrb[37].mxu0 }
 0x144   : > { %v1992_v15 = vadd.f32 %v1991_v14, %v1990_v12  ;;  %v1993_v17 = vpop.f32.mrb[38].mxu1  ;;  %v2635_v20 = vadd.f32 %v1903_v44, %v1902_v13  ;;  %v1905_v21 = vpop.f32.mrb[38].mxu0  ;;  %v1163_v14 = vadd.f32 %v1895_v46, %v2598_v38 }
 0x145   : > { %v1994_v24 = vpop.f32.mrb[39].mxu1  ;;  %v1906_v50 = vpop.f32.mrb[39].mxu0 }
 0x146   : > { %v1995_v25 = vadd.f32 %v1994_v24, %v1993_v17  ;;  %v2638_v31 = vadd.f32 %v1906_v50, %v1905_v21  ;;  %v2640_v32 = vadd.f32 %v1992_v15, %v1144_v6 }
 0x148   : > { %v2642_v33 = vadd.f32 %v1995_v25, %v1147_v11  ;;  %v1168_v11 = vadd.f32 %v2625_v59, %v2598_v38 }
 0x14a   : > { %v1996_v36 = vpop.f32.mrb[40].mxu1  ;;  %v1908_v18 = vpop.f32.mrb[40].mxu0 }
 0x14b   : > { %v1997_v37 = vpop.f32.mrb[41].mxu1  ;;  %v1909_v61 = vpop.f32.mrb[41].mxu0 }
 0x14c   : > { %v1998_v41 = vadd.f32 %v1997_v37, %v1996_v36  ;;  %v1999_v42 = vpop.f32.mrb[42].mxu1  ;;  %v2645_v43 = vadd.f32 %v1909_v61, %v1908_v18  ;;  %v1911_v23 = vpop.f32.mrb[42].mxu0 }
 0x14d   : > { %v2000_v45 = vpop.f32.mrb[43].mxu1  ;;  %v1912_v5 = vpop.f32.mrb[43].mxu0 }
 0x14e   : > { %v2001_v53 = vadd.f32 %v2000_v45, %v1999_v42  ;;  %v2648_v54 = vadd.f32 %v1912_v5, %v1911_v23  ;;  %v2650_v55 = vadd.f32 %v1998_v41, %v1152_v39 }
 0x150   : > { %v2652_v30 = vadd.f32 %v2001_v53, %v1155_v49 }
 0x152   : > { %v2002_v57 = vpop.f32.mrb[44].mxu1  ;;  %v1914_v58 = vpop.f32.mrb[44].mxu0 }
 0x153   : > { %v2003_v19 = vpop.f32.mrb[45].mxu1  ;;  %v1915_v60 = vpop.f32.mrb[45].mxu0 }
 0x154   : > { %v2004_v1 = vadd.f32 %v2003_v19, %v2002_v57  ;;  %v2005_v35 = vpop.f32.mrb[46].mxu1  ;;  %v2655_v2 = vadd.f32 %v1915_v60, %v1914_v58  ;;  %v1917_v12 = vpop.f32.mrb[46].mxu0 }
 0x155   : > { %v2006_v26 = vpop.f32.mrb[47].mxu1  ;;  %v1918_v13 = vpop.f32.mrb[47].mxu0 }
 0x156   : > { %v2007_v44 = vadd.f32 %v2006_v26, %v2005_v35  ;;  %v2658_v6 = vadd.f32 %v1918_v13, %v1917_v12  ;;  %v2660_v15 = vadd.f32 %v2004_v1, %v1160_v0 }
 0x158   : > { %v2663_v17 = vadd.f32 %v2007_v44, %v1163_v14 }
 0x15a   : > { %v2008_v21 = vpop.f32.mrb[48].mxu1  ;;  %v2086_v40 = vpop.f32.mrb[48].mxu0 }
 0x15b   : > { %v1434_v24 = vadd.f32 %v2086_v40, %v2608_v7  ;;  %v2009_v46 = vpop.f32.mrb[49].mxu1  ;;  %v1425_v50 = vpop.f32.mrb[49].mxu0  ;;  %v1171_v7 = vadd.f32 %v2628_v63, %v2598_v38  ;;  %v1176_v63 = vadd.f32 %v2635_v20, %v2598_v38 }
 0x15c   : > { %v2010_v25 = vadd.f32 %v2009_v46, %v2008_v21  ;;  %v1426_v36 = vadd.f32 %v1425_v50, %v2602_v51  ;;  %v2011_v18 = vpop.f32.mrb[50].mxu1  ;;  %v2087_v37 = vpop.f32.mrb[50].mxu0 }
 0x15d   : > { %1554 = vst [vmem:[%s2668_s30 + $0x10] sm:$0xff] %v1434_v24  ;;  %v1437_v61 = vadd.f32 %v2087_v37, %v2610_v8  ;;  %v2012_v39 = vpop.f32.mrb[51].mxu1  ;;  %v1428_v41 = vpop.f32.mrb[51].mxu0 }
 0x15e   : > { %1552 = vst [vmem:[%s2668_s30] sm:$0xff] %v1426_v36  ;;  %v2013_v42 = vadd.f32 %v2012_v39, %v2011_v18  ;;  %v1429_v23 = vadd.f32 %v1428_v41, %v2604_v52  ;;  %v2680_v45 = vadd.f32 %v2010_v25, %v1168_v11 }
 0x15f   : > { %1555 = vst [vmem:[%s2668_s30 + $0x18] sm:$0xff] %v1437_v61 }
 0x160   : > { %1553 = vst [vmem:[%s2668_s30 + $0x8] sm:$0xff] %v1429_v23  ;;  %v2684_v51 = vadd.f32 %v2013_v42, %v1171_v7 }
 0x162   : > { %v2014_v59 = vpop.f32.mrb[52].mxu1  ;;  %v2090_v5 = vpop.f32.mrb[52].mxu0 }
 0x163   : > { %v1450_v8 = vadd.f32 %v2090_v5, %v2620_v47  ;;  %v2015_v49 = vpop.f32.mrb[53].mxu1  ;;  %v1441_v53 = vpop.f32.mrb[53].mxu0  ;;  %v1179_v47 = vadd.f32 %v2638_v31, %v2598_v38  ;;  %v1184_v31 = vadd.f32 %v2645_v43, %v2598_v38 }
 0x164   : > { %v2016_v57 = vadd.f32 %v2015_v49, %v2014_v59  ;;  %v1442_v52 = vadd.f32 %v1441_v53, %v2614_v27  ;;  %v2017_v58 = vpop.f32.mrb[54].mxu1  ;;  %v2091_v19 = vpop.f32.mrb[54].mxu0 }
 0x165   : > { %1558 = vst [vmem:[%s2668_s30 + $0x30] sm:$0xff] %v1450_v8  ;;  %v1453_v60 = vadd.f32 %v2091_v19, %v2622_v48  ;;  %v2018_v0 = vpop.f32.mrb[55].mxu1  ;;  %v1444_v1 = vpop.f32.mrb[55].mxu0 }
 0x166   : > { %1556 = vst [vmem:[%s2668_s30 + $0x20] sm:$0xff] %v1442_v52  ;;  %v2019_v35 = vadd.f32 %v2018_v0, %v2017_v58  ;;  %v1445_v12 = vadd.f32 %v1444_v1, %v2616_v29  ;;  %v1337_v26 = vadd.f32 %v2016_v57, %v1176_v63 }
 0x167   : > { %1559 = vst [vmem:[%s2668_s30 + $0x38] sm:$0xff] %v1453_v60 }
 0x168   : > { %1557 = vst [vmem:[%s2668_s30 + $0x28] sm:$0xff] %v1445_v12  ;;  %v1340_v20 = vadd.f32 %v2019_v35, %v1179_v47  ;;  %v1203_v35 = vadd.f32 %v2581_v62, %v2598_v38  ;;  %v1208_v62 = vadd.f32 %v2583_v4, %v2598_v38 }
 0x16a   : > { %v2020_v27 = vpop.f32.mrb[56].mxu1  ;;  %v2094_v13 = vpop.f32.mrb[56].mxu0 }
 0x16b   : > { %v1466_v14 = vadd.f32 %v2094_v13, %v2640_v32  ;;  %v2021_v48 = vpop.f32.mrb[57].mxu1  ;;  %v1457_v44 = vpop.f32.mrb[57].mxu0  ;;  %v1187_v32 = vadd.f32 %v2648_v54, %v2598_v38  ;;  %v1192_v54 = vadd.f32 %v2655_v2, %v2598_v38 }
 0x16c   : > { %v2022_v21 = vadd.f32 %v2021_v48, %v2020_v27  ;;  %v1458_v40 = vadd.f32 %v1457_v44, %v2630_v3  ;;  %v2023_v29 = vpop.f32.mrb[58].mxu1  ;;  %v2095_v24 = vpop.f32.mrb[58].mxu0 }
 0x16d   : > { %1562 = vst [vmem:[%s2668_s30 + $0x50] sm:$0xff] %v1466_v14  ;;  %v1469_v46 = vadd.f32 %v2095_v24, %v2642_v33  ;;  %v2024_v50 = vpop.f32.mrb[59].mxu1  ;;  %v1460_v11 = vpop.f32.mrb[59].mxu0 }
 0x16e   : > { %1560 = vst [vmem:[%s2668_s30 + $0x40] sm:$0xff] %v1458_v40  ;;  %v2025_v25 = vadd.f32 %v2024_v50, %v2023_v29  ;;  %v1461_v36 = vadd.f32 %v1460_v11, %v2632_v9  ;;  %v1345_v18 = vadd.f32 %v2022_v21, %v1184_v31 }
 0x16f   : > { %1563 = vst [vmem:[%s2668_s30 + $0x58] sm:$0xff] %v1469_v46  ;;  %v1211_v46 = vadd.f32 %v2585_v10, %v2598_v38 }
 0x170   : > { %1561 = vst [vmem:[%s2668_s30 + $0x48] sm:$0xff] %v1461_v36  ;;  %v1348_v43 = vadd.f32 %v2025_v25, %v1187_v32 }
 0x172   : > { %v2026_v3 = vpop.f32.mrb[60].mxu1  ;;  %v2098_v37 = vpop.f32.mrb[60].mxu0 }
 0x173   : > { %v1482_v61 = vadd.f32 %v2098_v37, %v2660_v15  ;;  %v2027_v33 = vpop.f32.mrb[61].mxu1  ;;  %v1473_v39 = vpop.f32.mrb[61].mxu0  ;;  %v1195_v15 = vadd.f32 %v2658_v6, %v2598_v38  ;;  %v1200_v6 = vadd.f32 %v2579_v56, %v2598_v38 }
 0x174   : > { %v2028_v41 = vadd.f32 %v2027_v33, %v2026_v3  ;;  %v1474_v7 = vadd.f32 %v1473_v39, %v2650_v55  ;;  %v2029_v9 = vpop.f32.mrb[62].mxu1  ;;  %v2099_v42 = vpop.f32.mrb[62].mxu0 }
 0x175   : > { %1566 = vst [vmem:[%s2668_s30 + $0x70] sm:$0xff] %v1482_v61  ;;  %v1485_v23 = vadd.f32 %v2099_v42, %v2663_v17  ;;  %v2030_v59 = vpop.f32.mrb[63].mxu1  ;;  %v1476_v5 = vpop.f32.mrb[63].mxu0  ;;  %v1216_v61 = vadd.f32 %v2587_v16, %v2598_v38 }
 0x176   : > { %1564 = vst [vmem:[%s2668_s30 + $0x60] sm:$0xff] %v1474_v7  ;;  %v2031_v8 = vadd.f32 %v2030_v59, %v2029_v9  ;;  %v1477_v49 = vadd.f32 %v1476_v5, %v2652_v30  ;;  %v1353_v53 = vadd.f32 %v2028_v41, %v1192_v54  ;;  %v1219_v9 = vadd.f32 %v2589_v22, %v2598_v38 }
 0x177   : > { %1567 = vst [vmem:[%s2668_s30 + $0x78] sm:$0xff] %v1485_v23 }
 0x178   : > { %1565 = vst [vmem:[%s2668_s30 + $0x68] sm:$0xff] %v1477_v49  ;;  %v1356_v2 = vadd.f32 %v2031_v8, %v1195_v15 }
 0x17a   : > { %v2032_v55 = vpop.f32.mrb[64].mxu1  ;;  %v2102_v63 = vpop.f32.mrb[64].mxu0 }
 0x17b   : > { %v1498_v57 = vadd.f32 %v2102_v63, %v1337_v26  ;;  %v2033_v52 = vpop.f32.mrb[65].mxu1  ;;  %v1489_v17 = vpop.f32.mrb[65].mxu0 }
 0x17c   : > { %v2034_v58 = vadd.f32 %v2033_v52, %v2032_v55  ;;  %v1490_v19 = vadd.f32 %v1489_v17, %v2680_v45  ;;  %v2035_v60 = vpop.f32.mrb[66].mxu1  ;;  %v2103_v30 = vpop.f32.mrb[66].mxu0  ;;  %v1227_v17 = vadd.f32 %v2593_v34, %v2598_v38 }
 0x17d   : > { %1570 = vst [vmem:[%s2668_s30 + $0x90] sm:$0xff] %v1498_v57  ;;  %v1501_v0 = vadd.f32 %v2103_v30, %v1340_v20  ;;  %v2036_v1 = vpop.f32.mrb[67].mxu1  ;;  %v1492_v47 = vpop.f32.mrb[67].mxu0 }
 0x17e   : > { %1568 = vst [vmem:[%s2668_s30 + $0x80] sm:$0xff] %v1490_v19  ;;  %v2037_v12 = vadd.f32 %v2036_v1, %v2035_v60  ;;  %v1493_v26 = vadd.f32 %v1492_v47, %v2684_v51  ;;  %v1361_v27 = vadd.f32 %v2034_v58, %v1200_v6 }
 0x17f   : > { %1571 = vst [vmem:[%s2668_s30 + $0x98] sm:$0xff] %v1501_v0 }
 0x180   : > { %1569 = vst [vmem:[%s2668_s30 + $0x88] sm:$0xff] %v1493_v26  ;;  %v1364_v56 = vadd.f32 %v2037_v12, %v1203_v35 }
 0x182   : > { %v2038_v45 = vpop.f32.mrb[68].mxu1  ;;  %v2106_v13 = vpop.f32.mrb[68].mxu0 }
 0x183   : > { %v1514_v14 = vadd.f32 %v2106_v13, %v1353_v53  ;;  %v2039_v48 = vpop.f32.mrb[69].mxu1  ;;  %v1505_v20 = vpop.f32.mrb[69].mxu0  ;;  %v1224_v53 = vadd.f32 %v2591_v28, %v2598_v38 }
 0x184   : > { %v2040_v44 = vadd.f32 %v2039_v48, %v2038_v45  ;;  %v1506_v31 = vadd.f32 %v1505_v20, %v1345_v18  ;;  %v2041_v21 = vpop.f32.mrb[70].mxu1  ;;  %v2107_v40 = vpop.f32.mrb[70].mxu0 }
 0x185   : > { %1574 = vst [vmem:[%s2668_s30 + $0xb0] sm:$0xff] %v1514_v14  ;;  %v1517_v51 = vadd.f32 %v2107_v40, %v1356_v2  ;;  %v2042_v29 = vpop.f32.mrb[71].mxu1  ;;  %v1508_v24 = vpop.f32.mrb[71].mxu0 }
 0x186   : > { %1572 = vst [vmem:[%s2668_s30 + $0xa0] sm:$0xff] %v1506_v31  ;;  %v2043_v50 = vadd.f32 %v2042_v29, %v2041_v21  ;;  %v1509_v11 = vadd.f32 %v1508_v24, %v1348_v43  ;;  %v1369_v32 = vadd.f32 %v2040_v44, %v1208_v62 }
 0x187   : > { %1575 = vst [vmem:[%s2668_s30 + $0xb8] sm:$0xff] %v1517_v51 }
 0x188   : > { %1573 = vst [vmem:[%s2668_s30 + $0xa8] sm:$0xff] %v1509_v11  ;;  %v1372_v25 = vadd.f32 %v2043_v50, %v1211_v46 }
 0x18a   : > { %v2044_v4 = vpop.f32.mrb[72].mxu1  ;;  %v2110_v36 = vpop.f32.mrb[72].mxu0 }
 0x18b   : > { %v1530_v18 = vadd.f32 %v2110_v36, %v1369_v32  ;;  %v2045_v3 = vpop.f32.mrb[73].mxu1  ;;  %v1521_v37 = vpop.f32.mrb[73].mxu0 }
 0x18c   : > { %v2046_v10 = vadd.f32 %v2045_v3, %v2044_v4  ;;  %v1522_v33 = vadd.f32 %v1521_v37, %v1361_v27  ;;  %v2047_v39 = vpop.f32.mrb[74].mxu1  ;;  %v2111_v54 = vpop.f32.mrb[74].mxu0 }
 0x18d   : > { %1578 = vst [vmem:[%s2668_s30 + $0xd0] sm:$0xff] %v1530_v18  ;;  %v1533_v43 = vadd.f32 %v2111_v54, %v1372_v25  ;;  %v2048_v41 = vpop.f32.mrb[75].mxu1  ;;  %v1524_v7 = vpop.f32.mrb[75].mxu0 }
 0x18e   : > { %1576 = vst [vmem:[%s2668_s30 + $0xc0] sm:$0xff] %v1522_v33  ;;  %v2049_v42 = vadd.f32 %v2048_v41, %v2047_v39  ;;  %v1525_v23 = vadd.f32 %v1524_v7, %v1364_v56  ;;  %v1377_v59 = vadd.f32 %v2046_v10, %v1216_v61 }
 0x18f   : > { %1579 = vst [vmem:[%s2668_s30 + $0xd8] sm:$0xff] %v1533_v43 }
 0x190   : > { %1577 = vst [vmem:[%s2668_s30 + $0xc8] sm:$0xff] %v1525_v23  ;;  %v1380_v5 = vadd.f32 %v2049_v42, %v1219_v9 }
 0x192   : > { %v2050_v16 = vpop.f32.mrb[76].mxu1  ;;  %v2114_v15 = vpop.f32.mrb[76].mxu0 }
 0x193   : > { %v2051_v8 = vpop.f32.mrb[77].mxu1  ;;  %v1537_v49 = vpop.f32.mrb[77].mxu0 }
 0x194   : > { %v2052_v2 = vadd.f32 %v2051_v8, %v2050_v16  ;;  %v1538_v22 = vadd.f32 %v1537_v49, %v1377_v59  ;;  %v2053_v55 = vpop.f32.mrb[78].mxu1  ;;  %v2115_v63 = vpop.f32.mrb[78].mxu0 }
 0x195   : > { %v2054_v57 = vpop.f32.mrb[79].mxu1  ;;  %v1540_v52 = vpop.f32.mrb[79].mxu0 }
 0x196   : > { %v1385_v6 = vadd.f32 %v2052_v2, %v1224_v53  ;;  %1580 = vst [vmem:[%s2668_s30 + $0xe0] sm:$0xff] %v1538_v22  ;;  %v2055_v58 = vadd.f32 %v2054_v57, %v2053_v55  ;;  %v1541_v19 = vadd.f32 %v1540_v52, %v1380_v5 }
 0x198   : > { %v1546_v60 = vadd.f32 %v2114_v15, %v1385_v6  ;;  %v1388_v30 = vadd.f32 %v2055_v58, %v1227_v17  ;;  %1581 = vst [vmem:[%s2668_s30 + $0xe8] sm:$0xff] %v1541_v19 }
 0x19a   : > { %1582 = vst [vmem:[%s2668_s30 + $0xf0] sm:$0xff] %v1546_v60  ;;  %v1549_v0 = vadd.f32 %v2115_v63, %v1388_v30 }
 0x19c   : > { %1583 = vst [vmem:[%s2668_s30 + $0xf8] sm:$0xff] %v1549_v0 }
 0x19d PF: > { %s13_s14 = sadd.s32 1, %s2327_s14   ;;  %s2769_s12 = smov %s2323_s13 }
 0x19e   : > { %p10_p5 = scmp.ge.s32.totalorder %s13_s14, 4   ;;  %s2770_s13 = smov %s2772_s15 }
 0x1a0   :  { %12 = sbr.rel (!%p10_p5) target bundleno = 2 (0x2), region = 68 }

// kernel: detector_forward.7
= control target key start
LH: loop header
LB: loop body
LE: loop exit
PB: predicated region body
PF: predicated region fallthrough
CT: control target
= control target key end

     0   :  { %vm566_vm0 = vcmask 523264   ;;  %s2223_s1 = inlined_call_operand.vmem [shape: bf16[576,128], index: 1, kind: input, shape index: {}]   ;;  %s2224_s0 = inlined_call_operand.vmem [shape: bf16[128,576], index: 0, kind: input, shape index: {}]   ;;  %s2225_s3 = inlined_call_operand.vmem [shape: bf16[128,128], index: 3, kind: input, shape index: {}]   ;;  %s2226_s2 = inlined_call_operand.vmem [shape: f32[1,128], index: 2, kind: input, shape index: {}]   ;;  %s2227_s5 = inlined_call_operand.vmem [shape: bf16[128,128], index: 5, kind: output, shape index: {0}]   ;;  %s2228_s4 = inlined_call_operand.vmem [shape: f32[1,128], index: 4, kind: input, shape index: {}]   ;;  %s2229_s6 = inlined_call_operand.vmem [shape: bf16[128,128], index: 6, kind: output, shape index: {1}]  }
   0x1   :  { %v1714_v0 = vld [vmem:[%s2223_s1 + $0x40] sm:$0xff]   ;;  %v1718_v4 = vld [vmem:[%s2223_s1 + $0x48] sm:$0xff]   ;;  %v1722_v8 = vld [vmem:[%s2223_s1 + $0x50] sm:$0xff]  }
   0x2   :  { %v1715_v1 = vld [vmem:[%s2223_s1] sm:$0xff]   ;;  %1502 = vmatprep.subr.bf16.mxu0 %v1714_v0  ;;  %v1719_v5 = vld [vmem:[%s2223_s1 + $0x8] sm:$0xff]   ;;  %v1723_v9 = vld [vmem:[%s2223_s1 + $0x10] sm:$0xff]  }
   0x3   :  { %v1716_v2 = vld [vmem:[%s2223_s1 + $0xc0] sm:$0xff]   ;;  %1503 = vmatpush3.bf16.msra.mxu0 %v1715_v1  ;;  %v1720_v6 = vld [vmem:[%s2223_s1 + $0xc8] sm:$0xff]   ;;  %v1724_v10 = vld [vmem:[%s2223_s1 + $0xd0] sm:$0xff]  }
   0x4   :  { %v1717_v3 = vld [vmem:[%s2223_s1 + $0x80] sm:$0xff]   ;;  %1566 = vmatprep.subr.bf16.mxu1 %v1716_v2  ;;  %1504 = vmatprep.subr.bf16.mxu0 %v1718_v4  ;;  %v1721_v7 = vld [vmem:[%s2223_s1 + $0x88] sm:$0xff]   ;;  %v1725_v11 = vld [vmem:[%s2223_s1 + $0x90] sm:$0xff]  }
   0x5   :  { %1567 = vmatpush3.bf16.msra.mxu1 %v1717_v3  ;;  %v1726_v12 = vld [vmem:[%s2223_s1 + $0x58] sm:$0xff]   ;;  %v1730_v16 = vld [vmem:[%s2223_s1 + $0x60] sm:$0xff]   ;;  %v1734_v20 = vld [vmem:[%s2223_s1 + $0x68] sm:$0xff]  }
   0x6   :  { %1568 = vmatprep.subr.bf16.mxu1 %v1720_v6  ;;  %v1727_v13 = vld [vmem:[%s2223_s1 + $0x18] sm:$0xff]   ;;  %v1731_v17 = vld [vmem:[%s2223_s1 + $0x20] sm:$0xff]   ;;  %v1735_v21 = vld [vmem:[%s2223_s1 + $0x28] sm:$0xff]  }
   0x7   :  { %1505 = vmatpush3.bf16.msra.mxu0 %v1719_v5  ;;  %v1728_v14 = vld [vmem:[%s2223_s1 + $0xd8] sm:$0xff]   ;;  %v1732_v18 = vld [vmem:[%s2223_s1 + $0xe0] sm:$0xff]   ;;  %v1736_v22 = vld [vmem:[%s2223_s1 + $0xe8] sm:$0xff]  }
   0x8   :  { %1506 = vmatprep.subr.bf16.mxu0 %v1722_v8  ;;  %v1729_v15 = vld [vmem:[%s2223_s1 + $0x98] sm:$0xff]   ;;  %v1733_v19 = vld [vmem:[%s2223_s1 + $0xa0] sm:$0xff]   ;;  %v1737_v23 = vld [vmem:[%s2223_s1 + $0xa8] sm:$0xff]  }
   0x9   :  { %1569 = vmatpush3.bf16.msra.mxu1 %v1721_v7  ;;  %v1738_v24 = vld [vmem:[%s2223_s1 + $0x70] sm:$0xff]   ;;  %v1742_v28 = vld [vmem:[%s2223_s1 + $0x78] sm:$0xff]   ;;  %v1749_v34 = vld [vmem:[%s2223_s1 + $0x100] sm:$0xff]  }
   0xa   :  { %1570 = vmatprep.subr.bf16.mxu1 %v1724_v10  ;;  %v1739_v25 = vld [vmem:[%s2223_s1 + $0x30] sm:$0xff]   ;;  %v1743_v29 = vld [vmem:[%s2223_s1 + $0x38] sm:$0xff]   ;;  %v1752_v36 = vld [vmem:[%s2224_s0 + $0xc] ss:$20 sps:$4 sm:$0xff]  }
   0xb   :  { %1507 = vmatpush3.bf16.msra.mxu0 %v1723_v9  ;;  %v1740_v26 = vld [vmem:[%s2223_s1 + $0xf0] sm:$0xff]   ;;  %v1744_v30 = vld [vmem:[%s2223_s1 + $0xf8] sm:$0xff]   ;;  %v1753_v37 = vld [vmem:[%s2224_s0 + $0x2c] ss:$20 sps:$4 sm:$0xff]   ;;  %720 = vmatprep.mubr.bf16.mxu1 %v1752_v36 }
   0xc   :  { %1508 = vmatprep.subr.bf16.mxu0 %v1726_v12  ;;  %v1741_v27 = vld [vmem:[%s2223_s1 + $0xb0] sm:$0xff]   ;;  %v1747_v32 = vld [vmem:[%s2224_s0 + $0x4] ss:$20 sps:$4 sm:$0xff]   ;;  %v1750_v35 = vld [vmem:[%s2224_s0 + $0x8] ss:$20 sps:$4 sm:$0xff]  }
   0xd   :  { %1571 = vmatpush3.bf16.msra.mxu1 %v1725_v11  ;;  %v1745_v31 = vld [vmem:[%s2224_s0] ss:$20 sps:$4 sm:$0xff]   ;;  %v1748_v33 = vld [vmem:[%s2223_s1 + $0xb8] sm:$0xff]   ;;  %623 = vmatprep.mubr.bf16.mxu0 %v1747_v32  ;;  %v1762_v41 = vld [vmem:[%s2223_s1 + $0x108] sm:$0xff]  }
   0xe   :  { %1572 = vmatprep.subr.bf16.mxu1 %v1728_v14  ;;  %v1756_v38 = vld [vmem:[%s2224_s0 + $0x34] ss:$20 sps:$4 sm:$0xff]   ;;  %v1758_v42 = vld [vmem:[%s2224_s0 + $0x30] ss:$20 sps:$4 sm:$0xff]   ;;  %v1765_v47 = vld [vmem:[%s2224_s0 + $0x58] ss:$20 sps:$4 sm:$0xff]  }
   0xf   :  { %1509 = vmatpush3.bf16.msra.mxu0 %v1727_v13  ;;  %v1755_v39 = vld [vmem:[%s2224_s0 + $0x28] ss:$20 sps:$4 sm:$0xff]   ;;  %v1775_v44 = vld [vmem:[%s2223_s1 + $0x110] sm:$0xff]   ;;  %v1769_v48 = vld [vmem:[%s2224_s0 + $0x84] ss:$20 sps:$4 sm:$0xff]  }
  0x10   :  { %1510 = vmatprep.subr.bf16.mxu0 %v1730_v16  ;;  %v1759_v40 = vld [vmem:[%s2224_s0 + $0x54] ss:$20 sps:$4 sm:$0xff]   ;;  %v1763_v43 = vld [vmem:[%s2224_s0 + $0x5c] ss:$20 sps:$4 sm:$0xff]   ;;  %v1768_v50 = vld [vmem:[%s2224_s0 + $0x78] ss:$20 sps:$4 sm:$0xff]  }
  0x11   :  { %1573 = vmatpush3.bf16.msra.mxu1 %v1729_v15  ;;  %v1761_v45 = vld [vmem:[%s2224_s0 + $0x50] ss:$20 sps:$4 sm:$0xff]   ;;  %v1788_v49 = vld [vmem:[%s2223_s1 + $0x118] sm:$0xff]   ;;  %v1771_v52 = vld [vmem:[%s2224_s0 + $0x80] ss:$20 sps:$4 sm:$0xff]  }
  0x12   :  { %1574 = vmatprep.subr.bf16.mxu1 %v1732_v18  ;;  %v1766_v46 = vld [vmem:[%s2224_s0 + $0x7c] ss:$20 sps:$4 sm:$0xff]   ;;  %v1772_v51 = vld [vmem:[%s2224_s0 + $0xa4] ss:$20 sps:$4 sm:$0xff]   ;;  %v1776_v53 = vld [vmem:[%s2224_s0 + $0xac] ss:$20 sps:$4 sm:$0xff]  }
  0x13   :  { %1511 = vmatpush3.bf16.msra.mxu0 %v1731_v17  ;;  %v1774_v54 = vld [vmem:[%s2224_s0 + $0xa0] ss:$20 sps:$4 sm:$0xff]   ;;  %v1778_v56 = vld [vmem:[%s2224_s0 + $0xa8] ss:$20 sps:$4 sm:$0xff]   ;;  %v1784_v60 = vld [vmem:[%s2224_s0 + $0xd0] ss:$20 sps:$4 sm:$0xff]  }
  0x14   :  { %1512 = vmatprep.subr.bf16.mxu0 %v1734_v20  ;;  %v1779_v55 = vld [vmem:[%s2224_s0 + $0xcc] ss:$20 sps:$4 sm:$0xff]   ;;  %v1782_v57 = vld [vmem:[%s2224_s0 + $0xd4] ss:$20 sps:$4 sm:$0xff]   ;;  %v1789_v61 = vld [vmem:[%s2224_s0 + $0xfc] ss:$20 sps:$4 sm:$0xff]  }
  0x15   :  { %1575 = vmatpush3.bf16.msra.mxu1 %v1733_v19  ;;  %v1781_v58 = vld [vmem:[%s2224_s0 + $0xc8] ss:$20 sps:$4 sm:$0xff]   ;;  %v1787_v62 = vld [vmem:[%s2224_s0 + $0xf0] ss:$20 sps:$4 sm:$0xff]   ;;  %v1791_v0 = vld [vmem:[%s2224_s0 + $0xf8] ss:$20 sps:$4 sm:$0xff]  }
  0x16   :  { %1576 = vmatprep.subr.bf16.mxu1 %v1736_v22  ;;  %v1785_v59 = vld [vmem:[%s2224_s0 + $0xf4] ss:$20 sps:$4 sm:$0xff]   ;;  %v1792_v63 = vld [vmem:[%s2224_s0 + $0x11c] ss:$20 sps:$4 sm:$0xff]   ;;  %v1795_v1 = vld [vmem:[%s2224_s0 + $0x124] ss:$20 sps:$4 sm:$0xff]  }
  0x17   :  { %1513 = vmatpush3.bf16.msra.mxu0 %v1735_v21  ;;  %v1794_v2 = vld [vmem:[%s2224_s0 + $0x118] ss:$20 sps:$4 sm:$0xff]   ;;  %v1798_v3 = vld [vmem:[%s2224_s0 + $0x10] ss:$20 sps:$4 sm:$0xff]   ;;  %v1797_v4 = vld [vmem:[%s2224_s0 + $0x120] ss:$20 sps:$4 sm:$0xff]  }
  0x18   :  { %1514 = vmatprep.subr.bf16.mxu0 %v1738_v24  ;;  %v1799_v5 = vld [vmem:[%s2224_s0 + $0x38] ss:$20 sps:$4 sm:$0xff]   ;;  %v1800_v6 = vld [vmem:[%s2224_s0 + $0x60] ss:$20 sps:$4 sm:$0xff]   ;;  %v1801_v7 = vld [vmem:[%s2224_s0 + $0x88] ss:$20 sps:$4 sm:$0xff]  }
  0x19   :  { %1577 = vmatpush3.bf16.msra.mxu1 %v1737_v23  ;;  %v1802_v8 = vld [vmem:[%s2224_s0 + $0xb0] ss:$20 sps:$4 sm:$0xff]   ;;  %v1803_v9 = vld [vmem:[%s2224_s0 + $0xd8] ss:$20 sps:$4 sm:$0xff]   ;;  %v1804_v10 = vld [vmem:[%s2224_s0 + $0x100] ss:$20 sps:$4 sm:$0xff]  }
  0x1a   :  { %1578 = vmatprep.subr.bf16.mxu1 %v1740_v26  ;;  %v1805_v11 = vld [vmem:[%s2224_s0 + $0x128] ss:$20 sps:$4 sm:$0xff]   ;;  %v1806_v12 = vld [vmem:[%s2225_s3] sm:$0xff]   ;;  %v1808_v14 = vld [vmem:[%s2225_s3 + $0x10] sm:$0xff]  }
  0x1b   :  { %1515 = vmatpush3.bf16.msra.mxu0 %v1739_v25  ;;  %v1807_v13 = vld [vmem:[%s2225_s3 + $0x8] sm:$0xff]   ;;  %v1809_v15 = vld [vmem:[%s2225_s3 + $0x18] sm:$0xff]   ;;  %v1810_v16 = vld [vmem:[%s2225_s3 + $0x20] sm:$0xff]  }
  0x1c   :  { %1516 = vmatprep.subr.bf16.mxu0 %v1742_v28  ;;  %v1811_v17 = vld [vmem:[%s2225_s3 + $0x28] sm:$0xff]   ;;  %v1812_v18 = vld [vmem:[%s2225_s3 + $0x30] sm:$0xff]   ;;  %v1813_v19 = vld [vmem:[%s2225_s3 + $0x38] sm:$0xff]  }
  0x1d   :  { %1579 = vmatpush3.bf16.msra.mxu1 %v1741_v27  ;;  %v2112_v21 = vld [vmem:[%s2226_s2] ss:$0 sm:$0xff] }
  0x1e   :  { %1580 = vmatprep.subr.bf16.mxu1 %v1744_v30 }
  0x1f   :  { %1517 = vmatpush3.bf16.msra.mxu0 %v1743_v29 }
  0x20   :  { %1658 = vmatprep.subr.bf16.mxu0 %v1749_v34 }
  0x21   :  { %1581 = vmatpush3.bf16.msra.mxu1 %v1748_v33 }
  0x22   :  { %624 = vmatmul.mubr.bf16.vlgmr.msra.gmra.mrb[0].mxu0 %v1745_v31  ;;  %1682 = vmatprep.subr.bf16.mxu1 %v1806_v12 }
  0x23   :  { %1659 = vmatpush3.bf16.msra.mxu0 %v1749_v34  ;;  %631 = vmatprep.mubr.bf16.mxu0 %v1753_v37 }
  0x24   :  { %721 = vmatmul.mubr.bf16.vlgmr.msra.gmra.mrb[0].mxu1 %v1750_v35  ;;  %1660 = vmatprep.subr.bf16.mxu0 %v1762_v41 }
  0x25   :  { %728 = vmatprep.mubr.bf16.mxu1 %v1756_v38  ;;  %1683 = vmatpush3.bf16.msra.mxu1 %v1806_v12 }
  0x26   :  { %1684 = vmatprep.subr.bf16.mxu1 %v1807_v13 }
  0x27   :  { %1661 = vmatpush3.bf16.msra.mxu0 %v1762_v41 }
  0x28   :  { %1662 = vmatprep.subr.bf16.mxu0 %v1775_v44 }
  0x29   :  { %1685 = vmatpush3.bf16.msra.mxu1 %v1807_v13 }
  0x2a   :  { %632 = vmatmul.mubr.bf16.gmra.mrb[4].mxu0 %v1755_v39  ;;  %1686 = vmatprep.subr.bf16.mxu1 %v1808_v14 }
  0x2b   :  { %639 = vmatprep.mubr.bf16.mxu0 %v1759_v40  ;;  %1663 = vmatpush3.bf16.msra.mxu0 %v1775_v44 }
  0x2c   :  { %729 = vmatmul.mubr.bf16.gmra.mrb[4].mxu1 %v1758_v42  ;;  %1664 = vmatprep.subr.bf16.mxu0 %v1788_v49 }
  0x2d   :  { %736 = vmatprep.mubr.bf16.mxu1 %v1763_v43  ;;  %1687 = vmatpush3.bf16.msra.mxu1 %v1808_v14 }
  0x2e   :  { %1688 = vmatprep.subr.bf16.mxu1 %v1809_v15 }
  0x2f   :  { %1665 = vmatpush3.bf16.msra.mxu0 %v1788_v49 }
  0x31   :  { %1689 = vmatpush3.bf16.msra.mxu1 %v1809_v15 }
  0x32   :  { %640 = vmatmul.mubr.bf16.gmra.mrb[8].mxu0 %v1761_v45  ;;  %1690 = vmatprep.subr.bf16.mxu1 %v1810_v16 }
  0x33   :  { %647 = vmatprep.mubr.bf16.mxu0 %v1766_v46 }
  0x34   :  { %737 = vmatmul.mubr.bf16.gmra.mrb[8].mxu1 %v1765_v47 }
  0x35   :  { %744 = vmatprep.mubr.bf16.mxu1 %v1769_v48  ;;  %1691 = vmatpush3.bf16.msra.mxu1 %v1810_v16 }
  0x36   :  { %1692 = vmatprep.subr.bf16.mxu1 %v1811_v17 }
  0x39   :  { %1693 = vmatpush3.bf16.msra.mxu1 %v1811_v17 }
  0x3a   :  { %648 = vmatmul.mubr.bf16.gmra.mrb[12].mxu0 %v1768_v50  ;;  %1694 = vmatprep.subr.bf16.mxu1 %v1812_v18 }
  0x3b   :  { %655 = vmatprep.mubr.bf16.mxu0 %v1772_v51 }
  0x3c   :  { %745 = vmatmul.mubr.bf16.gmra.mrb[12].mxu1 %v1771_v52 }
  0x3d   :  { %752 = vmatprep.mubr.bf16.mxu1 %v1776_v53  ;;  %1695 = vmatpush3.bf16.msra.mxu1 %v1812_v18 }
  0x3e   :  { %1696 = vmatprep.subr.bf16.mxu1 %v1813_v19 }
  0x41   :  { %1697 = vmatpush3.bf16.msra.mxu1 %v1813_v19 }
  0x42   :  { %656 = vmatmul.mubr.bf16.gmra.mrb[16].mxu0 %v1774_v54 }
  0x43   :  { %663 = vmatprep.mubr.bf16.mxu0 %v1779_v55 }
  0x44   :  { %753 = vmatmul.mubr.bf16.gmra.mrb[16].mxu1 %v1778_v56 }
  0x45   :  { %760 = vmatprep.mubr.bf16.mxu1 %v1782_v57 }
  0x4a   :  { %664 = vmatmul.mubr.bf16.gmra.mrb[20].mxu0 %v1781_v58 }
  0x4b   :  { %671 = vmatprep.mubr.bf16.mxu0 %v1785_v59 }
  0x4c   :  { %761 = vmatmul.mubr.bf16.gmra.mrb[20].mxu1 %v1784_v60 }
  0x4d   :  { %768 = vmatprep.mubr.bf16.mxu1 %v1789_v61 }
  0x52   :  { %672 = vmatmul.mubr.bf16.gmra.mrb[24].mxu0 %v1787_v62 }
  0x53   :  { %679 = vmatprep.mubr.bf16.mxu0 %v1792_v63 }
  0x54   :  { %769 = vmatmul.mubr.bf16.gmra.mrb[24].mxu1 %v1791_v0 }
  0x55   :  { %776 = vmatprep.mubr.bf16.mxu1 %v1795_v1 }
  0x5a   :  { %680 = vmatmul.mubr.bf16.gmra.mrb[28].mxu0 %v1794_v2 }
  0x5b   :  { %1666 = vmatprep.mubr.msk.bf16.mxu0 %vm566_vm0, %v1798_v3 }
  0x5c   :  { %777 = vmatmul.mubr.bf16.gmra.mrb[28].mxu1 %v1797_v4 }
  0x62   :  { %1667 = vmatmul.mubr.msk.bf16.vlgmr.msra.gmra.mrb[32].mxu0 %vm566_vm0, %v1799_v5 }
  0x63   :  { %1670 = vmatprep.mubr.msk.bf16.mxu0 %vm566_vm0, %v1800_v6 }
  0x6a   :  { %1671 = vmatmul.mubr.msk.bf16.gmra.mrb[36].mxu0 %vm566_vm0, %v1801_v7 }
  0x6b   :  { %1674 = vmatprep.mubr.msk.bf16.mxu0 %vm566_vm0, %v1802_v8 }
  0x72   :  { %1675 = vmatmul.mubr.msk.bf16.gmra.mrb[40].mxu0 %vm566_vm0, %v1803_v9 }
  0x73   :  { %1678 = vmatprep.mubr.msk.bf16.mxu0 %vm566_vm0, %v1804_v10 }
  0x7a   :  { %1679 = vmatmul.mubr.msk.bf16.gmra.mrb[44].mxu0 %vm566_vm0, %v1805_v11 }
  0xf5   :  { %v1518_v20 = vpop.f32.mrb[0].mxu0 }
  0xf6   :  { %v1519_v22 = vpop.f32.mrb[1].mxu0 }
  0xf7   :  { %v1520_v23 = vadd.f32 %v1519_v22, %v1518_v20  ;;  %v1521_v24 = vpop.f32.mrb[2].mxu0  ;;  %v1582_v25 = vpop.f32.mrb[0].mxu1 }
  0xf8   :  { %v1522_v26 = vpop.f32.mrb[3].mxu0  ;;  %v1583_v29 = vpop.f32.mrb[1].mxu1 }
  0xf9   :  { %v626_v27 = vadd.f32 %v1520_v23, %v2112_v21  ;;  %v1523_v28 = vadd.f32 %v1522_v26, %v1521_v24  ;;  %v1584_v30 = vadd.f32 %v1583_v29, %v1582_v25  ;;  %v1585_v31 = vpop.f32.mrb[2].mxu1 }
  0xfa   :  { %v1586_v33 = vpop.f32.mrb[3].mxu1 }
  0xfb   :  { %v629_v32 = vadd.f32 %v1523_v28, %v2112_v21  ;;  %v1587_v34 = vadd.f32 %v1586_v33, %v1585_v31  ;;  %v2116_v35 = vadd.f32 %v1584_v30, %v626_v27 }
  0xfd   :  { %v1524_v36 = vpop.f32.mrb[4].mxu0  ;;  %v2118_v38 = vadd.f32 %v1587_v34, %v629_v32 }
  0xfe   :  { %v1525_v37 = vpop.f32.mrb[5].mxu0 }
  0xff   :  { %v1526_v39 = vadd.f32 %v1525_v37, %v1524_v36  ;;  %v1527_v40 = vpop.f32.mrb[6].mxu0  ;;  %v1588_v41 = vpop.f32.mrb[4].mxu1 }
 0x100   :  { %v1528_v42 = vpop.f32.mrb[7].mxu0  ;;  %v1589_v45 = vpop.f32.mrb[5].mxu1 }
 0x101   :  { %v634_v43 = vadd.f32 %v1526_v39, %v2112_v21  ;;  %v1529_v44 = vadd.f32 %v1528_v42, %v1527_v40  ;;  %v1590_v46 = vadd.f32 %v1589_v45, %v1588_v41  ;;  %v1591_v47 = vpop.f32.mrb[6].mxu1 }
 0x102   :  { %v1592_v49 = vpop.f32.mrb[7].mxu1 }
 0x103   :  { %v637_v48 = vadd.f32 %v1529_v44, %v2112_v21  ;;  %v1593_v50 = vadd.f32 %v1592_v49, %v1591_v47  ;;  %v2122_v51 = vadd.f32 %v1590_v46, %v634_v43 }
 0x105   :  { %v1530_v52 = vpop.f32.mrb[8].mxu0  ;;  %v2124_v54 = vadd.f32 %v1593_v50, %v637_v48 }
 0x106   :  { %v1531_v53 = vpop.f32.mrb[9].mxu0 }
 0x107   :  { %v1532_v55 = vadd.f32 %v1531_v53, %v1530_v52  ;;  %v1533_v56 = vpop.f32.mrb[10].mxu0  ;;  %v1594_v57 = vpop.f32.mrb[8].mxu1 }
 0x108   :  { %v1534_v58 = vpop.f32.mrb[11].mxu0  ;;  %v1595_v61 = vpop.f32.mrb[9].mxu1 }
 0x109   :  { %v642_v59 = vadd.f32 %v1532_v55, %v2112_v21  ;;  %v1535_v60 = vadd.f32 %v1534_v58, %v1533_v56  ;;  %v1596_v62 = vadd.f32 %v1595_v61, %v1594_v57  ;;  %v1597_v63 = vpop.f32.mrb[10].mxu1 }
 0x10a   :  { %v1598_v1 = vpop.f32.mrb[11].mxu1 }
 0x10b   :  { %v645_v0 = vadd.f32 %v1535_v60, %v2112_v21  ;;  %v1599_v2 = vadd.f32 %v1598_v1, %v1597_v63  ;;  %v2128_v3 = vadd.f32 %v1596_v62, %v642_v59 }
 0x10d   :  { %v1536_v4 = vpop.f32.mrb[12].mxu0  ;;  %v2130_v6 = vadd.f32 %v1599_v2, %v645_v0 }
 0x10e   :  { %v1537_v5 = vpop.f32.mrb[13].mxu0 }
 0x10f   :  { %v1538_v7 = vadd.f32 %v1537_v5, %v1536_v4  ;;  %v1539_v8 = vpop.f32.mrb[14].mxu0  ;;  %v1600_v9 = vpop.f32.mrb[12].mxu1 }
 0x110   :  { %v1540_v10 = vpop.f32.mrb[15].mxu0  ;;  %v1601_v13 = vpop.f32.mrb[13].mxu1 }
 0x111   :  { %v650_v11 = vadd.f32 %v1538_v7, %v2112_v21  ;;  %v1541_v12 = vadd.f32 %v1540_v10, %v1539_v8  ;;  %v1602_v14 = vadd.f32 %v1601_v13, %v1600_v9  ;;  %v1603_v15 = vpop.f32.mrb[14].mxu1 }
 0x112   :  { %v1604_v17 = vpop.f32.mrb[15].mxu1 }
 0x113   :  { %v653_v16 = vadd.f32 %v1541_v12, %v2112_v21  ;;  %v1605_v18 = vadd.f32 %v1604_v17, %v1603_v15  ;;  %v2134_v19 = vadd.f32 %v1602_v14, %v650_v11 }
 0x115   :  { %v1542_v20 = vpop.f32.mrb[16].mxu0  ;;  %v2136_v23 = vadd.f32 %v1605_v18, %v653_v16 }
 0x116   :  { %v1543_v22 = vpop.f32.mrb[17].mxu0 }
 0x117   :  { %v1544_v24 = vadd.f32 %v1543_v22, %v1542_v20  ;;  %v1545_v25 = vpop.f32.mrb[18].mxu0  ;;  %v1606_v26 = vpop.f32.mrb[16].mxu1 }
 0x118   :  { %v1546_v27 = vpop.f32.mrb[19].mxu0  ;;  %v1607_v30 = vpop.f32.mrb[17].mxu1 }
 0x119   :  { %v658_v28 = vadd.f32 %v1544_v24, %v2112_v21  ;;  %v1547_v29 = vadd.f32 %v1546_v27, %v1545_v25  ;;  %v1608_v31 = vadd.f32 %v1607_v30, %v1606_v26  ;;  %v1609_v32 = vpop.f32.mrb[18].mxu1 }
 0x11a   :  { %v1610_v34 = vpop.f32.mrb[19].mxu1 }
 0x11b   :  { %v661_v33 = vadd.f32 %v1547_v29, %v2112_v21  ;;  %v1611_v36 = vadd.f32 %v1610_v34, %v1609_v32  ;;  %v2140_v37 = vadd.f32 %v1608_v31, %v658_v28 }
 0x11d   :  { %v1548_v39 = vpop.f32.mrb[20].mxu0  ;;  %v2142_v41 = vadd.f32 %v1611_v36, %v661_v33 }
 0x11e   :  { %v1549_v40 = vpop.f32.mrb[21].mxu0 }
 0x11f   :  { %v1550_v42 = vadd.f32 %v1549_v40, %v1548_v39  ;;  %v1551_v43 = vpop.f32.mrb[22].mxu0  ;;  %v1612_v44 = vpop.f32.mrb[20].mxu1 }
 0x120   :  { %v1552_v45 = vpop.f32.mrb[23].mxu0  ;;  %v1613_v48 = vpop.f32.mrb[21].mxu1 }
 0x121   :  { %v666_v46 = vadd.f32 %v1550_v42, %v2112_v21  ;;  %v1553_v47 = vadd.f32 %v1552_v45, %v1551_v43  ;;  %v1614_v49 = vadd.f32 %v1613_v48, %v1612_v44  ;;  %v1615_v50 = vpop.f32.mrb[22].mxu1 }
 0x122   :  { %v1616_v53 = vpop.f32.mrb[23].mxu1 }
 0x123   :  { %v669_v52 = vadd.f32 %v1553_v47, %v2112_v21  ;;  %v1617_v55 = vadd.f32 %v1616_v53, %v1615_v50  ;;  %v2146_v56 = vadd.f32 %v1614_v49, %v666_v46 }
 0x125   :  { %v1554_v57 = vpop.f32.mrb[24].mxu0  ;;  %v2148_v59 = vadd.f32 %v1617_v55, %v669_v52 }
 0x126   :  { %v1555_v58 = vpop.f32.mrb[25].mxu0 }
 0x127   :  { %v1556_v60 = vadd.f32 %v1555_v58, %v1554_v57  ;;  %v1557_v61 = vpop.f32.mrb[26].mxu0  ;;  %v1618_v62 = vpop.f32.mrb[24].mxu1 }
 0x128   :  { %v1558_v63 = vpop.f32.mrb[27].mxu0  ;;  %v1619_v2 = vpop.f32.mrb[25].mxu1 }
 0x129   :  { %v674_v0 = vadd.f32 %v1556_v60, %v2112_v21  ;;  %v1559_v1 = vadd.f32 %v1558_v63, %v1557_v61  ;;  %v1620_v4 = vadd.f32 %v1619_v2, %v1618_v62  ;;  %v1621_v5 = vpop.f32.mrb[26].mxu1 }
 0x12a   :  { %v1622_v8 = vpop.f32.mrb[27].mxu1 }
 0x12b   :  { %v677_v7 = vadd.f32 %v1559_v1, %v2112_v21  ;;  %v1623_v9 = vadd.f32 %v1622_v8, %v1621_v5  ;;  %v2152_v10 = vadd.f32 %v1620_v4, %v674_v0 }
 0x12d   :  { %v1560_v11 = vpop.f32.mrb[28].mxu0  ;;  %v2154_v13 = vadd.f32 %v1623_v9, %v677_v7 }
 0x12e   :  { %v1561_v12 = vpop.f32.mrb[29].mxu0 }
 0x12f   :  { %v1562_v14 = vadd.f32 %v1561_v12, %v1560_v11  ;;  %v1563_v15 = vpop.f32.mrb[30].mxu0  ;;  %v1624_v16 = vpop.f32.mrb[28].mxu1 }
 0x130   :  { %v1564_v17 = vpop.f32.mrb[31].mxu0  ;;  %v1625_v22 = vpop.f32.mrb[29].mxu1 }
 0x131   :  { %v682_v18 = vadd.f32 %v1562_v14, %v2112_v21  ;;  %v1565_v20 = vadd.f32 %v1564_v17, %v1563_v15  ;;  %v1626_v24 = vadd.f32 %v1625_v22, %v1624_v16  ;;  %v1627_v25 = vpop.f32.mrb[30].mxu1 }
 0x132   :  { %v1628_v27 = vpop.f32.mrb[31].mxu1 }
 0x133   :  { %v685_v26 = vadd.f32 %v1565_v20, %v2112_v21  ;;  %v1629_v28 = vadd.f32 %v1628_v27, %v1627_v25  ;;  %v779_v29 = vadd.f32 %v1626_v24, %v682_v18 }
 0x135   :  { %v1668_v30 = vpop.f32.mrb[32].mxu0  ;;  %v782_v33 = vadd.f32 %v1629_v28, %v685_v26 }
 0x136   :  { %v828_v31 = vadd.f32 %v1668_v30, %v2122_v51  ;;  %v819_v32 = vpop.f32.mrb[33].mxu0 }
 0x137   :  { %v820_v34 = vadd.f32 %v819_v32, %v2116_v35  ;;  %v1669_v36 = vpop.f32.mrb[34].mxu0 }
 0x138   :  { %v831_v39 = vadd.f32 %v1669_v36, %v2124_v54  ;;  %v822_v40 = vpop.f32.mrb[35].mxu0  ;;  %v884_v43 = vmax.f32 %v828_v31, 0.0 }
 0x139   :  { %v823_v42 = vadd.f32 %v822_v40, %v2118_v38  ;;  %v882_v45 = vmax.f32 %v820_v34, 0.0 }
 0x13a   :  { %v885_v44 = vmax.f32 %v831_v39, 0.0 }
 0x13b   :  { %v883_v21 = vmax.f32 %v823_v42, 0.0 }
 0x13c   :  { %v899_v46 = vpack.c.bf16 %v885_v44, %v884_v43 }
 0x13d   :  { %v898_v47 = vpack.c.bf16 %v883_v21, %v882_v45  ;;  %v1672_v48 = vpop.f32.mrb[36].mxu0 }
 0x13e   :  { %1488 = vst [vmem:[%s2227_s5 + $0x8] sm:$0xff] %v899_v46   ;;  %v844_v51 = vadd.f32 %v1672_v48, %v2134_v19  ;;  %v835_v35 = vpop.f32.mrb[37].mxu0 }
 0x13f   :  { %1412 = vst [vmem:[%s2227_s5] sm:$0xff] %v898_v47   ;;  %v836_v38 = vadd.f32 %v835_v35, %v2128_v3  ;;  %v1673_v54 = vpop.f32.mrb[38].mxu0  ;;  %1698 = vmatprep.mubr.bf16.mxu1 %v898_v47 }
 0x140   :  { %v847_v49 = vadd.f32 %v1673_v54, %v2136_v23  ;;  %v838_v50 = vpop.f32.mrb[39].mxu0  ;;  %1699 = vmatmul.mubr.bf16.vlgmr.msra.gmra.mrb[32].mxu1 %v899_v46  ;;  %v888_v53 = vmax.f32 %v844_v51, 0.0 }
 0x141   :  { %v839_v52 = vadd.f32 %v838_v50, %v2130_v6  ;;  %v886_v57 = vmax.f32 %v836_v38, 0.0 }
 0x142   :  { %v889_v55 = vmax.f32 %v847_v49, 0.0 }
 0x143   :  { %v887_v58 = vmax.f32 %v839_v52, 0.0 }
 0x144   :  { %v901_v19 = vpack.c.bf16 %v889_v55, %v888_v53 }
 0x145   :  { %v900_v60 = vpack.c.bf16 %v887_v58, %v886_v57  ;;  %v1676_v61 = vpop.f32.mrb[40].mxu0 }
 0x146   :  { %1490 = vst [vmem:[%s2227_s5 + $0x18] sm:$0xff] %v901_v19   ;;  %v860_v3 = vadd.f32 %v1676_v61, %v2146_v56  ;;  %v851_v62 = vpop.f32.mrb[41].mxu0 }
 0x147   :  { %1489 = vst [vmem:[%s2227_s5 + $0x10] sm:$0xff] %v900_v60   ;;  %v852_v6 = vadd.f32 %v851_v62, %v2140_v37  ;;  %v1677_v23 = vpop.f32.mrb[42].mxu0  ;;  %1702 = vmatprep.mubr.bf16.mxu1 %v900_v60 }
 0x148   :  { %v863_v63 = vadd.f32 %v1677_v23, %v2148_v59  ;;  %v854_v0 = vpop.f32.mrb[43].mxu0  ;;  %1703 = vmatmul.mubr.bf16.gmra.mrb[36].mxu1 %v901_v19  ;;  %v892_v2 = vmax.f32 %v860_v3, 0.0 }
 0x149   :  { %v855_v1 = vadd.f32 %v854_v0, %v2142_v41  ;;  %v890_v5 = vmax.f32 %v852_v6, 0.0 }
 0x14a   :  { %v893_v4 = vmax.f32 %v863_v63, 0.0 }
 0x14b   :  { %v891_v7 = vmax.f32 %v855_v1, 0.0 }
 0x14c   :  { %v903_v56 = vpack.c.bf16 %v893_v4, %v892_v2 }
 0x14d   :  { %v902_v8 = vpack.c.bf16 %v891_v7, %v890_v5  ;;  %v1680_v9 = vpop.f32.mrb[44].mxu0 }
 0x14e   :  { %1492 = vst [vmem:[%s2227_s5 + $0x28] sm:$0xff] %v903_v56   ;;  %v876_v37 = vadd.f32 %v1680_v9, %v779_v29  ;;  %v867_v11 = vpop.f32.mrb[45].mxu0 }
 0x14f   :  { %1491 = vst [vmem:[%s2227_s5 + $0x20] sm:$0xff] %v902_v8   ;;  %v868_v59 = vadd.f32 %v867_v11, %v2152_v10  ;;  %v1681_v41 = vpop.f32.mrb[46].mxu0  ;;  %1706 = vmatprep.mubr.bf16.mxu1 %v902_v8  ;;  %v1351_v10 = vld [vmem:[%s2228_s4] ss:$0 sm:$0xff] }
 0x150   :  { %v879_v12 = vadd.f32 %v1681_v41, %v782_v33  ;;  %v870_v14 = vpop.f32.mrb[47].mxu0  ;;  %1707 = vmatmul.mubr.bf16.gmra.mrb[40].mxu1 %v903_v56  ;;  %v896_v16 = vmax.f32 %v876_v37, 0.0 }
 0x151   :  { %v871_v15 = vadd.f32 %v870_v14, %v2154_v13  ;;  %v894_v18 = vmax.f32 %v868_v59, 0.0 }
 0x152   :  { %v897_v17 = vmax.f32 %v879_v12, 0.0 }
 0x153   :  { %v895_v20 = vmax.f32 %v871_v15, 0.0 }
 0x154   :  { %v905_v22 = vpack.c.bf16 %v897_v17, %v896_v16 }
 0x155   :  { %v904_v24 = vpack.c.bf16 %v895_v20, %v894_v18 }
 0x156   :  { %1494 = vst [vmem:[%s2227_s5 + $0x38] sm:$0xff] %v905_v22  }
 0x157   :  { %1493 = vst [vmem:[%s2227_s5 + $0x30] sm:$0xff] %v904_v24   ;;  %1710 = vmatprep.mubr.bf16.mxu1 %v904_v24 }
 0x158   :  { %1711 = vmatmul.mubr.bf16.gmra.mrb[44].mxu1 %v905_v22 }
 0x213   :  { %v1700_v13 = vpop.f32.mrb[32].mxu1 }
 0x214   :  { %v1092_v25 = vadd.f32 %v1700_v13, %v1351_v10  ;;  %v1083_v26 = vpop.f32.mrb[33].mxu1 }
 0x215   :  { %v1084_v27 = vadd.f32 %v1351_v10, %v1083_v26  ;;  %v1701_v28 = vpop.f32.mrb[34].mxu1 }
 0x216   :  { %v1095_v29 = vadd.f32 %v1701_v28, %v1351_v10  ;;  %v1086_v30 = vpop.f32.mrb[35].mxu1  ;;  %v1148_v32 = vmax.f32 %v1092_v25, 0.0 }
 0x217   :  { %v1087_v31 = vadd.f32 %v1351_v10, %v1086_v30  ;;  %v1146_v34 = vmax.f32 %v1084_v27, 0.0 }
 0x218   :  { %v1149_v33 = vmax.f32 %v1095_v29, 0.0 }
 0x219   :  { %v1147_v36 = vmax.f32 %v1087_v31, 0.0 }
 0x21a   :  { %v1456_v39 = vpack.c.bf16 %v1149_v33, %v1148_v32 }
 0x21b   :  { %v1451_v40 = vpack.c.bf16 %v1147_v36, %v1146_v34  ;;  %v1704_v42 = vpop.f32.mrb[36].mxu1 }
 0x21c   :  { %1495 = vst [vmem:[%s2229_s6 + $0x8] sm:$0xff] %v1456_v39   ;;  %v1108_v43 = vadd.f32 %v1704_v42, %v1351_v10  ;;  %v1099_v44 = vpop.f32.mrb[37].mxu1 }
 0x21d   :  { %1452 = vst [vmem:[%s2229_s6] sm:$0xff] %v1451_v40   ;;  %v1100_v45 = vadd.f32 %v1351_v10, %v1099_v44  ;;  %v1705_v21 = vpop.f32.mrb[38].mxu1 }
 0x21e   :  { %v1111_v46 = vadd.f32 %v1705_v21, %v1351_v10  ;;  %v1102_v47 = vpop.f32.mrb[39].mxu1  ;;  %v1152_v51 = vmax.f32 %v1108_v43, 0.0 }
 0x21f   :  { %v1103_v48 = vadd.f32 %v1351_v10, %v1102_v47  ;;  %v1150_v38 = vmax.f32 %v1100_v45, 0.0 }
 0x220   :  { %v1153_v35 = vmax.f32 %v1111_v46, 0.0 }
 0x221   :  { %v1151_v54 = vmax.f32 %v1103_v48, 0.0 }
 0x222   :  { %v1466_v49 = vpack.c.bf16 %v1153_v35, %v1152_v51 }
 0x223   :  { %v1461_v50 = vpack.c.bf16 %v1151_v54, %v1150_v38  ;;  %v1708_v52 = vpop.f32.mrb[40].mxu1 }
 0x224   :  { %1497 = vst [vmem:[%s2229_s6 + $0x18] sm:$0xff] %v1466_v49   ;;  %v1124_v53 = vadd.f32 %v1708_v52, %v1351_v10  ;;  %v1115_v55 = vpop.f32.mrb[41].mxu1 }
 0x225   :  { %1496 = vst [vmem:[%s2229_s6 + $0x10] sm:$0xff] %v1461_v50   ;;  %v1116_v57 = vadd.f32 %v1351_v10, %v1115_v55  ;;  %v1709_v58 = vpop.f32.mrb[42].mxu1 }
 0x226   :  { %v1127_v19 = vadd.f32 %v1709_v58, %v1351_v10  ;;  %v1118_v60 = vpop.f32.mrb[43].mxu1  ;;  %v1156_v3 = vmax.f32 %v1124_v53, 0.0 }
 0x227   :  { %v1119_v61 = vadd.f32 %v1351_v10, %v1118_v60  ;;  %v1154_v6 = vmax.f32 %v1116_v57, 0.0 }
 0x228   :  { %v1157_v62 = vmax.f32 %v1127_v19, 0.0 }
 0x229   :  { %v1155_v23 = vmax.f32 %v1119_v61, 0.0 }
 0x22a   :  { %v1476_v63 = vpack.c.bf16 %v1157_v62, %v1156_v3 }
 0x22b   :  { %v1471_v0 = vpack.c.bf16 %v1155_v23, %v1154_v6  ;;  %v1712_v1 = vpop.f32.mrb[44].mxu1 }
 0x22c   :  { %1499 = vst [vmem:[%s2229_s6 + $0x28] sm:$0xff] %v1476_v63   ;;  %v1140_v2 = vadd.f32 %v1712_v1, %v1351_v10  ;;  %v1131_v4 = vpop.f32.mrb[45].mxu1 }
 0x22d   :  { %1498 = vst [vmem:[%s2229_s6 + $0x20] sm:$0xff] %v1471_v0   ;;  %v1132_v5 = vadd.f32 %v1351_v10, %v1131_v4  ;;  %v1713_v7 = vpop.f32.mrb[46].mxu1 }
 0x22e   :  { %v1143_v56 = vadd.f32 %v1713_v7, %v1351_v10  ;;  %v1134_v8 = vpop.f32.mrb[47].mxu1  ;;  %v1160_v37 = vmax.f32 %v1140_v2, 0.0 }
 0x22f   :  { %v1135_v9 = vadd.f32 %v1351_v10, %v1134_v8  ;;  %v1158_v59 = vmax.f32 %v1132_v5, 0.0 }
 0x230   :  { %v1161_v11 = vmax.f32 %v1143_v56, 0.0 }
 0x231   :  { %v1159_v41 = vmax.f32 %v1135_v9, 0.0 }
 0x232   :  { %v1486_v12 = vpack.c.bf16 %v1161_v11, %v1160_v37 }
 0x233   :  { %v1481_v14 = vpack.c.bf16 %v1159_v41, %v1158_v59 }
 0x234   :  { %1501 = vst [vmem:[%s2229_s6 + $0x38] sm:$0xff] %v1486_v12  }
 0x235   :  { %1500 = vst [vmem:[%s2229_s6 + $0x30] sm:$0xff] %v1481_v14  }

// kernel: detector_forward.10
= control target key start
LH: loop header
LB: loop body
LE: loop exit
PB: predicated region body
PF: predicated region fallthrough
CT: control target
= control target key end

     0   :  { %s2788_s1 = inlined_call_operand.vmem [shape: bf16[1152,128], index: 1, kind: input, shape index: {}]   ;;  %s2789_s0 = inlined_call_operand.vmem [shape: bf16[128,1152], index: 0, kind: input, shape index: {}]   ;;  %s2790_s2 = inlined_call_operand.vmem [shape: f32[1,128], index: 2, kind: input, shape index: {}]   ;;  %s2791_s3 = inlined_call_operand.vmem [shape: f32[128,128], index: 3, kind: output, shape index: {}]  }
   0x1   :  { %v2016_v0 = vld [vmem:[%s2788_s1 + $0x40] sm:$0xff]   ;;  %v2020_v4 = vld [vmem:[%s2788_s1 + $0x48] sm:$0xff]   ;;  %v2024_v8 = vld [vmem:[%s2788_s1 + $0x50] sm:$0xff]  }
   0x2   :  { %v2017_v1 = vld [vmem:[%s2788_s1 + $0xc0] sm:$0xff]   ;;  %1696 = vmatprep.subr.bf16.mxu0 %v2016_v0  ;;  %v2021_v5 = vld [vmem:[%s2788_s1 + $0xc8] sm:$0xff]   ;;  %v2025_v9 = vld [vmem:[%s2788_s1 + $0xd0] sm:$0xff]  }
   0x3   :  { %v2018_v2 = vld [vmem:[%s2788_s1] sm:$0xff]   ;;  %1760 = vmatprep.subr.bf16.mxu1 %v2017_v1  ;;  %v2022_v6 = vld [vmem:[%s2788_s1 + $0x8] sm:$0xff]   ;;  %v2026_v10 = vld [vmem:[%s2788_s1 + $0x10] sm:$0xff]  }
   0x4   :  { %v2019_v3 = vld [vmem:[%s2788_s1 + $0x80] sm:$0xff]   ;;  %1697 = vmatpush3.bf16.msra.mxu0 %v2018_v2  ;;  %v2023_v7 = vld [vmem:[%s2788_s1 + $0x88] sm:$0xff]   ;;  %v2027_v11 = vld [vmem:[%s2788_s1 + $0x90] sm:$0xff]  }
   0x5   :  { %1761 = vmatpush3.bf16.msra.mxu1 %v2019_v3  ;;  %1698 = vmatprep.subr.bf16.mxu0 %v2020_v4  ;;  %v2028_v12 = vld [vmem:[%s2788_s1 + $0x58] sm:$0xff]   ;;  %v2032_v16 = vld [vmem:[%s2788_s1 + $0x60] sm:$0xff]   ;;  %v2036_v20 = vld [vmem:[%s2788_s1 + $0x68] sm:$0xff]  }
   0x6   :  { %1762 = vmatprep.subr.bf16.mxu1 %v2021_v5  ;;  %v2029_v13 = vld [vmem:[%s2788_s1 + $0xd8] sm:$0xff]   ;;  %v2033_v17 = vld [vmem:[%s2788_s1 + $0xe0] sm:$0xff]   ;;  %v2037_v21 = vld [vmem:[%s2788_s1 + $0xe8] sm:$0xff]  }
   0x7   :  { %v2030_v14 = vld [vmem:[%s2788_s1 + $0x18] sm:$0xff]   ;;  %v2034_v18 = vld [vmem:[%s2788_s1 + $0x20] sm:$0xff]   ;;  %v2038_v22 = vld [vmem:[%s2788_s1 + $0x28] sm:$0xff]  }
   0x8   :  { %1699 = vmatpush3.bf16.msra.mxu0 %v2022_v6  ;;  %v2031_v15 = vld [vmem:[%s2788_s1 + $0x98] sm:$0xff]   ;;  %v2035_v19 = vld [vmem:[%s2788_s1 + $0xa0] sm:$0xff]   ;;  %v2039_v23 = vld [vmem:[%s2788_s1 + $0xa8] sm:$0xff]  }
   0x9   :  { %1763 = vmatpush3.bf16.msra.mxu1 %v2023_v7  ;;  %1700 = vmatprep.subr.bf16.mxu0 %v2024_v8  ;;  %v2040_v24 = vld [vmem:[%s2788_s1 + $0x70] sm:$0xff]   ;;  %v2044_v28 = vld [vmem:[%s2788_s1 + $0x78] sm:$0xff]   ;;  %v2048_v32 = vld [vmem:[%s2789_s0] ss:$36 sps:$4 sm:$0xff]  }
   0xa   :  { %1764 = vmatprep.subr.bf16.mxu1 %v2025_v9  ;;  %v2041_v25 = vld [vmem:[%s2788_s1 + $0xf0] sm:$0xff]   ;;  %v2045_v29 = vld [vmem:[%s2788_s1 + $0xf8] sm:$0xff]   ;;  %v2050_v33 = vld [vmem:[%s2789_s0 + $0x4] ss:$36 sps:$4 sm:$0xff]  }
   0xb   :  { %v2042_v26 = vld [vmem:[%s2788_s1 + $0x30] sm:$0xff]   ;;  %v2046_v30 = vld [vmem:[%s2788_s1 + $0x38] sm:$0xff]   ;;  %v2051_v34 = vld [vmem:[%s2789_s0 + $0x8] ss:$36 sps:$4 sm:$0xff]   ;;  %1078 = vmatprep.mubr.bf16.mxu0 %v2050_v33 }
   0xc   :  { %1701 = vmatpush3.bf16.msra.mxu0 %v2026_v10  ;;  %v2043_v27 = vld [vmem:[%s2788_s1 + $0xb0] sm:$0xff]   ;;  %v2047_v31 = vld [vmem:[%s2788_s1 + $0xb8] sm:$0xff]   ;;  %v2054_v36 = vld [vmem:[%s2788_s1 + $0x140] sm:$0xff]  }
   0xd   :  { %1765 = vmatpush3.bf16.msra.mxu1 %v2027_v11  ;;  %1702 = vmatprep.subr.bf16.mxu0 %v2028_v12  ;;  %v2053_v35 = vld [vmem:[%s2789_s0 + $0xc] ss:$36 sps:$4 sm:$0xff]   ;;  %v2055_v37 = vld [vmem:[%s2788_s1 + $0x1c0] sm:$0xff]   ;;  %v2060_v41 = vld [vmem:[%s2789_s0 + $0x54] ss:$36 sps:$4 sm:$0xff]  }
   0xe   :  { %1766 = vmatprep.subr.bf16.mxu1 %v2029_v13  ;;  %1175 = vmatprep.mubr.bf16.mxu1 %v2053_v35  ;;  %v2056_v38 = vld [vmem:[%s2788_s1 + $0x100] sm:$0xff]   ;;  %v2058_v40 = vld [vmem:[%s2789_s0 + $0x4c] ss:$36 sps:$4 sm:$0xff]   ;;  %v2068_v48 = vld [vmem:[%s2789_s0 + $0x94] ss:$36 sps:$4 sm:$0xff]  }
   0xf   :  { %v2057_v39 = vld [vmem:[%s2788_s1 + $0x180] sm:$0xff]   ;;  %v2062_v42 = vld [vmem:[%s2789_s0 + $0x48] ss:$36 sps:$4 sm:$0xff]   ;;  %v2063_v43 = vld [vmem:[%s2789_s0 + $0x50] ss:$36 sps:$4 sm:$0xff]  }
  0x10   :  { %1703 = vmatpush3.bf16.msra.mxu0 %v2030_v14  ;;  %v2064_v44 = vld [vmem:[%s2788_s1 + $0x148] sm:$0xff]   ;;  %v2070_v49 = vld [vmem:[%s2789_s0 + $0x9c] ss:$36 sps:$4 sm:$0xff]   ;;  %v2072_v50 = vld [vmem:[%s2789_s0 + $0x90] ss:$36 sps:$4 sm:$0xff]  }
  0x11   :  { %1767 = vmatpush3.bf16.msra.mxu1 %v2031_v15  ;;  %1704 = vmatprep.subr.bf16.mxu0 %v2032_v16  ;;  %v2065_v45 = vld [vmem:[%s2788_s1 + $0x1c8] sm:$0xff]   ;;  %v2073_v51 = vld [vmem:[%s2789_s0 + $0x98] ss:$36 sps:$4 sm:$0xff]   ;;  %v2074_v52 = vld [vmem:[%s2788_s1 + $0x150] sm:$0xff]  }
  0x12   :  { %1768 = vmatprep.subr.bf16.mxu1 %v2033_v17  ;;  %v2066_v46 = vld [vmem:[%s2788_s1 + $0x108] sm:$0xff]   ;;  %v2075_v53 = vld [vmem:[%s2788_s1 + $0x1d0] sm:$0xff]   ;;  %v2078_v56 = vld [vmem:[%s2789_s0 + $0xdc] ss:$36 sps:$4 sm:$0xff]  }
  0x13   :  { %v2067_v47 = vld [vmem:[%s2788_s1 + $0x188] sm:$0xff]   ;;  %v2076_v54 = vld [vmem:[%s2788_s1 + $0x110] sm:$0xff]   ;;  %v2082_v58 = vld [vmem:[%s2789_s0 + $0xd8] ss:$36 sps:$4 sm:$0xff]  }
  0x14   :  { %1705 = vmatpush3.bf16.msra.mxu0 %v2034_v18  ;;  %v2077_v55 = vld [vmem:[%s2788_s1 + $0x190] sm:$0xff]   ;;  %v2080_v57 = vld [vmem:[%s2789_s0 + $0xe4] ss:$36 sps:$4 sm:$0xff]   ;;  %v2084_v60 = vld [vmem:[%s2788_s1 + $0x158] sm:$0xff]  }
  0x15   :  { %1769 = vmatpush3.bf16.msra.mxu1 %v2035_v19  ;;  %1706 = vmatprep.subr.bf16.mxu0 %v2036_v20  ;;  %v2083_v59 = vld [vmem:[%s2789_s0 + $0xe0] ss:$36 sps:$4 sm:$0xff]   ;;  %v2085_v61 = vld [vmem:[%s2788_s1 + $0x1d8] sm:$0xff]   ;;  %v2090_v1 = vld [vmem:[%s2789_s0 + $0x12c] ss:$36 sps:$4 sm:$0xff]  }
  0x16   :  { %1770 = vmatprep.subr.bf16.mxu1 %v2037_v21  ;;  %v2086_v62 = vld [vmem:[%s2788_s1 + $0x118] sm:$0xff]   ;;  %v2088_v0 = vld [vmem:[%s2789_s0 + $0x124] ss:$36 sps:$4 sm:$0xff]   ;;  %v2098_v8 = vld [vmem:[%s2789_s0 + $0x16c] ss:$36 sps:$4 sm:$0xff]  }
  0x17   :  { %v2087_v63 = vld [vmem:[%s2788_s1 + $0x198] sm:$0xff]   ;;  %v2092_v2 = vld [vmem:[%s2789_s0 + $0x120] ss:$36 sps:$4 sm:$0xff]   ;;  %v2093_v4 = vld [vmem:[%s2789_s0 + $0x128] ss:$36 sps:$4 sm:$0xff]  }
  0x18   :  { %1707 = vmatpush3.bf16.msra.mxu0 %v2038_v22  ;;  %v2094_v3 = vld [vmem:[%s2788_s1 + $0x160] sm:$0xff]   ;;  %v2100_v9 = vld [vmem:[%s2789_s0 + $0x174] ss:$36 sps:$4 sm:$0xff]   ;;  %v2104_v10 = vld [vmem:[%s2788_s1 + $0x168] sm:$0xff]  }
  0x19   :  { %1771 = vmatpush3.bf16.msra.mxu1 %v2039_v23  ;;  %1708 = vmatprep.subr.bf16.mxu0 %v2040_v24  ;;  %v2095_v5 = vld [vmem:[%s2788_s1 + $0x1e0] sm:$0xff]   ;;  %v2105_v11 = vld [vmem:[%s2788_s1 + $0x1e8] sm:$0xff]   ;;  %v2103_v15 = vld [vmem:[%s2789_s0 + $0x170] ss:$36 sps:$4 sm:$0xff]  }
  0x1a   :  { %1772 = vmatprep.subr.bf16.mxu1 %v2041_v25  ;;  %v2096_v6 = vld [vmem:[%s2788_s1 + $0x120] sm:$0xff]   ;;  %v2102_v12 = vld [vmem:[%s2789_s0 + $0x168] ss:$36 sps:$4 sm:$0xff]   ;;  %v2108_v16 = vld [vmem:[%s2789_s0 + $0x1b4] ss:$36 sps:$4 sm:$0xff]  }
  0x1b   :  { %v2097_v7 = vld [vmem:[%s2788_s1 + $0x1a0] sm:$0xff]   ;;  %v2106_v13 = vld [vmem:[%s2788_s1 + $0x128] sm:$0xff]   ;;  %v2114_v18 = vld [vmem:[%s2788_s1 + $0x170] sm:$0xff]  }
  0x1c   :  { %1709 = vmatpush3.bf16.msra.mxu0 %v2042_v26  ;;  %v2107_v14 = vld [vmem:[%s2788_s1 + $0x1a8] sm:$0xff]   ;;  %v2110_v17 = vld [vmem:[%s2789_s0 + $0x1bc] ss:$36 sps:$4 sm:$0xff]   ;;  %v2115_v19 = vld [vmem:[%s2788_s1 + $0x1f0] sm:$0xff]  }
  0x1d   :  { %1773 = vmatpush3.bf16.msra.mxu1 %v2043_v27  ;;  %1710 = vmatprep.subr.bf16.mxu0 %v2044_v28  ;;  %v2116_v20 = vld [vmem:[%s2788_s1 + $0x130] sm:$0xff]   ;;  %v2113_v23 = vld [vmem:[%s2789_s0 + $0x1b8] ss:$36 sps:$4 sm:$0xff]   ;;  %v2120_v25 = vld [vmem:[%s2789_s0 + $0x204] ss:$36 sps:$4 sm:$0xff]  }
  0x1e   :  { %1774 = vmatprep.subr.bf16.mxu1 %v2045_v29  ;;  %v2117_v21 = vld [vmem:[%s2788_s1 + $0x1b0] sm:$0xff]   ;;  %v2118_v24 = vld [vmem:[%s2789_s0 + $0x1fc] ss:$36 sps:$4 sm:$0xff]  }
  0x1f   :  { %v2112_v22 = vld [vmem:[%s2789_s0 + $0x1b0] ss:$36 sps:$4 sm:$0xff]   ;;  %v2124_v26 = vld [vmem:[%s2788_s1 + $0x178] sm:$0xff]  }
  0x20   :  { %1711 = vmatpush3.bf16.msra.mxu0 %v2046_v30  ;;  %v2125_v27 = vld [vmem:[%s2788_s1 + $0x1f8] sm:$0xff]   ;;  %v2128_v35 = vld [vmem:[%s2789_s0 + $0x10] ss:$36 sps:$4 sm:$0xff]  }
  0x21   :  { %1775 = vmatpush3.bf16.msra.mxu1 %v2047_v31  ;;  %1824 = vmatprep.subr.bf16.mxu0 %v2054_v36  ;;  %v2126_v28 = vld [vmem:[%s2788_s1 + $0x138] sm:$0xff]   ;;  %v2123_v31 = vld [vmem:[%s2789_s0 + $0x200] ss:$36 sps:$4 sm:$0xff]  }
  0x22   :  { %1888 = vmatprep.subr.bf16.mxu1 %v2055_v37  ;;  %v2127_v29 = vld [vmem:[%s2788_s1 + $0x1b8] sm:$0xff]  }
  0x23   :  { %1079 = vmatmul.mubr.bf16.vlgmr.msra.gmra.mrb[0].mxu0 %v2048_v32  ;;  %v2122_v30 = vld [vmem:[%s2789_s0 + $0x1f8] ss:$36 sps:$4 sm:$0xff]   ;;  %v2134_v32 = vld [vmem:[%s2788_s1 + $0x200] sm:$0xff]  }
  0x24   :  { %1176 = vmatmul.mubr.bf16.vlgmr.msra.gmra.mrb[0].mxu1 %v2051_v34  ;;  %1825 = vmatpush3.bf16.msra.mxu0 %v2056_v38  ;;  %v2130_v33 = vld [vmem:[%s2789_s0 + $0x14] ss:$36 sps:$4 sm:$0xff]   ;;  %v2133_v34 = vld [vmem:[%s2789_s0 + $0x1c] ss:$36 sps:$4 sm:$0xff]   ;;  %v2137_v38 = vld [vmem:[%s2789_s0 + $0x64] ss:$36 sps:$4 sm:$0xff]  }
  0x25   :  { %1889 = vmatpush3.bf16.msra.mxu1 %v2057_v39  ;;  %1086 = vmatprep.mubr.bf16.mxu0 %v2058_v40  ;;  %v2131_v36 = vld [vmem:[%s2789_s0 + $0x18] ss:$36 sps:$4 sm:$0xff]   ;;  %v2141_v39 = vld [vmem:[%s2788_s1 + $0x208] sm:$0xff]   ;;  %v2148_v40 = vld [vmem:[%s2788_s1 + $0x210] sm:$0xff]  }
  0x26   :  { %1183 = vmatprep.mubr.bf16.mxu1 %v2060_v41  ;;  %1826 = vmatprep.subr.bf16.mxu0 %v2064_v44  ;;  %v2135_v37 = vld [vmem:[%s2789_s0 + $0x5c] ss:$36 sps:$4 sm:$0xff]   ;;  %v2144_v44 = vld [vmem:[%s2789_s0 + $0xac] ss:$36 sps:$4 sm:$0xff]  }
  0x27   :  { %1890 = vmatprep.subr.bf16.mxu1 %v2065_v45  ;;  %v2139_v41 = vld [vmem:[%s2789_s0 + $0x58] ss:$36 sps:$4 sm:$0xff]  }
  0x28   :  { %1827 = vmatpush3.bf16.msra.mxu0 %v2066_v46  ;;  %v2155_v45 = vld [vmem:[%s2788_s1 + $0x218] sm:$0xff]   ;;  %v2162_v46 = vld [vmem:[%s2788_s1 + $0x220] sm:$0xff]  }
  0x29   :  { %1891 = vmatpush3.bf16.msra.mxu1 %v2067_v47  ;;  %1828 = vmatprep.subr.bf16.mxu0 %v2074_v52  ;;  %v2146_v47 = vld [vmem:[%s2789_s0 + $0xa0] ss:$36 sps:$4 sm:$0xff]   ;;  %v2153_v52 = vld [vmem:[%s2789_s0 + $0xe8] ss:$36 sps:$4 sm:$0xff]  }
  0x2a   :  { %1892 = vmatprep.subr.bf16.mxu1 %v2075_v53  ;;  %v2176_v53 = vld [vmem:[%s2788_s1 + $0x230] sm:$0xff]  }
  0x2b   :  { %1087 = vmatmul.mubr.bf16.gmra.mrb[4].mxu0 %v2062_v42  ;;  %v2140_v42 = vld [vmem:[%s2789_s0 + $0x60] ss:$36 sps:$4 sm:$0xff]  }
  0x2c   :  { %1184 = vmatmul.mubr.bf16.gmra.mrb[4].mxu1 %v2063_v43  ;;  %1094 = vmatprep.mubr.bf16.mxu0 %v2068_v48  ;;  %v2142_v43 = vld [vmem:[%s2789_s0 + $0xa4] ss:$36 sps:$4 sm:$0xff]  }
  0x2d   :  { %1191 = vmatprep.mubr.bf16.mxu1 %v2070_v49  ;;  %1829 = vmatpush3.bf16.msra.mxu0 %v2076_v54  ;;  %v2147_v48 = vld [vmem:[%s2789_s0 + $0xa8] ss:$36 sps:$4 sm:$0xff]   ;;  %v2154_v54 = vld [vmem:[%s2789_s0 + $0xf0] ss:$36 sps:$4 sm:$0xff]  }
  0x2e   :  { %1893 = vmatpush3.bf16.msra.mxu1 %v2077_v55  ;;  %1830 = vmatprep.subr.bf16.mxu0 %v2084_v60  ;;  %v2149_v49 = vld [vmem:[%s2789_s0 + $0xec] ss:$36 sps:$4 sm:$0xff]   ;;  %v2156_v55 = vld [vmem:[%s2789_s0 + $0x134] ss:$36 sps:$4 sm:$0xff]   ;;  %v2163_v60 = vld [vmem:[%s2789_s0 + $0x17c] ss:$36 sps:$4 sm:$0xff]  }
  0x2f   :  { %1894 = vmatprep.subr.bf16.mxu1 %v2085_v61  ;;  %v2165_v61 = vld [vmem:[%s2789_s0 + $0x184] ss:$36 sps:$4 sm:$0xff]  }
  0x31   :  { %1831 = vmatpush3.bf16.msra.mxu0 %v2086_v62  ;;  %v2167_v62 = vld [vmem:[%s2789_s0 + $0x178] ss:$36 sps:$4 sm:$0xff]  }
  0x32   :  { %1895 = vmatpush3.bf16.msra.mxu1 %v2087_v63  ;;  %1832 = vmatprep.subr.bf16.mxu0 %v2094_v3  ;;  %v2168_v63 = vld [vmem:[%s2789_s0 + $0x180] ss:$36 sps:$4 sm:$0xff]   ;;  %v2175_v3 = vld [vmem:[%s2789_s0 + $0x1c8] ss:$36 sps:$4 sm:$0xff]  }
  0x33   :  { %1095 = vmatmul.mubr.bf16.gmra.mrb[8].mxu0 %v2072_v50  ;;  %1896 = vmatprep.subr.bf16.mxu1 %v2095_v5  ;;  %v2151_v50 = vld [vmem:[%s2789_s0 + $0xf4] ss:$36 sps:$4 sm:$0xff]  }
  0x34   :  { %1192 = vmatmul.mubr.bf16.gmra.mrb[8].mxu1 %v2073_v51  ;;  %1102 = vmatprep.mubr.bf16.mxu0 %v2078_v56  ;;  %v2169_v51 = vld [vmem:[%s2788_s1 + $0x228] sm:$0xff]   ;;  %v2158_v56 = vld [vmem:[%s2789_s0 + $0x13c] ss:$36 sps:$4 sm:$0xff]   ;;  %v2179_v5 = vld [vmem:[%s2789_s0 + $0x214] ss:$36 sps:$4 sm:$0xff]  }
  0x35   :  { %1199 = vmatprep.mubr.bf16.mxu1 %v2080_v57  ;;  %1833 = vmatpush3.bf16.msra.mxu0 %v2096_v6  ;;  %v2183_v57 = vld [vmem:[%s2788_s1 + $0x238] sm:$0xff]   ;;  %v2181_v6 = vld [vmem:[%s2789_s0 + $0x208] ss:$36 sps:$4 sm:$0xff]  }
  0x36   :  { %1897 = vmatpush3.bf16.msra.mxu1 %v2097_v7  ;;  %1834 = vmatprep.subr.bf16.mxu0 %v2104_v10  ;;  %v2182_v7 = vld [vmem:[%s2789_s0 + $0x210] ss:$36 sps:$4 sm:$0xff]   ;;  %v2186_v10 = vld [vmem:[%s2789_s0 + $0x68] ss:$36 sps:$4 sm:$0xff]  }
  0x37   :  { %1898 = vmatprep.subr.bf16.mxu1 %v2105_v11  ;;  %v2187_v11 = vld [vmem:[%s2789_s0 + $0x188] ss:$36 sps:$4 sm:$0xff]  }
  0x39   :  { %1835 = vmatpush3.bf16.msra.mxu0 %v2106_v13  ;;  %v2189_v13 = vld [vmem:[%s2789_s0 + $0x1d0] ss:$36 sps:$4 sm:$0xff]  }
  0x3a   :  { %1899 = vmatpush3.bf16.msra.mxu1 %v2107_v14  ;;  %1836 = vmatprep.subr.bf16.mxu0 %v2114_v18  ;;  %v2190_v14 = vld [vmem:[%s2789_s0 + $0xf8] ss:$36 sps:$4 sm:$0xff]   ;;  %v2647_v18 = vld [vmem:[%s2790_s2] ss:$0 sm:$0xff] }
  0x3b   :  { %1103 = vmatmul.mubr.bf16.gmra.mrb[12].mxu0 %v2082_v58  ;;  %1900 = vmatprep.subr.bf16.mxu1 %v2115_v19  ;;  %v2160_v58 = vld [vmem:[%s2789_s0 + $0x130] ss:$36 sps:$4 sm:$0xff]  }
  0x3c   :  { %1200 = vmatmul.mubr.bf16.gmra.mrb[12].mxu1 %v2083_v59  ;;  %1110 = vmatprep.mubr.bf16.mxu0 %v2088_v0  ;;  %v2161_v59 = vld [vmem:[%s2789_s0 + $0x138] ss:$36 sps:$4 sm:$0xff]   ;;  %v2170_v0 = vld [vmem:[%s2789_s0 + $0x1c4] ss:$36 sps:$4 sm:$0xff]  }
  0x3d   :  { %1207 = vmatprep.mubr.bf16.mxu1 %v2090_v1  ;;  %1837 = vmatpush3.bf16.msra.mxu0 %v2116_v20  ;;  %v2172_v1 = vld [vmem:[%s2789_s0 + $0x1cc] ss:$36 sps:$4 sm:$0xff]  }
  0x3e   :  { %1901 = vmatpush3.bf16.msra.mxu1 %v2117_v21  ;;  %1838 = vmatprep.subr.bf16.mxu0 %v2124_v26 }
  0x3f   :  { %1902 = vmatprep.subr.bf16.mxu1 %v2125_v27 }
  0x41   :  { %1839 = vmatpush3.bf16.msra.mxu0 %v2126_v28 }
  0x42   :  { %1903 = vmatpush3.bf16.msra.mxu1 %v2127_v29  ;;  %1968 = vmatprep.subr.bf16.mxu0 %v2134_v32 }
  0x43   :  { %1111 = vmatmul.mubr.bf16.gmra.mrb[16].mxu0 %v2092_v2  ;;  %2000 = vmatprep.subr.bf16.mxu1 %v2134_v32  ;;  %v2174_v2 = vld [vmem:[%s2789_s0 + $0x1c0] ss:$36 sps:$4 sm:$0xff]  }
  0x44   :  { %1208 = vmatmul.mubr.bf16.gmra.mrb[16].mxu1 %v2093_v4  ;;  %1118 = vmatprep.mubr.bf16.mxu0 %v2098_v8  ;;  %v2177_v4 = vld [vmem:[%s2789_s0 + $0x20c] ss:$36 sps:$4 sm:$0xff]   ;;  %v2184_v8 = vld [vmem:[%s2789_s0 + $0x20] ss:$36 sps:$4 sm:$0xff]  }
  0x45   :  { %1215 = vmatprep.mubr.bf16.mxu1 %v2100_v9  ;;  %v2185_v9 = vld [vmem:[%s2789_s0 + $0x140] ss:$36 sps:$4 sm:$0xff]  }
  0x4b   :  { %1119 = vmatmul.mubr.bf16.gmra.mrb[20].mxu0 %v2102_v12  ;;  %v2188_v12 = vld [vmem:[%s2789_s0 + $0xb0] ss:$36 sps:$4 sm:$0xff]  }
  0x4c   :  { %1216 = vmatmul.mubr.bf16.gmra.mrb[20].mxu1 %v2103_v15  ;;  %1126 = vmatprep.mubr.bf16.mxu0 %v2108_v16  ;;  %v2191_v15 = vld [vmem:[%s2789_s0 + $0x218] ss:$36 sps:$4 sm:$0xff]  }
  0x4d   :  { %1223 = vmatprep.mubr.bf16.mxu1 %v2110_v17 }
  0x53   :  { %1127 = vmatmul.mubr.bf16.gmra.mrb[24].mxu0 %v2112_v22 }
  0x54   :  { %1224 = vmatmul.mubr.bf16.gmra.mrb[24].mxu1 %v2113_v23  ;;  %1134 = vmatprep.mubr.bf16.mxu0 %v2118_v24 }
  0x55   :  { %1231 = vmatprep.mubr.bf16.mxu1 %v2120_v25 }
  0x5b   :  { %1135 = vmatmul.mubr.bf16.gmra.mrb[28].mxu0 %v2122_v30 }
  0x5c   :  { %1232 = vmatmul.mubr.bf16.gmra.mrb[28].mxu1 %v2123_v31  ;;  %1272 = vmatprep.mubr.bf16.mxu0 %v2130_v33 }
  0x5d   :  { %1369 = vmatprep.mubr.bf16.mxu1 %v2133_v34 }
  0x63   :  { %1273 = vmatmul.mubr.bf16.vlgmr.msra.gmra.mrb[32].mxu0 %v2128_v35 }
  0x64   :  { %1370 = vmatmul.mubr.bf16.vlgmr.msra.gmra.mrb[32].mxu1 %v2131_v36  ;;  %1969 = vmatpush3.bf16.msra.mxu0 %v2134_v32 }
  0x65   :  { %2008 = vmatpush3.bf16.msra.mxu1 %v2134_v32  ;;  %1280 = vmatprep.mubr.bf16.mxu0 %v2135_v37 }
  0x66   :  { %1377 = vmatprep.mubr.bf16.mxu1 %v2137_v38  ;;  %1970 = vmatprep.subr.bf16.mxu0 %v2141_v39 }
  0x67   :  { %2001 = vmatprep.subr.bf16.mxu1 %v2141_v39 }
  0x68   :  { %1971 = vmatpush3.bf16.msra.mxu0 %v2141_v39 }
  0x69   :  { %2009 = vmatpush3.bf16.msra.mxu1 %v2141_v39  ;;  %1972 = vmatprep.subr.bf16.mxu0 %v2148_v40 }
  0x6a   :  { %2002 = vmatprep.subr.bf16.mxu1 %v2148_v40 }
  0x6b   :  { %1281 = vmatmul.mubr.bf16.gmra.mrb[36].mxu0 %v2139_v41 }
  0x6c   :  { %1378 = vmatmul.mubr.bf16.gmra.mrb[36].mxu1 %v2140_v42  ;;  %1288 = vmatprep.mubr.bf16.mxu0 %v2142_v43 }
  0x6d   :  { %1385 = vmatprep.mubr.bf16.mxu1 %v2144_v44  ;;  %1973 = vmatpush3.bf16.msra.mxu0 %v2148_v40 }
  0x6e   :  { %2010 = vmatpush3.bf16.msra.mxu1 %v2148_v40  ;;  %1974 = vmatprep.subr.bf16.mxu0 %v2155_v45 }
  0x6f   :  { %2003 = vmatprep.subr.bf16.mxu1 %v2155_v45 }
  0x71   :  { %1975 = vmatpush3.bf16.msra.mxu0 %v2155_v45 }
  0x72   :  { %2011 = vmatpush3.bf16.msra.mxu1 %v2155_v45  ;;  %1976 = vmatprep.subr.bf16.mxu0 %v2162_v46 }
  0x73   :  { %1289 = vmatmul.mubr.bf16.gmra.mrb[40].mxu0 %v2146_v47  ;;  %2004 = vmatprep.subr.bf16.mxu1 %v2162_v46 }
  0x74   :  { %1386 = vmatmul.mubr.bf16.gmra.mrb[40].mxu1 %v2147_v48  ;;  %1296 = vmatprep.mubr.bf16.mxu0 %v2149_v49 }
  0x75   :  { %1393 = vmatprep.mubr.bf16.mxu1 %v2151_v50  ;;  %1977 = vmatpush3.bf16.msra.mxu0 %v2162_v46 }
  0x76   :  { %2012 = vmatpush3.bf16.msra.mxu1 %v2162_v46  ;;  %1978 = vmatprep.subr.bf16.mxu0 %v2169_v51 }
  0x77   :  { %2005 = vmatprep.subr.bf16.mxu1 %v2169_v51 }
  0x79   :  { %1979 = vmatpush3.bf16.msra.mxu0 %v2169_v51 }
  0x7a   :  { %2013 = vmatpush3.bf16.msra.mxu1 %v2169_v51  ;;  %1980 = vmatprep.subr.bf16.mxu0 %v2176_v53 }
  0x7b   :  { %1297 = vmatmul.mubr.bf16.gmra.mrb[44].mxu0 %v2153_v52  ;;  %2006 = vmatprep.subr.bf16.mxu1 %v2176_v53 }
  0x7c   :  { %1394 = vmatmul.mubr.bf16.gmra.mrb[44].mxu1 %v2154_v54  ;;  %1304 = vmatprep.mubr.bf16.mxu0 %v2156_v55 }
  0x7d   :  { %1401 = vmatprep.mubr.bf16.mxu1 %v2158_v56  ;;  %1981 = vmatpush3.bf16.msra.mxu0 %v2176_v53 }
  0x7e   :  { %2014 = vmatpush3.bf16.msra.mxu1 %v2176_v53  ;;  %1982 = vmatprep.subr.bf16.mxu0 %v2183_v57 }
  0x7f   :  { %2007 = vmatprep.subr.bf16.mxu1 %v2183_v57 }
  0x81   :  { %1983 = vmatpush3.bf16.msra.mxu0 %v2183_v57 }
  0x82   :  { %2015 = vmatpush3.bf16.msra.mxu1 %v2183_v57 }
  0x83   :  { %1305 = vmatmul.mubr.bf16.gmra.mrb[48].mxu0 %v2160_v58 }
  0x84   :  { %1402 = vmatmul.mubr.bf16.gmra.mrb[48].mxu1 %v2161_v59  ;;  %1312 = vmatprep.mubr.bf16.mxu0 %v2163_v60 }
  0x85   :  { %1409 = vmatprep.mubr.bf16.mxu1 %v2165_v61 }
  0x8b   :  { %1313 = vmatmul.mubr.bf16.gmra.mrb[52].mxu0 %v2167_v62 }
  0x8c   :  { %1410 = vmatmul.mubr.bf16.gmra.mrb[52].mxu1 %v2168_v63  ;;  %1320 = vmatprep.mubr.bf16.mxu0 %v2170_v0 }
  0x8d   :  { %1417 = vmatprep.mubr.bf16.mxu1 %v2172_v1 }
  0x93   :  { %1321 = vmatmul.mubr.bf16.gmra.mrb[56].mxu0 %v2174_v2 }
  0x94   :  { %1418 = vmatmul.mubr.bf16.gmra.mrb[56].mxu1 %v2175_v3  ;;  %1328 = vmatprep.mubr.bf16.mxu0 %v2177_v4 }
  0x95   :  { %1425 = vmatprep.mubr.bf16.mxu1 %v2179_v5 }
  0x9b   :  { %1329 = vmatmul.mubr.bf16.gmra.mrb[60].mxu0 %v2181_v6 }
  0x9c   :  { %1426 = vmatmul.mubr.bf16.gmra.mrb[60].mxu1 %v2182_v7  ;;  %1984 = vmatprep.mubr.bf16.mxu0 %v2184_v8 }
  0x9d   :  { %1992 = vmatprep.mubr.bf16.mxu1 %v2185_v9 }
  0xa3   :  { %1985 = vmatmul.mubr.bf16.vlgmr.msra.gmra.mrb[64].mxu0 %v2186_v10 }
  0xa4   :  { %1993 = vmatmul.mubr.bf16.vlgmr.msra.gmra.mrb[64].mxu1 %v2187_v11  ;;  %1988 = vmatprep.mubr.bf16.mxu0 %v2188_v12 }
  0xa5   :  { %1996 = vmatprep.mubr.bf16.mxu1 %v2189_v13 }
  0xab   :  { %1989 = vmatmul.mubr.bf16.gmra.mrb[68].mxu0 %v2190_v14 }
  0xac   :  { %1997 = vmatmul.mubr.bf16.gmra.mrb[68].mxu1 %v2191_v15 }
  0xf6   :  { %v1712_v16 = vpop.f32.mrb[0].mxu0 }
  0xf7   :  { %v1776_v17 = vpop.f32.mrb[0].mxu1  ;;  %v1713_v19 = vpop.f32.mrb[1].mxu0 }
  0xf8   :  { %v1714_v20 = vadd.f32 %v1713_v19, %v1712_v16  ;;  %v1777_v21 = vpop.f32.mrb[1].mxu1  ;;  %v1715_v22 = vpop.f32.mrb[2].mxu0 }
  0xf9   :  { %v1778_v23 = vadd.f32 %v1777_v21, %v1776_v17  ;;  %v1779_v24 = vpop.f32.mrb[2].mxu1  ;;  %v1716_v25 = vpop.f32.mrb[3].mxu0 }
  0xfa   :  { %v1081_v26 = vadd.f32 %v1714_v20, %v2647_v18  ;;  %v1717_v27 = vadd.f32 %v1716_v25, %v1715_v22  ;;  %v1780_v28 = vpop.f32.mrb[3].mxu1 }
  0xfb   :  { %v1781_v29 = vadd.f32 %v1780_v28, %v1779_v24 }
  0xfc   :  { %v2650_v30 = vadd.f32 %v1778_v23, %v1081_v26  ;;  %v1084_v31 = vadd.f32 %v1717_v27, %v2647_v18 }
  0xfe   :  { %v2653_v32 = vadd.f32 %v1781_v29, %v1084_v31  ;;  %v1718_v33 = vpop.f32.mrb[4].mxu0 }
  0xff   :  { %v1782_v34 = vpop.f32.mrb[4].mxu1  ;;  %v1719_v35 = vpop.f32.mrb[5].mxu0 }
 0x100   :  { %v1720_v36 = vadd.f32 %v1719_v35, %v1718_v33  ;;  %v1783_v37 = vpop.f32.mrb[5].mxu1  ;;  %v1721_v38 = vpop.f32.mrb[6].mxu0 }
 0x101   :  { %v1784_v39 = vadd.f32 %v1783_v37, %v1782_v34  ;;  %v1785_v40 = vpop.f32.mrb[6].mxu1  ;;  %v1722_v41 = vpop.f32.mrb[7].mxu0 }
 0x102   :  { %v1089_v42 = vadd.f32 %v1720_v36, %v2647_v18  ;;  %v1723_v43 = vadd.f32 %v1722_v41, %v1721_v38  ;;  %v1786_v44 = vpop.f32.mrb[7].mxu1 }
 0x103   :  { %v1787_v45 = vadd.f32 %v1786_v44, %v1785_v40 }
 0x104   :  { %v2656_v46 = vadd.f32 %v1784_v39, %v1089_v42  ;;  %v1092_v47 = vadd.f32 %v1723_v43, %v2647_v18 }
 0x106   :  { %v2659_v48 = vadd.f32 %v1787_v45, %v1092_v47  ;;  %v1724_v49 = vpop.f32.mrb[8].mxu0 }
 0x107   :  { %v1788_v50 = vpop.f32.mrb[8].mxu1  ;;  %v1725_v51 = vpop.f32.mrb[9].mxu0 }
 0x108   :  { %v1726_v52 = vadd.f32 %v1725_v51, %v1724_v49  ;;  %v1789_v53 = vpop.f32.mrb[9].mxu1  ;;  %v1727_v54 = vpop.f32.mrb[10].mxu0 }
 0x109   :  { %v1790_v55 = vadd.f32 %v1789_v53, %v1788_v50  ;;  %v1791_v56 = vpop.f32.mrb[10].mxu1  ;;  %v1728_v57 = vpop.f32.mrb[11].mxu0 }
 0x10a   :  { %v1097_v58 = vadd.f32 %v1726_v52, %v2647_v18  ;;  %v1729_v59 = vadd.f32 %v1728_v57, %v1727_v54  ;;  %v1792_v60 = vpop.f32.mrb[11].mxu1 }
 0x10b   :  { %v1793_v61 = vadd.f32 %v1792_v60, %v1791_v56 }
 0x10c   :  { %v2662_v62 = vadd.f32 %v1790_v55, %v1097_v58  ;;  %v1100_v63 = vadd.f32 %v1729_v59, %v2647_v18 }
 0x10e   :  { %v2665_v0 = vadd.f32 %v1793_v61, %v1100_v63  ;;  %v1730_v1 = vpop.f32.mrb[12].mxu0 }
 0x10f   :  { %v1794_v2 = vpop.f32.mrb[12].mxu1  ;;  %v1731_v3 = vpop.f32.mrb[13].mxu0 }
 0x110   :  { %v1732_v4 = vadd.f32 %v1731_v3, %v1730_v1  ;;  %v1795_v5 = vpop.f32.mrb[13].mxu1  ;;  %v1733_v6 = vpop.f32.mrb[14].mxu0 }
 0x111   :  { %v1796_v7 = vadd.f32 %v1795_v5, %v1794_v2  ;;  %v1797_v8 = vpop.f32.mrb[14].mxu1  ;;  %v1734_v9 = vpop.f32.mrb[15].mxu0 }
 0x112   :  { %v1105_v10 = vadd.f32 %v1732_v4, %v2647_v18  ;;  %v1735_v11 = vadd.f32 %v1734_v9, %v1733_v6  ;;  %v1798_v12 = vpop.f32.mrb[15].mxu1 }
 0x113   :  { %v1799_v13 = vadd.f32 %v1798_v12, %v1797_v8 }
 0x114   :  { %v2668_v14 = vadd.f32 %v1796_v7, %v1105_v10  ;;  %v1108_v15 = vadd.f32 %v1735_v11, %v2647_v18 }
 0x116   :  { %v2671_v16 = vadd.f32 %v1799_v13, %v1108_v15  ;;  %v1736_v17 = vpop.f32.mrb[16].mxu0 }
 0x117   :  { %v1800_v19 = vpop.f32.mrb[16].mxu1  ;;  %v1737_v20 = vpop.f32.mrb[17].mxu0 }
 0x118   :  { %v1738_v21 = vadd.f32 %v1737_v20, %v1736_v17  ;;  %v1801_v22 = vpop.f32.mrb[17].mxu1  ;;  %v1739_v23 = vpop.f32.mrb[18].mxu0 }
 0x119   :  { %v1802_v24 = vadd.f32 %v1801_v22, %v1800_v19  ;;  %v1803_v25 = vpop.f32.mrb[18].mxu1  ;;  %v1740_v26 = vpop.f32.mrb[19].mxu0 }
 0x11a   :  { %v1113_v27 = vadd.f32 %v1738_v21, %v2647_v18  ;;  %v1741_v28 = vadd.f32 %v1740_v26, %v1739_v23  ;;  %v1804_v29 = vpop.f32.mrb[19].mxu1 }
 0x11b   :  { %v1805_v31 = vadd.f32 %v1804_v29, %v1803_v25 }
 0x11c   :  { %v2674_v33 = vadd.f32 %v1802_v24, %v1113_v27  ;;  %v1116_v34 = vadd.f32 %v1741_v28, %v2647_v18 }
 0x11e   :  { %v2677_v35 = vadd.f32 %v1805_v31, %v1116_v34  ;;  %v1742_v36 = vpop.f32.mrb[20].mxu0 }
 0x11f   :  { %v1806_v37 = vpop.f32.mrb[20].mxu1  ;;  %v1743_v38 = vpop.f32.mrb[21].mxu0 }
 0x120   :  { %v1744_v39 = vadd.f32 %v1743_v38, %v1742_v36  ;;  %v1807_v40 = vpop.f32.mrb[21].mxu1  ;;  %v1745_v41 = vpop.f32.mrb[22].mxu0 }
 0x121   :  { %v1808_v42 = vadd.f32 %v1807_v40, %v1806_v37  ;;  %v1809_v43 = vpop.f32.mrb[22].mxu1  ;;  %v1746_v44 = vpop.f32.mrb[23].mxu0 }
 0x122   :  { %v1121_v45 = vadd.f32 %v1744_v39, %v2647_v18  ;;  %v1747_v47 = vadd.f32 %v1746_v44, %v1745_v41  ;;  %v1810_v49 = vpop.f32.mrb[23].mxu1 }
 0x123   :  { %v1811_v50 = vadd.f32 %v1810_v49, %v1809_v43 }
 0x124   :  { %v2680_v51 = vadd.f32 %v1808_v42, %v1121_v45  ;;  %v1124_v52 = vadd.f32 %v1747_v47, %v2647_v18 }
 0x126   :  { %v2683_v53 = vadd.f32 %v1811_v50, %v1124_v52  ;;  %v1748_v54 = vpop.f32.mrb[24].mxu0 }
 0x127   :  { %v1812_v55 = vpop.f32.mrb[24].mxu1  ;;  %v1749_v56 = vpop.f32.mrb[25].mxu0 }
 0x128   :  { %v1750_v57 = vadd.f32 %v1749_v56, %v1748_v54  ;;  %v1813_v58 = vpop.f32.mrb[25].mxu1  ;;  %v1751_v59 = vpop.f32.mrb[26].mxu0 }
 0x129   :  { %v1814_v60 = vadd.f32 %v1813_v58, %v1812_v55  ;;  %v1815_v61 = vpop.f32.mrb[26].mxu1  ;;  %v1752_v63 = vpop.f32.mrb[27].mxu0 }
 0x12a   :  { %v1129_v1 = vadd.f32 %v1750_v57, %v2647_v18  ;;  %v1753_v2 = vadd.f32 %v1752_v63, %v1751_v59  ;;  %v1816_v3 = vpop.f32.mrb[27].mxu1 }
 0x12b   :  { %v1817_v4 = vadd.f32 %v1816_v3, %v1815_v61 }
 0x12c   :  { %v2686_v5 = vadd.f32 %v1814_v60, %v1129_v1  ;;  %v1132_v6 = vadd.f32 %v1753_v2, %v2647_v18 }
 0x12e   :  { %v2689_v7 = vadd.f32 %v1817_v4, %v1132_v6  ;;  %v1754_v8 = vpop.f32.mrb[28].mxu0 }
 0x12f   :  { %v1818_v9 = vpop.f32.mrb[28].mxu1  ;;  %v1755_v10 = vpop.f32.mrb[29].mxu0 }
 0x130   :  { %v1756_v11 = vadd.f32 %v1755_v10, %v1754_v8  ;;  %v1819_v12 = vpop.f32.mrb[29].mxu1  ;;  %v1757_v13 = vpop.f32.mrb[30].mxu0 }
 0x131   :  { %v1820_v15 = vadd.f32 %v1819_v12, %v1818_v9  ;;  %v1821_v17 = vpop.f32.mrb[30].mxu1  ;;  %v1758_v19 = vpop.f32.mrb[31].mxu0 }
 0x132   :  { %v1137_v20 = vadd.f32 %v1756_v11, %v2647_v18  ;;  %v1759_v21 = vadd.f32 %v1758_v19, %v1757_v13  ;;  %v1822_v22 = vpop.f32.mrb[31].mxu1 }
 0x133   :  { %v1823_v23 = vadd.f32 %v1822_v22, %v1821_v17 }
 0x134   :  { %v2692_v24 = vadd.f32 %v1820_v15, %v1137_v20  ;;  %v1140_v25 = vadd.f32 %v1759_v21, %v2647_v18 }
 0x136   :  { %v2695_v26 = vadd.f32 %v1823_v23, %v1140_v25  ;;  %v1840_v27 = vpop.f32.mrb[32].mxu0 }
 0x137   :  { %v1904_v28 = vpop.f32.mrb[32].mxu1  ;;  %v1841_v29 = vpop.f32.mrb[33].mxu0 }
 0x138   :  { %v1842_v31 = vadd.f32 %v1841_v29, %v1840_v27  ;;  %v1905_v34 = vpop.f32.mrb[33].mxu1  ;;  %v1843_v36 = vpop.f32.mrb[34].mxu0 }
 0x139   :  { %v1906_v37 = vadd.f32 %v1905_v34, %v1904_v28  ;;  %v1907_v38 = vpop.f32.mrb[34].mxu1  ;;  %v1844_v39 = vpop.f32.mrb[35].mxu0 }
 0x13a   :  { %v1275_v40 = vadd.f32 %v1842_v31, %v2650_v30  ;;  %v1845_v41 = vadd.f32 %v1844_v39, %v1843_v36  ;;  %v1908_v42 = vpop.f32.mrb[35].mxu1 }
 0x13b   :  { %v1909_v43 = vadd.f32 %v1908_v42, %v1907_v38 }
 0x13c   :  { %v1278_v44 = vadd.f32 %v1845_v41, %v2653_v32  ;;  %v2699_v45 = vadd.f32 %v1906_v37, %v1275_v40 }
 0x13e   :  { %v1846_v18 = vpop.f32.mrb[36].mxu0  ;;  %v2701_v47 = vadd.f32 %v1909_v43, %v1278_v44 }
 0x13f   :  { %v1910_v49 = vpop.f32.mrb[36].mxu1  ;;  %v1847_v50 = vpop.f32.mrb[37].mxu0 }
 0x140   :  { %v1848_v52 = vadd.f32 %v1847_v50, %v1846_v18  ;;  %v1911_v54 = vpop.f32.mrb[37].mxu1  ;;  %v1849_v55 = vpop.f32.mrb[38].mxu0 }
 0x141   :  { %v1912_v56 = vadd.f32 %v1911_v54, %v1910_v49  ;;  %v1913_v57 = vpop.f32.mrb[38].mxu1  ;;  %v1850_v58 = vpop.f32.mrb[39].mxu0 }
 0x142   :  { %v1283_v30 = vadd.f32 %v1848_v52, %v2656_v46  ;;  %v1851_v59 = vadd.f32 %v1850_v58, %v1849_v55  ;;  %v1914_v60 = vpop.f32.mrb[39].mxu1 }
 0x143   :  { %v1915_v61 = vadd.f32 %v1914_v60, %v1913_v57 }
 0x144   :  { %v1286_v32 = vadd.f32 %v1851_v59, %v2659_v48  ;;  %v2705_v63 = vadd.f32 %v1912_v56, %v1283_v30 }
 0x146   :  { %v1852_v1 = vpop.f32.mrb[40].mxu0  ;;  %v2707_v2 = vadd.f32 %v1915_v61, %v1286_v32 }
 0x147   :  { %v1916_v3 = vpop.f32.mrb[40].mxu1  ;;  %v1853_v4 = vpop.f32.mrb[41].mxu0 }
 0x148   :  { %v1854_v6 = vadd.f32 %v1853_v4, %v1852_v1  ;;  %v1917_v8 = vpop.f32.mrb[41].mxu1  ;;  %v1855_v9 = vpop.f32.mrb[42].mxu0 }
 0x149   :  { %v1918_v10 = vadd.f32 %v1917_v8, %v1916_v3  ;;  %v1919_v11 = vpop.f32.mrb[42].mxu1  ;;  %v1856_v12 = vpop.f32.mrb[43].mxu0 }
 0x14a   :  { %v1291_v46 = vadd.f32 %v1854_v6, %v2662_v62  ;;  %v1857_v13 = vadd.f32 %v1856_v12, %v1855_v9  ;;  %v1920_v15 = vpop.f32.mrb[43].mxu1 }
 0x14b   :  { %v1921_v17 = vadd.f32 %v1920_v15, %v1919_v11 }
 0x14c   :  { %v1294_v48 = vadd.f32 %v1857_v13, %v2665_v0  ;;  %v2711_v19 = vadd.f32 %v1918_v10, %v1291_v46 }
 0x14e   :  { %v1858_v20 = vpop.f32.mrb[44].mxu0  ;;  %v2713_v21 = vadd.f32 %v1921_v17, %v1294_v48 }
 0x14f   :  { %v1922_v22 = vpop.f32.mrb[44].mxu1  ;;  %v1859_v23 = vpop.f32.mrb[45].mxu0 }
 0x150   :  { %v1860_v25 = vadd.f32 %v1859_v23, %v1858_v20  ;;  %v1923_v27 = vpop.f32.mrb[45].mxu1  ;;  %v1861_v28 = vpop.f32.mrb[46].mxu0 }
 0x151   :  { %v1924_v29 = vadd.f32 %v1923_v27, %v1922_v22  ;;  %v1925_v31 = vpop.f32.mrb[46].mxu1  ;;  %v1862_v34 = vpop.f32.mrb[47].mxu0 }
 0x152   :  { %v1299_v62 = vadd.f32 %v1860_v25, %v2668_v14  ;;  %v1863_v36 = vadd.f32 %v1862_v34, %v1861_v28  ;;  %v1926_v37 = vpop.f32.mrb[47].mxu1 }
 0x153   :  { %v1927_v38 = vadd.f32 %v1926_v37, %v1925_v31 }
 0x154   :  { %v1302_v0 = vadd.f32 %v1863_v36, %v2671_v16  ;;  %v2717_v39 = vadd.f32 %v1924_v29, %v1299_v62 }
 0x156   :  { %v1864_v40 = vpop.f32.mrb[48].mxu0  ;;  %v2719_v41 = vadd.f32 %v1927_v38, %v1302_v0 }
 0x157   :  { %v1928_v42 = vpop.f32.mrb[48].mxu1  ;;  %v1865_v43 = vpop.f32.mrb[49].mxu0 }
 0x158   :  { %v1866_v44 = vadd.f32 %v1865_v43, %v1864_v40  ;;  %v1929_v18 = vpop.f32.mrb[49].mxu1  ;;  %v1867_v49 = vpop.f32.mrb[50].mxu0 }
 0x159   :  { %v1930_v50 = vadd.f32 %v1929_v18, %v1928_v42  ;;  %v1931_v52 = vpop.f32.mrb[50].mxu1  ;;  %v1868_v54 = vpop.f32.mrb[51].mxu0 }
 0x15a   :  { %v1307_v14 = vadd.f32 %v1866_v44, %v2674_v33  ;;  %v1869_v55 = vadd.f32 %v1868_v54, %v1867_v49  ;;  %v1932_v56 = vpop.f32.mrb[51].mxu1 }
 0x15b   :  { %v1933_v57 = vadd.f32 %v1932_v56, %v1931_v52 }
 0x15c   :  { %v1310_v16 = vadd.f32 %v1869_v55, %v2677_v35  ;;  %v1404_v58 = vadd.f32 %v1930_v50, %v1307_v14 }
 0x15e   :  { %v1870_v30 = vpop.f32.mrb[52].mxu0  ;;  %v2723_v59 = vadd.f32 %v1933_v57, %v1310_v16 }
 0x15f   :  { %v1934_v60 = vpop.f32.mrb[52].mxu1  ;;  %v1871_v61 = vpop.f32.mrb[53].mxu0 }
 0x160   :  { %v1872_v32 = vadd.f32 %v1871_v61, %v1870_v30  ;;  %v1935_v1 = vpop.f32.mrb[53].mxu1  ;;  %v1873_v3 = vpop.f32.mrb[54].mxu0 }
 0x161   :  { %v1936_v4 = vadd.f32 %v1935_v1, %v1934_v60  ;;  %v1937_v6 = vpop.f32.mrb[54].mxu1  ;;  %v1874_v8 = vpop.f32.mrb[55].mxu0 }
 0x162   :  { %v1315_v9 = vadd.f32 %v1872_v32, %v2680_v51  ;;  %v1875_v33 = vadd.f32 %v1874_v8, %v1873_v3  ;;  %v1938_v10 = vpop.f32.mrb[55].mxu1 }
 0x163   :  { %v1939_v11 = vadd.f32 %v1938_v10, %v1937_v6 }
 0x164   :  { %v1318_v12 = vadd.f32 %v1875_v33, %v2683_v53  ;;  %v1412_v35 = vadd.f32 %v1936_v4, %v1315_v9 }
 0x166   :  { %v1876_v46 = vpop.f32.mrb[56].mxu0  ;;  %v1415_v13 = vadd.f32 %v1939_v11, %v1318_v12 }
 0x167   :  { %v1940_v15 = vpop.f32.mrb[56].mxu1  ;;  %v1877_v17 = vpop.f32.mrb[57].mxu0 }
 0x168   :  { %v1878_v48 = vadd.f32 %v1877_v17, %v1876_v46  ;;  %v1941_v20 = vpop.f32.mrb[57].mxu1  ;;  %v1879_v22 = vpop.f32.mrb[58].mxu0 }
 0x169   :  { %v1942_v23 = vadd.f32 %v1941_v20, %v1940_v15  ;;  %v1943_v25 = vpop.f32.mrb[58].mxu1  ;;  %v1880_v27 = vpop.f32.mrb[59].mxu0 }
 0x16a   :  { %v1323_v28 = vadd.f32 %v1878_v48, %v2686_v5  ;;  %v1881_v29 = vadd.f32 %v1880_v27, %v1879_v22  ;;  %v1944_v51 = vpop.f32.mrb[59].mxu1 }
 0x16b   :  { %v1945_v31 = vadd.f32 %v1944_v51, %v1943_v25 }
 0x16c   :  { %v1326_v34 = vadd.f32 %v1881_v29, %v2689_v7  ;;  %v1420_v62 = vadd.f32 %v1942_v23, %v1323_v28 }
 0x16e   :  { %v1882_v53 = vpop.f32.mrb[60].mxu0  ;;  %v1423_v36 = vadd.f32 %v1945_v31, %v1326_v34 }
 0x16f   :  { %v1946_v37 = vpop.f32.mrb[60].mxu1  ;;  %v1883_v38 = vpop.f32.mrb[61].mxu0 }
 0x170   :  { %v1884_v0 = vadd.f32 %v1883_v38, %v1882_v53  ;;  %v1947_v40 = vpop.f32.mrb[61].mxu1  ;;  %v1885_v42 = vpop.f32.mrb[62].mxu0 }
 0x171   :  { %v1948_v43 = vadd.f32 %v1947_v40, %v1946_v37  ;;  %v1949_v44 = vpop.f32.mrb[62].mxu1  ;;  %v1886_v18 = vpop.f32.mrb[63].mxu0 }
 0x172   :  { %v1331_v49 = vadd.f32 %v1884_v0, %v2692_v24  ;;  %v1887_v50 = vadd.f32 %v1886_v18, %v1885_v42  ;;  %v1950_v5 = vpop.f32.mrb[63].mxu1 }
 0x173   :  { %v1951_v52 = vadd.f32 %v1950_v5, %v1949_v44 }
 0x174   :  { %v1334_v54 = vadd.f32 %v1887_v50, %v2695_v26  ;;  %v1428_v14 = vadd.f32 %v1948_v43, %v1331_v49 }
 0x176   :  { %v1986_v7 = vpop.f32.mrb[64].mxu0  ;;  %v1431_v55 = vadd.f32 %v1951_v52, %v1334_v54 }
 0x177   :  { %v1477_v56 = vadd.f32 %v1986_v7, %v2705_v63  ;;  %v1994_v57 = vpop.f32.mrb[64].mxu1  ;;  %v1468_v16 = vpop.f32.mrb[65].mxu0 }
 0x178   :  { %v1509_v30 = vadd.f32 %v1994_v57, %v1412_v35  ;;  %v1469_v60 = vadd.f32 %v1468_v16, %v2699_v45  ;;  %v1500_v61 = vpop.f32.mrb[65].mxu1  ;;  %v1987_v32 = vpop.f32.mrb[66].mxu0 }
 0x179   :  { %1533 = vst [vmem:[%s2791_s3 + $0x10] sm:$0xff] %v1477_v56  ;;  %v1501_v24 = vadd.f32 %v1500_v61, %v1404_v58  ;;  %v1480_v1 = vadd.f32 %v1987_v32, %v2707_v2  ;;  %v1995_v26 = vpop.f32.mrb[66].mxu1  ;;  %v1471_v3 = vpop.f32.mrb[67].mxu0 }
 0x17a   :  { %1541 = vst [vmem:[%s2791_s3 + $0x50] sm:$0xff] %v1509_v30  ;;  %1531 = vst [vmem:[%s2791_s3] sm:$0xff] %v1469_v60  ;;  %v1512_v45 = vadd.f32 %v1995_v26, %v1415_v13  ;;  %v1472_v63 = vadd.f32 %v1471_v3, %v2701_v47  ;;  %v1503_v4 = vpop.f32.mrb[67].mxu1 }
 0x17b   :  { %1539 = vst [vmem:[%s2791_s3 + $0x40] sm:$0xff] %v1501_v24  ;;  %1534 = vst [vmem:[%s2791_s3 + $0x18] sm:$0xff] %v1480_v1  ;;  %v1504_v2 = vadd.f32 %v1503_v4, %v2723_v59 }
 0x17c   :  { %1542 = vst [vmem:[%s2791_s3 + $0x58] sm:$0xff] %v1512_v45  ;;  %1532 = vst [vmem:[%s2791_s3 + $0x8] sm:$0xff] %v1472_v63 }
 0x17d   :  { %1540 = vst [vmem:[%s2791_s3 + $0x48] sm:$0xff] %v1504_v2 }
 0x17e   :  { %v1990_v47 = vpop.f32.mrb[68].mxu0 }
 0x17f   :  { %v1493_v58 = vadd.f32 %v1990_v47, %v2717_v39  ;;  %v1998_v6 = vpop.f32.mrb[68].mxu1  ;;  %v1484_v8 = vpop.f32.mrb[69].mxu0 }
 0x180   :  { %v1525_v9 = vadd.f32 %v1998_v6, %v1428_v14  ;;  %v1485_v59 = vadd.f32 %v1484_v8, %v2711_v19  ;;  %v1516_v33 = vpop.f32.mrb[69].mxu1  ;;  %v1991_v10 = vpop.f32.mrb[70].mxu0 }
 0x181   :  { %1537 = vst [vmem:[%s2791_s3 + $0x30] sm:$0xff] %v1493_v58  ;;  %v1517_v11 = vadd.f32 %v1516_v33, %v1420_v62  ;;  %v1496_v12 = vadd.f32 %v1991_v10, %v2719_v41  ;;  %v1999_v35 = vpop.f32.mrb[70].mxu1  ;;  %v1487_v46 = vpop.f32.mrb[71].mxu0 }
 0x182   :  { %1545 = vst [vmem:[%s2791_s3 + $0x70] sm:$0xff] %v1525_v9  ;;  %1535 = vst [vmem:[%s2791_s3 + $0x20] sm:$0xff] %v1485_v59  ;;  %v1528_v19 = vadd.f32 %v1999_v35, %v1431_v55  ;;  %v1488_v39 = vadd.f32 %v1487_v46, %v2713_v21  ;;  %v1519_v13 = vpop.f32.mrb[71].mxu1 }
 0x183   :  { %1543 = vst [vmem:[%s2791_s3 + $0x60] sm:$0xff] %v1517_v11  ;;  %1538 = vst [vmem:[%s2791_s3 + $0x38] sm:$0xff] %v1496_v12  ;;  %v1520_v41 = vadd.f32 %v1519_v13, %v1423_v36 }
 0x184   :  { %1546 = vst [vmem:[%s2791_s3 + $0x78] sm:$0xff] %v1528_v19  ;;  %1536 = vst [vmem:[%s2791_s3 + $0x28] sm:$0xff] %v1488_v39 }
 0x185   :  { %1544 = vst [vmem:[%s2791_s3 + $0x68] sm:$0xff] %v1520_v41 }

// kernel: detector_forward.8
= control target key start
LH: loop header
LB: loop body
LE: loop exit
PB: predicated region body
PF: predicated region fallthrough
CT: control target
= control target key end

     0   :  { %vm204_vm0 = vcmask 261120   ;;  %s550_s1 = inlined_call_operand.vmem [shape: bf16[288,128], index: 1, kind: input, shape index: {}]   ;;  %s551_s0 = inlined_call_operand.vmem [shape: bf16[32,288], index: 0, kind: input, shape index: {}]   ;;  %s552_s2 = inlined_call_operand.vmem [shape: f32[1,128], index: 2, kind: input, shape index: {}]   ;;  %s553_s3 = inlined_call_operand.vmem [shape: bf16[32,128], index: 3, kind: output, shape index: {}]  }
   0x1   :  { %v423_v0 = vld [vmem:[%s550_s1 + $0x40] sm:$0xff]   ;;  %v425_v2 = vld [vmem:[%s550_s1 + $0x48] sm:$0xff]   ;;  %v427_v4 = vld [vmem:[%s550_s1 + $0x50] sm:$0xff]  }
   0x2   :  { %v424_v1 = vld [vmem:[%s550_s1] sm:$0xff]   ;;  %383 = vmatprep.subr.bf16.mxu0 %v423_v0  ;;  %v426_v3 = vld [vmem:[%s550_s1 + $0x8] sm:$0xff]   ;;  %v428_v5 = vld [vmem:[%s550_s1 + $0x10] sm:$0xff]  }
   0x3   :  { %384 = vmatpush3.bf16.msra.mxu0 %v424_v1  ;;  %v429_v6 = vld [vmem:[%s550_s1 + $0x58] sm:$0xff]   ;;  %v431_v8 = vld [vmem:[%s550_s1 + $0x60] sm:$0xff]   ;;  %v433_v11 = vld [vmem:[%s550_s1 + $0x68] sm:$0xff]  }
   0x4   :  { %385 = vmatprep.subr.bf16.mxu0 %v425_v2  ;;  %v430_v7 = vld [vmem:[%s550_s1 + $0x18] sm:$0xff]   ;;  %v432_v9 = vld [vmem:[%s550_s1 + $0x20] sm:$0xff]   ;;  %v434_v12 = vld [vmem:[%s550_s1 + $0x28] sm:$0xff]  }
   0x5   :  { %v438_v10 = vld [vmem:[%s550_s1 + $0x80] sm:$0xff]   ;;  %v435_v13 = vld [vmem:[%s550_s1 + $0x70] sm:$0xff]   ;;  %v443_v15 = vld [vmem:[%s550_s1 + $0x88] sm:$0xff]  }
   0x6   :  { %415 = vmatprep.subr.bf16.mxu1 %v438_v10  ;;  %v442_v14 = vld [vmem:[%s551_s0 + $0x4] ss:$12 sps:$4 sm:$0xff]   ;;  %v444_v16 = vld [vmem:[%s551_s0 + $0x8] ss:$12 sps:$4 sm:$0xff]   ;;  %v445_v17 = vld [vmem:[%s551_s0 + $0x20] ss:$12 sps:$4 sm:$0xff]  }
   0x7   :  { %386 = vmatpush3.bf16.msra.mxu0 %v426_v3  ;;  %416 = vmatpush3.bf16.msra.mxu1 %v438_v10  ;;  %v436_v18 = vld [vmem:[%s550_s1 + $0x30] sm:$0xff]   ;;  %v437_v19 = vld [vmem:[%s550_s1 + $0x78] sm:$0xff]   ;;  %v440_v21 = vld [vmem:[%s551_s0] ss:$12 sps:$4 sm:$0xff]  }
   0x8   :  { %387 = vmatprep.subr.bf16.mxu0 %v427_v4  ;;  %243 = vmatprep.mubr.bf16.mxu0 %v442_v14  ;;  %v439_v20 = vld [vmem:[%s550_s1 + $0x38] sm:$0xff]   ;;  %v337_v30 = vld [vmem:[%s552_s2] ss:$0 sm:$0xff] }
   0x9   :  { %417 = vmatprep.subr.bf16.mxu1 %v443_v15  ;;  %419 = vmatprep.mubr.msk.bf16.mxu1 %vm204_vm0, %v444_v16  ;;  %v446_v22 = vld [vmem:[%s551_s0 + $0x1c] ss:$12 sps:$4 sm:$0xff]   ;;  %v448_v23 = vld [vmem:[%s551_s0 + $0x18] ss:$12 sps:$4 sm:$0xff]  }
   0xb   :  { %388 = vmatpush3.bf16.msra.mxu0 %v428_v5  ;;  %418 = vmatpush3.bf16.msra.mxu1 %v443_v15 }
   0xc   :  { %389 = vmatprep.subr.bf16.mxu0 %v429_v6 }
   0xe   :  { %420 = vmatmul.mubr.msk.bf16.vlgmr.msra.gmra.mrb[0].mxu1 %vm204_vm0, %v445_v17 }
   0xf   :  { %390 = vmatpush3.bf16.msra.mxu0 %v430_v7 }
  0x10   :  { %391 = vmatprep.subr.bf16.mxu0 %v431_v8 }
  0x13   :  { %392 = vmatpush3.bf16.msra.mxu0 %v432_v9 }
  0x14   :  { %393 = vmatprep.subr.bf16.mxu0 %v433_v11 }
  0x17   :  { %394 = vmatpush3.bf16.msra.mxu0 %v434_v12 }
  0x18   :  { %395 = vmatprep.subr.bf16.mxu0 %v435_v13 }
  0x1b   :  { %396 = vmatpush3.bf16.msra.mxu0 %v436_v18 }
  0x1c   :  { %397 = vmatprep.subr.bf16.mxu0 %v437_v19 }
  0x1f   :  { %398 = vmatpush3.bf16.msra.mxu0 %v439_v20 }
  0x22   :  { %244 = vmatmul.mubr.bf16.vlgmr.msra.gmra.mrb[0].mxu0 %v440_v21 }
  0x23   :  { %251 = vmatprep.mubr.bf16.mxu0 %v446_v22 }
  0x2a   :  { %252 = vmatmul.mubr.bf16.gmra.mrb[4].mxu0 %v448_v23 }
  0xe1   :  { %v421_v24 = vpop.f32.mrb[0].mxu1 }
  0xe2   :  { %v294_v25 = vpop.f32.mrb[1].mxu1 }
  0xe3   :  { %v422_v26 = vpop.f32.mrb[2].mxu1 }
  0xe4   :  { %v297_v27 = vpop.f32.mrb[3].mxu1 }
  0xf5   :  { %v399_v28 = vpop.f32.mrb[0].mxu0 }
  0xf6   :  { %v400_v29 = vpop.f32.mrb[1].mxu0 }
  0xf7   :  { %v401_v31 = vadd.f32 %v400_v29, %v399_v28  ;;  %v402_v32 = vpop.f32.mrb[2].mxu0 }
  0xf8   :  { %v403_v33 = vpop.f32.mrb[3].mxu0 }
  0xf9   :  { %v404_v34 = vadd.f32 %v403_v33, %v402_v32  ;;  %v246_v35 = vadd.f32 %v401_v31, %v337_v30 }
  0xfb   :  { %v295_v36 = vadd.f32 %v294_v25, %v246_v35  ;;  %v249_v37 = vadd.f32 %v404_v34, %v337_v30 }
  0xfd   :  { %v298_v38 = vadd.f32 %v297_v27, %v249_v37  ;;  %v405_v39 = vpop.f32.mrb[4].mxu0  ;;  %v309_v41 = vmax.f32 %v295_v36, 0.0 }
  0xfe   :  { %v406_v40 = vpop.f32.mrb[5].mxu0 }
  0xff   :  { %v310_v42 = vmax.f32 %v298_v38, 0.0  ;;  %v407_v43 = vadd.f32 %v406_v40, %v405_v39  ;;  %v408_v44 = vpop.f32.mrb[6].mxu0 }
 0x100   :  { %v409_v45 = vpop.f32.mrb[7].mxu0 }
 0x101   :  { %v375_v46 = vpack.c.bf16 %v310_v42, %v309_v41  ;;  %v254_v47 = vadd.f32 %v407_v43, %v337_v30  ;;  %v410_v48 = vadd.f32 %v409_v45, %v408_v44 }
 0x103   :  { %376 = vst [vmem:[%s553_s3] sm:$0xff] %v375_v46   ;;  %v303_v49 = vadd.f32 %v421_v24, %v254_v47  ;;  %v257_v50 = vadd.f32 %v410_v48, %v337_v30 }
 0x105   :  { %v306_v51 = vadd.f32 %v422_v26, %v257_v50  ;;  %v311_v52 = vmax.f32 %v303_v49, 0.0 }
 0x107   :  { %v312_v53 = vmax.f32 %v306_v51, 0.0 }
 0x109   :  { %v380_v54 = vpack.c.bf16 %v312_v53, %v311_v52 }
 0x10b   :  { %382 = vst [vmem:[%s553_s3 + $0x8] sm:$0xff] %v380_v54  }

// kernel: detector_forward.11
= control target key start
LH: loop header
LB: loop body
LE: loop exit
PB: predicated region body
PF: predicated region fallthrough
CT: control target
= control target key end

     0   :  { %vm372_vm0 = vcmask 523264   ;;  %s880_s1 = inlined_call_operand.vmem [shape: bf16[576,128], index: 1, kind: input, shape index: {}]   ;;  %s881_s0 = inlined_call_operand.vmem [shape: bf16[32,576], index: 0, kind: input, shape index: {}]   ;;  %s882_s2 = inlined_call_operand.vmem [shape: f32[1,128], index: 2, kind: input, shape index: {}]   ;;  %s883_s3 = inlined_call_operand.vmem [shape: f32[32,128], index: 3, kind: output, shape index: {}]  }
   0x1   :  { %v657_v0 = vld [vmem:[%s880_s1 + $0x40] sm:$0xff]   ;;  %v661_v4 = vld [vmem:[%s880_s1 + $0x48] sm:$0xff]   ;;  %v665_v8 = vld [vmem:[%s880_s1 + $0x50] sm:$0xff]  }
   0x2   :  { %v658_v1 = vld [vmem:[%s880_s1] sm:$0xff]   ;;  %583 = vmatprep.subr.bf16.mxu0 %v657_v0  ;;  %v662_v5 = vld [vmem:[%s880_s1 + $0x8] sm:$0xff]   ;;  %v666_v9 = vld [vmem:[%s880_s1 + $0x10] sm:$0xff]  }
   0x3   :  { %v659_v2 = vld [vmem:[%s880_s1 + $0xc0] sm:$0xff]   ;;  %584 = vmatpush3.bf16.msra.mxu0 %v658_v1  ;;  %v663_v6 = vld [vmem:[%s880_s1 + $0xc8] sm:$0xff]   ;;  %v667_v10 = vld [vmem:[%s880_s1 + $0xd0] sm:$0xff]  }
   0x4   :  { %v660_v3 = vld [vmem:[%s880_s1 + $0x80] sm:$0xff]   ;;  %611 = vmatprep.subr.bf16.mxu1 %v659_v2  ;;  %585 = vmatprep.subr.bf16.mxu0 %v661_v4  ;;  %v664_v7 = vld [vmem:[%s880_s1 + $0x88] sm:$0xff]   ;;  %v668_v11 = vld [vmem:[%s880_s1 + $0x90] sm:$0xff]  }
   0x5   :  { %612 = vmatpush3.bf16.msra.mxu1 %v660_v3  ;;  %v669_v12 = vld [vmem:[%s880_s1 + $0x58] sm:$0xff]   ;;  %v673_v16 = vld [vmem:[%s880_s1 + $0x60] sm:$0xff]   ;;  %v677_v20 = vld [vmem:[%s880_s1 + $0x68] sm:$0xff]  }
   0x6   :  { %613 = vmatprep.subr.bf16.mxu1 %v663_v6  ;;  %v670_v13 = vld [vmem:[%s880_s1 + $0x18] sm:$0xff]   ;;  %v674_v17 = vld [vmem:[%s880_s1 + $0x20] sm:$0xff]   ;;  %v678_v21 = vld [vmem:[%s880_s1 + $0x28] sm:$0xff]  }
   0x7   :  { %586 = vmatpush3.bf16.msra.mxu0 %v662_v5  ;;  %v671_v14 = vld [vmem:[%s880_s1 + $0xd8] sm:$0xff]   ;;  %v675_v18 = vld [vmem:[%s880_s1 + $0xe0] sm:$0xff]   ;;  %v679_v22 = vld [vmem:[%s880_s1 + $0xe8] sm:$0xff]  }
   0x8   :  { %587 = vmatprep.subr.bf16.mxu0 %v665_v8  ;;  %v672_v15 = vld [vmem:[%s880_s1 + $0x98] sm:$0xff]   ;;  %v676_v19 = vld [vmem:[%s880_s1 + $0xa0] sm:$0xff]   ;;  %v680_v23 = vld [vmem:[%s880_s1 + $0xa8] sm:$0xff]  }
   0x9   :  { %614 = vmatpush3.bf16.msra.mxu1 %v664_v7  ;;  %v681_v24 = vld [vmem:[%s880_s1 + $0x70] sm:$0xff]   ;;  %v685_v28 = vld [vmem:[%s880_s1 + $0x78] sm:$0xff]   ;;  %v692_v34 = vld [vmem:[%s880_s1 + $0x100] sm:$0xff]  }
   0xa   :  { %615 = vmatprep.subr.bf16.mxu1 %v667_v10  ;;  %v682_v25 = vld [vmem:[%s880_s1 + $0x30] sm:$0xff]   ;;  %v686_v29 = vld [vmem:[%s880_s1 + $0x38] sm:$0xff]   ;;  %v695_v36 = vld [vmem:[%s881_s0 + $0xc] ss:$20 sps:$4 sm:$0xff]  }
   0xb   :  { %588 = vmatpush3.bf16.msra.mxu0 %v666_v9  ;;  %v683_v26 = vld [vmem:[%s880_s1 + $0xf0] sm:$0xff]   ;;  %v687_v30 = vld [vmem:[%s880_s1 + $0xf8] sm:$0xff]   ;;  %v696_v37 = vld [vmem:[%s880_s1 + $0x108] sm:$0xff]   ;;  %460 = vmatprep.mubr.bf16.mxu1 %v695_v36 }
   0xc   :  { %589 = vmatprep.subr.bf16.mxu0 %v669_v12  ;;  %v684_v27 = vld [vmem:[%s880_s1 + $0xb0] sm:$0xff]   ;;  %v690_v32 = vld [vmem:[%s881_s0 + $0x4] ss:$20 sps:$4 sm:$0xff]   ;;  %v693_v35 = vld [vmem:[%s881_s0 + $0x8] ss:$20 sps:$4 sm:$0xff]  }
   0xd   :  { %616 = vmatpush3.bf16.msra.mxu1 %v668_v11  ;;  %v688_v31 = vld [vmem:[%s881_s0] ss:$20 sps:$4 sm:$0xff]   ;;  %v691_v33 = vld [vmem:[%s880_s1 + $0xb8] sm:$0xff]   ;;  %411 = vmatprep.mubr.bf16.mxu0 %v690_v32  ;;  %v703_v42 = vld [vmem:[%s881_s0 + $0x30] ss:$20 sps:$4 sm:$0xff]  }
   0xe   :  { %617 = vmatprep.subr.bf16.mxu1 %v671_v14  ;;  %v697_v38 = vld [vmem:[%s881_s0 + $0x2c] ss:$20 sps:$4 sm:$0xff]   ;;  %v699_v39 = vld [vmem:[%s881_s0 + $0x28] ss:$20 sps:$4 sm:$0xff]   ;;  %v700_v40 = vld [vmem:[%s880_s1 + $0x110] sm:$0xff]  }
   0xf   :  { %590 = vmatpush3.bf16.msra.mxu0 %v670_v13  ;;  %v701_v41 = vld [vmem:[%s881_s0 + $0x34] ss:$20 sps:$4 sm:$0xff]   ;;  %v704_v43 = vld [vmem:[%s880_s1 + $0x118] sm:$0xff]   ;;  %v705_v44 = vld [vmem:[%s881_s0 + $0x10] ss:$20 sps:$4 sm:$0xff]  }
  0x10   :  { %591 = vmatprep.subr.bf16.mxu0 %v673_v16  ;;  %v706_v45 = vld [vmem:[%s881_s0 + $0x38] ss:$20 sps:$4 sm:$0xff]   ;;  %v534_v47 = vld [vmem:[%s882_s2] ss:$0 sm:$0xff] }
  0x11   :  { %618 = vmatpush3.bf16.msra.mxu1 %v672_v15 }
  0x12   :  { %619 = vmatprep.subr.bf16.mxu1 %v675_v18 }
  0x13   :  { %592 = vmatpush3.bf16.msra.mxu0 %v674_v17 }
  0x14   :  { %593 = vmatprep.subr.bf16.mxu0 %v677_v20 }
  0x15   :  { %620 = vmatpush3.bf16.msra.mxu1 %v676_v19 }
  0x16   :  { %621 = vmatprep.subr.bf16.mxu1 %v679_v22 }
  0x17   :  { %594 = vmatpush3.bf16.msra.mxu0 %v678_v21 }
  0x18   :  { %595 = vmatprep.subr.bf16.mxu0 %v681_v24 }
  0x19   :  { %622 = vmatpush3.bf16.msra.mxu1 %v680_v23 }
  0x1a   :  { %623 = vmatprep.subr.bf16.mxu1 %v683_v26 }
  0x1b   :  { %596 = vmatpush3.bf16.msra.mxu0 %v682_v25 }
  0x1c   :  { %597 = vmatprep.subr.bf16.mxu0 %v685_v28 }
  0x1d   :  { %624 = vmatpush3.bf16.msra.mxu1 %v684_v27 }
  0x1e   :  { %625 = vmatprep.subr.bf16.mxu1 %v687_v30 }
  0x1f   :  { %598 = vmatpush3.bf16.msra.mxu0 %v686_v29 }
  0x20   :  { %645 = vmatprep.subr.bf16.mxu0 %v692_v34 }
  0x21   :  { %626 = vmatpush3.bf16.msra.mxu1 %v691_v33 }
  0x22   :  { %412 = vmatmul.mubr.bf16.vlgmr.msra.gmra.mrb[0].mxu0 %v688_v31 }
  0x23   :  { %646 = vmatpush3.bf16.msra.mxu0 %v692_v34  ;;  %419 = vmatprep.mubr.bf16.mxu0 %v697_v38 }
  0x24   :  { %461 = vmatmul.mubr.bf16.vlgmr.msra.gmra.mrb[0].mxu1 %v693_v35  ;;  %647 = vmatprep.subr.bf16.mxu0 %v696_v37 }
  0x25   :  { %468 = vmatprep.mubr.bf16.mxu1 %v701_v41 }
  0x27   :  { %648 = vmatpush3.bf16.msra.mxu0 %v696_v37 }
  0x28   :  { %649 = vmatprep.subr.bf16.mxu0 %v700_v40 }
  0x2a   :  { %420 = vmatmul.mubr.bf16.gmra.mrb[4].mxu0 %v699_v39 }
  0x2b   :  { %653 = vmatprep.mubr.msk.bf16.mxu0 %vm372_vm0, %v705_v44  ;;  %650 = vmatpush3.bf16.msra.mxu0 %v700_v40 }
  0x2c   :  { %469 = vmatmul.mubr.bf16.gmra.mrb[4].mxu1 %v703_v42  ;;  %651 = vmatprep.subr.bf16.mxu0 %v704_v43 }
  0x2f   :  { %652 = vmatpush3.bf16.msra.mxu0 %v704_v43 }
  0x32   :  { %654 = vmatmul.mubr.msk.bf16.vlgmr.msra.gmra.mrb[8].mxu0 %vm372_vm0, %v706_v45 }
  0xf5   :  { %v599_v46 = vpop.f32.mrb[0].mxu0 }
  0xf6   :  { %v600_v48 = vpop.f32.mrb[1].mxu0 }
  0xf7   :  { %v601_v49 = vadd.f32 %v600_v48, %v599_v46  ;;  %v602_v50 = vpop.f32.mrb[2].mxu0  ;;  %v627_v51 = vpop.f32.mrb[0].mxu1 }
  0xf8   :  { %v603_v52 = vpop.f32.mrb[3].mxu0  ;;  %v628_v55 = vpop.f32.mrb[1].mxu1 }
  0xf9   :  { %v414_v53 = vadd.f32 %v601_v49, %v534_v47  ;;  %v604_v54 = vadd.f32 %v603_v52, %v602_v50  ;;  %v629_v56 = vadd.f32 %v628_v55, %v627_v51  ;;  %v630_v57 = vpop.f32.mrb[2].mxu1 }
  0xfa   :  { %v631_v59 = vpop.f32.mrb[3].mxu1 }
  0xfb   :  { %v417_v58 = vadd.f32 %v604_v54, %v534_v47  ;;  %v632_v60 = vadd.f32 %v631_v59, %v630_v57  ;;  %v463_v61 = vadd.f32 %v629_v56, %v414_v53 }
  0xfd   :  { %v605_v62 = vpop.f32.mrb[4].mxu0  ;;  %v466_v0 = vadd.f32 %v632_v60, %v417_v58 }
  0xfe   :  { %v606_v63 = vpop.f32.mrb[5].mxu0 }
  0xff   :  { %v607_v1 = vadd.f32 %v606_v63, %v605_v62  ;;  %v608_v2 = vpop.f32.mrb[6].mxu0  ;;  %v633_v3 = vpop.f32.mrb[4].mxu1 }
 0x100   :  { %v609_v4 = vpop.f32.mrb[7].mxu0  ;;  %v634_v7 = vpop.f32.mrb[5].mxu1 }
 0x101   :  { %v422_v5 = vadd.f32 %v607_v1, %v534_v47  ;;  %v610_v6 = vadd.f32 %v609_v4, %v608_v2  ;;  %v635_v8 = vadd.f32 %v634_v7, %v633_v3  ;;  %v636_v9 = vpop.f32.mrb[6].mxu1 }
 0x102   :  { %v637_v11 = vpop.f32.mrb[7].mxu1 }
 0x103   :  { %v425_v10 = vadd.f32 %v610_v6, %v534_v47  ;;  %v638_v12 = vadd.f32 %v637_v11, %v636_v9  ;;  %v471_v13 = vadd.f32 %v635_v8, %v422_v5 }
 0x105   :  { %v655_v14 = vpop.f32.mrb[8].mxu0  ;;  %v474_v15 = vadd.f32 %v638_v12, %v425_v10 }
 0x106   :  { %v520_v16 = vadd.f32 %v655_v14, %v471_v13  ;;  %v511_v17 = vpop.f32.mrb[9].mxu0 }
 0x107   :  { %v512_v18 = vadd.f32 %v511_v17, %v463_v61  ;;  %v656_v19 = vpop.f32.mrb[10].mxu0 }
 0x108   :  { %528 = vst [vmem:[%s883_s3 + $0x10] sm:$0xff] %v520_v16  ;;  %v523_v20 = vadd.f32 %v656_v19, %v474_v15  ;;  %v514_v21 = vpop.f32.mrb[11].mxu0 }
 0x109   :  { %526 = vst [vmem:[%s883_s3] sm:$0xff] %v512_v18  ;;  %v515_v22 = vadd.f32 %v514_v21, %v466_v0 }
 0x10a   :  { %529 = vst [vmem:[%s883_s3 + $0x18] sm:$0xff] %v523_v20 }
 0x10b   :  { %527 = vst [vmem:[%s883_s3 + $0x8] sm:$0xff] %v515_v22 }

</bundles_post_ra>
